<compile_context>
chip_gen: v5e
topology: v5e:2x2
jax: 0.10.0
libtpu: 0.0.40
codegen_flags: <defaults>
</compile_context>

<pallas_src>
import jax
import jax.numpy as jnp
from jax.experimental import pallas as pl
from jax.experimental.pallas import tpu as pltpu

IN_F = 4        # input features
HID = 512       # hidden width
OUT_F = 2       # real number of Q-values
OUT_PAD = 128   # lane-dense padded output width
TILE_B = 128    # batch rows processed per grid step


def dqn_kernel(x_ref, w1_ref, b1_ref, w2_ref, b2_ref, w3_ref, b3_ref, o_ref):
    """One batch tile of the 4 -> 512 -> 512 -> 2 MLP.

    x_ref : (TILE_B, 4)    f32
    w1_ref: (4, 512)       f32   resident across grid steps
    b1_ref: (1, 512)       f32
    w2_ref: (512, 512)     bf16
    b2_ref: (1, 512)       f32
    w3_ref: (512, 128)     bf16  (lanes 2..127 are zero padding)
    b3_ref: (1, 128)       f32   (lanes 2..127 are zero)
    o_ref : (TILE_B, 128)  f32   (only first 2 lanes meaningful)
    """
    x = x_ref[...]

    # Layer 1: K=4 is a degenerate matmul -> 4 broadcast FMAs on the VPU
    # (avoids MXU push/pop latency for a sliver-sized contraction).
    h1 = b1_ref[...]
    for k in range(IN_F):
        h1 = h1 + x[:, k:k + 1] * w1_ref[k:k + 1, :]
    h1 = jnp.maximum(h1, 0.0)                       # f32 elementwise (VPU-native on v5e)

    # Layer 2: 512x512 bf16 MXU matmul, f32 accumulation, f32 bias/ReLU.
    h2 = jnp.dot(h1.astype(jnp.bfloat16), w2_ref[...],
                 preferred_element_type=jnp.float32) + b2_ref[...]
    h2 = jnp.maximum(h2, 0.0)

    # Layer 3: lane-dense 512x128 bf16 matmul (real width 2, zero-padded).
    q = jnp.dot(h2.astype(jnp.bfloat16), w3_ref[...],
                preferred_element_type=jnp.float32) + b3_ref[...]
    o_ref[...] = q.astype(o_ref.dtype)


def pack_params(params):
    """Cast / pad the logical params into the kernel's resident-weight layout."""
    w1, b1, w2, b2, w3, b3 = params
    w3p = jnp.zeros((HID, OUT_PAD), jnp.bfloat16).at[:, :OUT_F].set(
        w3.astype(jnp.bfloat16))
    b3p = jnp.zeros((1, OUT_PAD), jnp.float32).at[:, :OUT_F].set(
        b3.astype(jnp.float32))
    return (w1.astype(jnp.float32), b1.astype(jnp.float32),
            w2.astype(jnp.bfloat16), b2.astype(jnp.float32),
            w3p, b3p)


@jax.jit
def dqn_forward(x, packed):
    w1, b1, w2, b2, w3p, b3p = packed
    B = x.shape[0]
    pad_b = ((B + TILE_B - 1) // TILE_B) * TILE_B
    if pad_b != B:
        x = jnp.pad(x, ((0, pad_b - B), (0, 0)))
    nb = pad_b // TILE_B

    const = lambda i: (0, 0)  # weights/biases: same block every step -> stay VMEM-resident
    flops = 2 * pad_b * (IN_F * HID + HID * HID + HID * OUT_PAD)
    bytes_accessed = (x.size * 4 + w1.size * 4 + b1.size * 4 + w2.size * 2
                      + b2.size * 4 + w3p.size * 2 + b3p.size * 4
                      + pad_b * OUT_PAD * 4)

    out = pl.pallas_call(
        dqn_kernel,
        out_shape=jax.ShapeDtypeStruct((pad_b, OUT_PAD), jnp.float32),
        grid_spec=pltpu.PrefetchScalarGridSpec(
            num_scalar_prefetch=0,
            grid=(nb,),
            in_specs=[
                pl.BlockSpec((TILE_B, IN_F), lambda i: (i, 0)),   # x tile, pipelined
                pl.BlockSpec((IN_F, HID), const),                 # w1  (resident)
                pl.BlockSpec((1, HID), const),                    # b1
                pl.BlockSpec((HID, HID), const),                  # w2
                pl.BlockSpec((1, HID), const),                    # b2
                pl.BlockSpec((HID, OUT_PAD), const),              # w3 (padded)
                pl.BlockSpec((1, OUT_PAD), const),                # b3 (padded)
            ],
            out_specs=pl.BlockSpec((TILE_B, OUT_PAD), lambda i: (i, 0)),
        ),
        compiler_params=pltpu.CompilerParams(
            dimension_semantics=("parallel",),      # shard batch tiles across v7x TCs
            vmem_limit_bytes=32 * 1024 * 1024,      # sized well under v7x's 64 MiB VMEM
        ),
        cost_estimate=pl.CostEstimate(
            flops=flops, transcendentals=0, bytes_accessed=bytes_accessed),
    )(x, w1, b1, w2, b2, w3p, b3p)

    return out[:B, :OUT_F]   # drop batch padding + lane padding


def init_params(key):
    """Deterministic init mimicking PyTorch nn.Linear default (U[-1/sqrt(fan_in), ...])."""
    def linear(key, fan_in, fan_out):
        kw, kb = jax.random.split(key)
        bound = 1.0 / jnp.sqrt(float(fan_in))
        w = jax.random.uniform(kw, (fan_in, fan_out), jnp.float32, -bound, bound)
        b = jax.random.uniform(kb, (1, fan_out), jnp.float32, -bound, bound)
        return w, b

    k1, k2, k3 = jax.random.split(key, 3)
    w1, b1 = linear(k1, IN_F, HID)
    w2, b2 = linear(k2, HID, HID)
    w3, b3 = linear(k3, HID, OUT_F)
    return (w1, b1, w2, b2, w3, b3)


def dqn_reference(x, params):
    """Pure-JAX reference mirroring the kernel numerics (bf16 matmul operands,
    f32 accumulation) so the comparison is apples-to-apples."""
    w1, b1, w2, b2, w3, b3 = params
    h1 = jnp.maximum(
        jnp.dot(x, w1, precision=jax.lax.Precision.HIGHEST) + b1, 0.0)
    h2 = jnp.dot(h1.astype(jnp.bfloat16), w2.astype(jnp.bfloat16),
                 preferred_element_type=jnp.float32) + b2
    h2 = jnp.maximum(h2, 0.0)
    q = jnp.dot(h2.astype(jnp.bfloat16), w3.astype(jnp.bfloat16),
                preferred_element_type=jnp.float32) + b3
    return q


if __name__ == "__main__":
    key = jax.random.PRNGKey(0)
    kx, kp = jax.random.split(key)
    # Non-multiple of the 128-row batch tile -> exercises padding; grid=(2,)
    # so weight residency across grid steps is actually exercised.
    B = 200
    x = jax.random.normal(kx, (B, IN_F), jnp.float32)
    params = init_params(kp)
    packed = pack_params(params)

    q = dqn_forward(x, packed)
    q = jax.block_until_ready(q)

    q_ref = dqn_reference(x, params)
    assert q.shape == (B, OUT_F)
    max_err = float(jnp.max(jnp.abs(q - q_ref)))
    assert jnp.allclose(q, q_ref, atol=2e-2, rtol=2e-2), (
        f"mismatch vs reference: max abs err = {max_err}")
    print("KERNEL_OK")
</pallas_src>

<mosaic_0001>
module attributes {stable_mosaic.version = 11 : i64} {
  func.func @dqn_kernel(%arg0: i32, %arg1: memref<128x4xf32, #tpu.memory_space<vmem>>, %arg2: memref<4x512xf32, #tpu.memory_space<vmem>>, %arg3: memref<1x512xf32, #tpu.memory_space<vmem>>, %arg4: memref<512x512xbf16, #tpu.memory_space<vmem>>, %arg5: memref<1x512xf32, #tpu.memory_space<vmem>>, %arg6: memref<512x128xbf16, #tpu.memory_space<vmem>>, %arg7: memref<1x128xf32, #tpu.memory_space<vmem>>, %arg8: memref<128x128xf32, #tpu.memory_space<vmem>>) attributes {dimension_semantics = [#tpu.dimension_semantics<parallel>], iteration_bounds = array<i64: 2>, scalar_prefetch = 0 : i64, scratch_operands = 0 : i64, tpu.core_type = #tpu.core_type<tc>, window_params = [{transform_indices = @transform_0, window_bounds = array<i64: 128, 4>}, {pipeline_mode = #tpu.pipeline_mode<synchronous>, transform_indices = @transform_1, window_bounds = array<i64: 4, 512>}, {pipeline_mode = #tpu.pipeline_mode<synchronous>, transform_indices = @transform_2, window_bounds = array<i64: 1, 512>}, {pipeline_mode = #tpu.pipeline_mode<synchronous>, transform_indices = @transform_3, window_bounds = array<i64: 512, 512>}, {pipeline_mode = #tpu.pipeline_mode<synchronous>, transform_indices = @transform_4, window_bounds = array<i64: 1, 512>}, {pipeline_mode = #tpu.pipeline_mode<synchronous>, transform_indices = @transform_5, window_bounds = array<i64: 512, 128>}, {pipeline_mode = #tpu.pipeline_mode<synchronous>, transform_indices = @transform_6, window_bounds = array<i64: 1, 128>}, {transform_indices = @transform_7, window_bounds = array<i64: 128, 128>}]} {
    %c0 = arith.constant 0 : index
    %c0_0 = arith.constant 0 : index
    %0 = vector.load %arg1[%c0, %c0_0] : memref<128x4xf32, #tpu.memory_space<vmem>>, vector<128x4xf32>
    %c0_1 = arith.constant 0 : index
    %c0_2 = arith.constant 0 : index
    %1 = vector.load %arg3[%c0_1, %c0_2] : memref<1x512xf32, #tpu.memory_space<vmem>>, vector<1x512xf32>
    %2 = vector.extract_strided_slice %0 {offsets = [0, 0], sizes = [128, 1], strides = [1, 1]} : vector<128x4xf32> to vector<128x1xf32>
    %c0_3 = arith.constant 0 : index
    %c0_4 = arith.constant 0 : index
    %3 = vector.load %arg2[%c0_3, %c0_4] : memref<4x512xf32, #tpu.memory_space<vmem>>, vector<1x512xf32>
    %4 = vector.broadcast %2 : vector<128x1xf32> to vector<128x512xf32>
    %5 = vector.broadcast %3 : vector<1x512xf32> to vector<128x512xf32>
    %6 = arith.mulf %4, %5 : vector<128x512xf32>
    %7 = vector.broadcast %1 : vector<1x512xf32> to vector<128x512xf32>
    %8 = arith.addf %7, %6 : vector<128x512xf32>
    %9 = vector.extract_strided_slice %0 {offsets = [0, 1], sizes = [128, 1], strides = [1, 1]} : vector<128x4xf32> to vector<128x1xf32>
    %c1 = arith.constant 1 : index
    %c0_5 = arith.constant 0 : index
    %10 = vector.load %arg2[%c1, %c0_5] : memref<4x512xf32, #tpu.memory_space<vmem>>, vector<1x512xf32>
    %11 = vector.broadcast %9 : vector<128x1xf32> to vector<128x512xf32>
    %12 = vector.broadcast %10 : vector<1x512xf32> to vector<128x512xf32>
    %13 = arith.mulf %11, %12 : vector<128x512xf32>
    %14 = arith.addf %8, %13 : vector<128x512xf32>
    %15 = vector.extract_strided_slice %0 {offsets = [0, 2], sizes = [128, 1], strides = [1, 1]} : vector<128x4xf32> to vector<128x1xf32>
    %c2 = arith.constant 2 : index
    %c0_6 = arith.constant 0 : index
    %16 = vector.load %arg2[%c2, %c0_6] : memref<4x512xf32, #tpu.memory_space<vmem>>, vector<1x512xf32>
    %17 = vector.broadcast %15 : vector<128x1xf32> to vector<128x512xf32>
    %18 = vector.broadcast %16 : vector<1x512xf32> to vector<128x512xf32>
    %19 = arith.mulf %17, %18 : vector<128x512xf32>
    %20 = arith.addf %14, %19 : vector<128x512xf32>
    %21 = vector.extract_strided_slice %0 {offsets = [0, 3], sizes = [128, 1], strides = [1, 1]} : vector<128x4xf32> to vector<128x1xf32>
    %c3 = arith.constant 3 : index
    %c0_7 = arith.constant 0 : index
    %22 = vector.load %arg2[%c3, %c0_7] : memref<4x512xf32, #tpu.memory_space<vmem>>, vector<1x512xf32>
    %23 = vector.broadcast %21 : vector<128x1xf32> to vector<128x512xf32>
    %24 = vector.broadcast %22 : vector<1x512xf32> to vector<128x512xf32>
    %25 = arith.mulf %23, %24 : vector<128x512xf32>
    %26 = arith.addf %20, %25 : vector<128x512xf32>
    %cst = arith.constant 0.000000e+00 : f32
    %27 = vector.broadcast %cst : f32 to vector<128x512xf32>
    %28 = arith.maximumf %26, %27 : vector<128x512xf32>
    %29 = arith.truncf %28 : vector<128x512xf32> to vector<128x512xbf16>
    %c0_8 = arith.constant 0 : index
    %c0_9 = arith.constant 0 : index
    %30 = vector.load %arg4[%c0_8, %c0_9] : memref<512x512xbf16, #tpu.memory_space<vmem>>, vector<512x512xbf16>
    %cst_10 = arith.constant dense<0.000000e+00> : vector<128x512xf32>
    %31 = tpu.matmul %29, %30, %cst_10 {dimension_numbers = #tpu.dot_dimension_numbers<[1], [0], [0], [1], [0, 0, 1, 1], [], []>} : vector<128x512xbf16>, vector<512x512xbf16>, vector<128x512xf32> -> vector<128x512xf32>
    %c0_11 = arith.constant 0 : index
    %c0_12 = arith.constant 0 : index
    %32 = vector.load %arg5[%c0_11, %c0_12] : memref<1x512xf32, #tpu.memory_space<vmem>>, vector<1x512xf32>
    %33 = vector.broadcast %32 : vector<1x512xf32> to vector<128x512xf32>
    %34 = arith.addf %31, %33 : vector<128x512xf32>
    %cst_13 = arith.constant 0.000000e+00 : f32
    %35 = vector.broadcast %cst_13 : f32 to vector<128x512xf32>
    %36 = arith.maximumf %34, %35 : vector<128x512xf32>
    %37 = arith.truncf %36 : vector<128x512xf32> to vector<128x512xbf16>
    %c0_14 = arith.constant 0 : index
    %c0_15 = arith.constant 0 : index
    %38 = vector.load %arg6[%c0_14, %c0_15] : memref<512x128xbf16, #tpu.memory_space<vmem>>, vector<512x128xbf16>
    %cst_16 = arith.constant dense<0.000000e+00> : vector<128x128xf32>
    %39 = tpu.matmul %37, %38, %cst_16 {dimension_numbers = #tpu.dot_dimension_numbers<[1], [0], [0], [1], [0, 0, 1, 1], [], []>} : vector<128x512xbf16>, vector<512x128xbf16>, vector<128x128xf32> -> vector<128x128xf32>
    %c0_17 = arith.constant 0 : index
    %c0_18 = arith.constant 0 : index
    %40 = vector.load %arg7[%c0_17, %c0_18] : memref<1x128xf32, #tpu.memory_space<vmem>>, vector<1x128xf32>
    %41 = vector.broadcast %40 : vector<1x128xf32> to vector<128x128xf32>
    %42 = arith.addf %39, %41 : vector<128x128xf32>
    %c0_19 = arith.constant 0 : index
    %c0_20 = arith.constant 0 : index
    %43 = vector.load %arg8[%c0_19, %c0_20] : memref<128x128xf32, #tpu.memory_space<vmem>>, vector<128x128xf32>
    tpu.vector_store %arg8[%c0_19, %c0_20], %42 {strides = array<i32>} : memref<128x128xf32, #tpu.memory_space<vmem>>, vector<128x128xf32>,
    return
  }
  func.func @transform_0(%arg0: i32) -> (i32, i32) {
    %c0_i32 = arith.constant 0 : i32
    %c0_i32_0 = arith.constant 0 : i32
    return %arg0, %c0_i32 : i32, i32
  }
  func.func @transform_1(%arg0: i32) -> (i32, i32) {
    %c0_i32 = arith.constant 0 : i32
    %c0_i32_0 = arith.constant 0 : i32
    %c0_i32_1 = arith.constant 0 : i32
    return %c0_i32, %c0_i32_0 : i32, i32
  }
  func.func @transform_2(%arg0: i32) -> (i32, i32) {
    %c0_i32 = arith.constant 0 : i32
    %c0_i32_0 = arith.constant 0 : i32
    %c0_i32_1 = arith.constant 0 : i32
    return %c0_i32, %c0_i32_0 : i32, i32
  }
  func.func @transform_3(%arg0: i32) -> (i32, i32) {
    %c0_i32 = arith.constant 0 : i32
    %c0_i32_0 = arith.constant 0 : i32
    %c0_i32_1 = arith.constant 0 : i32
    return %c0_i32, %c0_i32_0 : i32, i32
  }
  func.func @transform_4(%arg0: i32) -> (i32, i32) {
    %c0_i32 = arith.constant 0 : i32
    %c0_i32_0 = arith.constant 0 : i32
    %c0_i32_1 = arith.constant 0 : i32
    return %c0_i32, %c0_i32_0 : i32, i32
  }
  func.func @transform_5(%arg0: i32) -> (i32, i32) {
    %c0_i32 = arith.constant 0 : i32
    %c0_i32_0 = arith.constant 0 : i32
    %c0_i32_1 = arith.constant 0 : i32
    return %c0_i32, %c0_i32_0 : i32, i32
  }
  func.func @transform_6(%arg0: i32) -> (i32, i32) {
    %c0_i32 = arith.constant 0 : i32
    %c0_i32_0 = arith.constant 0 : i32
    %c0_i32_1 = arith.constant 0 : i32
    return %c0_i32, %c0_i32_0 : i32, i32
  }
  func.func @transform_7(%arg0: i32) -> (i32, i32) {
    %c0_i32 = arith.constant 0 : i32
    %c0_i32_0 = arith.constant 0 : i32
    return %arg0, %c0_i32 : i32, i32
  }
}

</mosaic_0001>

<bundles_post_ra>
// kernel: dqn_forward.1
= control target key start
LH: loop header
LB: loop body
LE: loop exit
PB: predicated region body
PF: predicated region fallthrough
CT: control target
= control target key end

     0   :  { %12 = vsyncpa [#allocation3], 0  ;;  %s4436_s24 = smov 0   ;;  %s5795_s0 = inlined_call_operand.vmem [shape: f32[256,4], index: 0, kind: input, shape index: {}]   ;;  %s5796_s1 = inlined_call_operand.vmem [shape: f32[4,512], index: 1, kind: input, shape index: {}]   ;;  %s5797_s2 = inlined_call_operand.vmem [shape: f32[1,512], index: 2, kind: input, shape index: {}]   ;;  %s5798_s3 = inlined_call_operand.hbm [shape: bf16[512,512], index: 3, kind: input, shape index: {}]   ;;  %s5799_s4 = inlined_call_operand.vmem [shape: f32[1,512], index: 4, kind: input, shape index: {}]   ;;  %s5800_s5 = inlined_call_operand.vmem [shape: bf16[512,128], index: 5, kind: input, shape index: {}]   ;;  %s5801_s6 = inlined_call_operand.vmem [shape: f32[1,128], index: 6, kind: input, shape index: {}]   ;;  %s5802_s7 = inlined_call_operand.vmem [shape: f32[256,128], index: 7, kind: output, shape index: {}]  }
   0x1 LB: > { %s218_s27 = sshll.u32 %s5798_s3, 4  ;;  %s3446_s28 = sadd.s32 4294967295, %s4387_s24   ;;  %s4387_s24 = sphi %s4436_s24, %s18_s24   ;;  %s219_s27 = int_to_ptr.hbm [resolvable:$true] %s218_s27 }
   0x2   : > { %p3448_p0 = scmp.ge.s32.totalorder %s4387_s24, 1  ;;  %p201_p1 = scmp.lt.s32.totalorder %s4387_s24, 3 }
   0x3   : > { %p4270_p2 = scmp.eq.s32.totalorder %s3446_s28, 0  ;;  %s4389_s29 = smov [#allocation2]  }
   0x4   : > { %p202_p3 = pnand %p3448_p0, %p201_p1  ;;  %s220_s30 = sshll.u32 %s4389_s29, 4  ;;  %s221_s30 = int_to_ptr.vmem [resolvable:$true] %s220_s30 }
   0x5   : > { %s4390_s8 = smov 256   ;;  %s4391_s9 = smov 16  }
   0x6   : > { %p4266_p4 = pneg %p202_p3  ;;  %254 = sbr.rel (%p202_p3) target bundleno = 1033 (0x409), region = 48 }
   0x8   : > { %p4267_p5 = pnand %p4270_p2, %p4266_p4 }
   0xa   : > { %4269 = dma.hbm_to_vmem [thread:$0]  (!%p4267_p5), %s219_s27, 16384, %s221_s30, [#allocation3], %s4390_s8, %s4390_s8, %s4391_s9  }
   0xb   : > { %4382 = dma.done.wait (%p4270_p2), [#allocation3], 16384  }
   0xc   : > { %4384 = vsyncadd (%p4270_p2), [#allocation3], 4294950912  ;;  %s3453_s10 = sshll.u32 %s3446_s28, 4  ;;  %v5809_v0 = vmov 1   ;;  %v5807_v1 = vmov 0   ;;  %v5805_v2 = vmov 2  }
   0xd   : > { %4288 = vset.pattern.permute.xlu1 %v5809_v0  ;;  %4287 = vset.pattern.permute.xlu0 %v5807_v1  ;;  %p288_p6 = scmp.lt.s32.totalorder %s3453_s10, 31  ;;  %v5803_v7 = vmov 3   ;;  %v3574_v15 = vld [vmem:[#allocation2 + $0xe0] sm:$0xf]  ;;  %v4132_v16 = vld [vmem:[#allocation2 + $0xec] sm:$0xf0] }
   0xe   : > { %4289 = vset.pattern.permute.xlu2 %v5805_v2  ;;  %v3702_v17 = vld [vmem:[#allocation2 + $0x1e0] sm:$0xf]  ;;  %v3575_v18 = vor.u32 %v4132_v16, %v3574_v15  ;;  %v4164_v19 = vld [vmem:[#allocation2 + $0x1ec] sm:$0xf0] }
   0xf   : > { %s6056_s10 = smov (!%p288_p6, %s3453_s10), 31  ;;  %v3830_v20 = vld [vmem:[#allocation2 + $0x2e0] sm:$0xf]  ;;  %v4196_v21 = vld [vmem:[#allocation2 + $0x2ec] sm:$0xf0]  ;;  %v3703_v22 = vor.u32 %v4164_v19, %v3702_v17 }
  0x10   : > { %s3454_s11 = sshll.u32 %s6056_s10, 3  ;;  %v3831_v23 = vor.u32 %v4196_v21, %v3830_v20  ;;  %v3958_v24 = vld [vmem:[#allocation2 + $0x3e0] sm:$0xf]  ;;  %v4228_v25 = vld [vmem:[#allocation2 + $0x3ec] sm:$0xf0]  ;;  %2026 = vmatpush.bf16.msra.mxu0 %v3575_v18 }
  0x11   : > { %s4458_s14 = scalar_lea.vmem %s5795_s0, %s3454_s11  ;;  %v3959_v27 = vor.u32 %v4228_v25, %v3958_v24  ;;  %2075 = vmatpush.bf16.msra.mxu1 %v3703_v22  ;;  %v3558_v28 = vld [vmem:[#allocation2 + $0xc0] sm:$0xf]  ;;  %v4128_v29 = vld [vmem:[#allocation2 + $0xcc] sm:$0xf0]  ;;  %s5759_s17 = scalar_lea.vmem %s5802_s7, %s3454_s11 }
  0x12   : > { %v299_v3 = vld [vmem:[%s4458_s14] sm:$0xff]  ;;  %v300_v4 = vld [vmem:[%s4458_s14 + $0x8] sm:$0xff]  ;;  %v301_v6 = vld [vmem:[%s4458_s14 + $0x10] sm:$0xff]  ;;  %2124 = vmatpush.bf16.msra.mxu2 %v3831_v23  ;;  %v3559_v31 = vor.u32 %v4128_v29, %v3558_v28 }
  0x13   : > { %546 = vperm.xlu1 %4288, %v299_v3   ;;  %319 = vperm.xlu0 %4287, %v299_v3   ;;  %v303_v5 = vld [vmem:[%s4458_s14 + $0x20] sm:$0xff]  ;;  %v302_v8 = vld [vmem:[%s4458_s14 + $0x18] sm:$0xff]  ;;  %v305_v9 = vld [vmem:[%s4458_s14 + $0x30] sm:$0xff] }
  0x14   : > { %749 = vperm.xlu2 %4289, %v299_v3   ;;  %v306_v10 = vld [vmem:[%s4458_s14 + $0x38] sm:$0xff]  ;;  %v304_v11 = vld [vmem:[%s4458_s14 + $0x28] sm:$0xff]  ;;  %v4486_v12 = vld [vmem:[%s4458_s14 + $0x40] sm:$0xff]  ;;  %2173 = vmatpush.bf16.msra.mxu3 %v3959_v27 }
  0x15   : > { %v4501_v26 = vld [vmem:[%s4458_s14 + $0x48] sm:$0xff]  ;;  %v3686_v30 = vld [vmem:[#allocation2 + $0x1c0] sm:$0xf]  ;;  %v4160_v32 = vld [vmem:[#allocation2 + $0x1cc] sm:$0xf0]  ;;  %2027 = vmatpush.bf16.msra.mxu0 %v3559_v31 }
  0x16   : > { %v3814_v33 = vld [vmem:[#allocation2 + $0x2c0] sm:$0xf]  ;;  %v4192_v34 = vld [vmem:[#allocation2 + $0x2cc] sm:$0xf0]  ;;  %v3687_v35 = vor.u32 %v4160_v32, %v3686_v30  ;;  %v4510_v44 = vld [vmem:[%s4458_s14 + $0x58] sm:$0xff] }
  0x17   : > { %v3815_v36 = vor.u32 %v4192_v34, %v3814_v33  ;;  %v3942_v37 = vld [vmem:[#allocation2 + $0x3c0] sm:$0xf]  ;;  %v4224_v38 = vld [vmem:[#allocation2 + $0x3cc] sm:$0xf0] }
  0x18   : > { %v3943_v39 = vor.u32 %v4224_v38, %v3942_v37  ;;  %v3542_v41 = vld [vmem:[#allocation2 + $0xa0] sm:$0xf]  ;;  %v4124_v42 = vld [vmem:[#allocation2 + $0xac] sm:$0xf0]  ;;  %2076 = vmatpush.bf16.msra.mxu1 %v3687_v35 }
  0x19   : > { %v3670_v43 = vld [vmem:[#allocation2 + $0x1a0] sm:$0xf]  ;;  %v4156_v45 = vld [vmem:[#allocation2 + $0x1ac] sm:$0xf0]  ;;  %2125 = vmatpush.bf16.msra.mxu2 %v3815_v36  ;;  %v3543_v47 = vor.u32 %v4124_v42, %v3542_v41 }
  0x1a   : > { %v3798_v46 = vld [vmem:[#allocation2 + $0x2a0] sm:$0xf]  ;;  %2174 = vmatpush.bf16.msra.mxu3 %v3943_v39  ;;  %v3671_v48 = vor.u32 %v4156_v45, %v3670_v43  ;;  %v4188_v49 = vld [vmem:[#allocation2 + $0x2ac] sm:$0xf0] }
  0x1b   : > { %550 = vperm.xlu1 %4288, %v300_v4   ;;  %324 = vperm.xlu0 %4287, %v300_v4   ;;  %v3926_v50 = vld [vmem:[#allocation2 + $0x3a0] sm:$0xf]  ;;  %v4220_v51 = vld [vmem:[#allocation2 + $0x3ac] sm:$0xf0]  ;;  %v3799_v52 = vor.u32 %v4188_v49, %v3798_v46 }
  0x1c   : > { %753 = vperm.xlu2 %4289, %v300_v4   ;;  %2028 = vmatpush.bf16.msra.mxu0 %v3543_v47  ;;  %v3927_v53 = vor.u32 %v4220_v51, %v3926_v50  ;;  %v3526_v54 = vld [vmem:[#allocation2 + $0x80] sm:$0xf]  ;;  %v4120_v55 = vld [vmem:[#allocation2 + $0x8c] sm:$0xf0] }
  0x1d   : > { %v3654_v56 = vld [vmem:[#allocation2 + $0x180] sm:$0xf]  ;;  %2077 = vmatpush.bf16.msra.mxu1 %v3671_v48  ;;  %v3527_v57 = vor.u32 %v4120_v55, %v3526_v54  ;;  %v4152_v58 = vld [vmem:[#allocation2 + $0x18c] sm:$0xf0]  ;;  %2126 = vmatpush.bf16.msra.mxu2 %v3799_v52 }
  0x1e   : > { %v3782_v59 = vld [vmem:[#allocation2 + $0x280] sm:$0xf]  ;;  %v4184_v60 = vld [vmem:[#allocation2 + $0x28c] sm:$0xf0]  ;;  %2175 = vmatpush.bf16.msra.mxu3 %v3927_v53 }
  0x1f   : > { %v3910_v63 = vld [vmem:[#allocation2 + $0x380] sm:$0xf]  ;;  %v4148_v16 = vld [vmem:[#allocation2 + $0x16c] sm:$0xf0] }
  0x20   : > { %2029 = vmatpush.bf16.msra.mxu0 %v3527_v57  ;;  %v3638_v15 = vld [vmem:[#allocation2 + $0x160] sm:$0xf]  ;;  %v4527_v18 = vld [vmem:[%s4458_s14 + $0x50] sm:$0xff] }
  0x21   : > { %v3458_v17 = vld [vmem:[%s5796_s1 + $0x2] ss:$4 sm:$0xf]  ;;  %v3457_v19 = vld [vmem:[%s5796_s1 + $0x1] ss:$4 sm:$0xf]  ;;  %v3639_v25 = vor.u32 %v4148_v16, %v3638_v15 }
  0x22   : > { %v3766_v20 = vld [vmem:[#allocation2 + $0x260] sm:$0xf]  ;;  %v4180_v21 = vld [vmem:[#allocation2 + $0x26c] sm:$0xf0]  ;;  %v4542_v34 = vperm.slane %v3458_v17, 0  ;;  %v4544_v35 = vperm.slane %v3458_v17, 1 }
  0x23   : > { %4290 = vset.pattern.permute.xlu1 %v5803_v7  ;;  %339 = vperm.xlu0 %4287, %v303_v5   ;;  %v3894_v22 = vld [vmem:[#allocation2 + $0x360] sm:$0xf]  ;;  %v4212_v27 = vld [vmem:[#allocation2 + $0x36c] sm:$0xf0]  ;;  %v3767_v33 = vor.u32 %v4180_v21, %v3766_v20  ;;  %v4547_v41 = vperm.slane %v3458_v17, 2  ;;  %v4549_v42 = vperm.slane %v3458_v17, 3 }
  0x24   : > { %956 = vperm.xlu1 %4290, %v300_v4   ;;  %4291 = vset.pattern.permute.xlu2 %v5807_v1  ;;  %v3655_v4 = vor.u32 %v4152_v58, %v3654_v56  ;;  %v3494_v28 = vld [vmem:[#allocation2 + $0x40] sm:$0xf]  ;;  %v4112_v29 = vld [vmem:[#allocation2 + $0x4c] sm:$0xf0]  ;;  %5895 = vst [vmem:[#allocation5_spill] sm:$0xff] %v4542_v34  ;;  %v3895_v36 = vor.u32 %v4212_v27, %v3894_v22  ;;  %v4551_v43 = vperm.slane %v3457_v19, 0 }
  0x25   : > { %329 = vperm.xlu2 %4291, %v301_v6   ;;  %v3622_v30 = vld [vmem:[#allocation2 + $0x140] sm:$0xf]  ;;  %v4144_v31 = vld [vmem:[#allocation2 + $0x14c] sm:$0xf0]  ;;  %5896 = vst [vmem:[#allocation6_spill] sm:$0xff] %v4544_v35  ;;  %v3495_v37 = vor.u32 %v4112_v29, %v3494_v28  ;;  %v4557_v47 = vperm.slane %v3457_v19, 1 }
  0x26   : > { %2078 = vmatpush.bf16.msra.mxu1 %v3655_v4  ;;  %v316_v32 = vld [vmem:[%s5796_s1] ss:$4 sm:$0xf]  ;;  %v4176_v39 = vld [vmem:[#allocation2 + $0x24c] sm:$0xf0]  ;;  %5897 = vst [vmem:[#allocation7_spill] sm:$0xff] %v4547_v41  ;;  %v3623_v46 = vor.u32 %v4144_v31, %v3622_v30 }
  0x27   : > { %v3750_v38 = vld [vmem:[#allocation2 + $0x240] sm:$0xf]  ;;  %v4559_v48 = vperm.slane %v3457_v19, 2  ;;  %v4561_v49 = vperm.slane %v3457_v19, 3  ;;  %v4563_v50 = vperm.slane %v316_v32, 0  ;;  %v4566_v51 = vperm.slane %v316_v32, 1 }
  0x28   : > { %v315_v45 = vld [vmem:[%s5797_s2] sm:$0xf]  ;;  %v4568_v52 = vperm.slane %v316_v32, 2  ;;  %v3751_v54 = vor.u32 %v4176_v39, %v3750_v38  ;;  %v4208_v56 = vld [vmem:[#allocation2 + $0x34c] sm:$0xf0]  ;;  %v4572_v57 = vperm.slane %v316_v32, 3 }
  0x29   : > { %5898 = vst [vmem:[#allocation8_spill] sm:$0xff] %v4559_v48  ;;  %v3878_v55 = vld [vmem:[#allocation2 + $0x340] sm:$0xf]  ;;  %v4574_v58 = vperm.slane %v315_v45, 0  ;;  %v4108_v22 = vld [vmem:[#allocation2 + $0x2c] sm:$0xf0] }
  0x2a   : > { %2079 = vmatpush.bf16.msra.mxu1 %v3639_v25  ;;  %5899 = vst [vmem:[#allocation9_spill] sm:$0xff] %v4561_v49  ;;  %v3879_v15 = vor.u32 %v4208_v56, %v3878_v55  ;;  %v3478_v21 = vld [vmem:[#allocation2 + $0x20] sm:$0xf]  ;;  %v4172_v39 = vld [vmem:[#allocation2 + $0x22c] sm:$0xf0] }
  0x2b   : > { %4298 = vset.pattern.permute.xlu0 %v5809_v0  ;;  %5900 = vst [vmem:[#allocation10_spill] sm:$0xff] %v4563_v50  ;;  %v3606_v32 = vld [vmem:[#allocation2 + $0x120] sm:$0xf] }
  0x2c   : > { %4292 = vset.pattern.permute.xlu1 %v5807_v1  ;;  %558 = vperm.xlu0 %4298, %v302_v8   ;;  %5901 = vst [vmem:[#allocation11_spill] sm:$0xff] %v4566_v51 }
  0x2d   : > { %334 = vperm.xlu1 %4292, %v302_v8   ;;  %4293 = vset.pattern.permute.xlu2 %v5809_v0  ;;  %5902 = vst [vmem:[#allocation12_spill] sm:$0xff] %v4568_v52 }
  0x2e   : > { %554 = vperm.xlu2 %4293, %v301_v6   ;;  %5903 = vst [vmem:[#allocation13_spill] sm:$0xff] %v4572_v57  ;;  %2080 = vmatpush.bf16.msra.mxu1 %v3623_v46  ;;  %v4204_v46 = vld [vmem:[#allocation2 + $0x32c] sm:$0xf0] }
  0x34   : > { %570 = vperm.xlu0 %4298, %v305_v9  }
  0x35   : > { %4294 = vset.pattern.permute.xlu1 %v5805_v2 }
  0x36   : > { %757 = vperm.xlu1 %4294, %v301_v6   ;;  %4295 = vset.pattern.permute.xlu2 %v5805_v2 }
  0x37   : > { %761 = vperm.xlu2 %4295, %v302_v8  }
  0x3c   : > { %4307 = vset.pattern.permute.xlu0 %v5803_v7 }
  0x3d   : > { %952 = vperm.xlu0 %4307, %v299_v3   ;;  %v4216_v3 = vld [vmem:[#allocation2 + $0x38c] sm:$0xf0] }
  0x3e   : > { %4296 = vset.pattern.permute.xlu1 %v5803_v7 }
  0x3f   : > { %960 = vperm.xlu1 %4296, %v301_v6   ;;  %4297 = vset.pattern.permute.xlu2 %v5803_v7  ;;  %v3510_v6 = vld [vmem:[#allocation2 + $0x60] sm:$0xf] }
  0x40   : > { %964 = vperm.xlu2 %4297, %v302_v8   ;;  %v4116_v8 = vld [vmem:[#allocation2 + $0x6c] sm:$0xf0] }
  0x45   : > { %980 = vperm.xlu0 %4307, %v306_v10  }
  0x47   : > { %4299 = vset.pattern.permute.xlu1 %v5807_v1 }
  0x48   : > { %344 = vperm.xlu1 %4299, %v304_v11   ;;  %4300 = vset.pattern.permute.xlu2 %v5809_v0 }
  0x49   : > { %562 = vperm.xlu2 %4300, %v303_v5  }
  0x4d   : > { %4312 = vset.pattern.permute.xlu0 %v5805_v2 }
  0x4e   : > { %769 = vperm.xlu0 %4312, %v304_v11  }
  0x50   : > { %4301 = vset.pattern.permute.xlu1 %v5809_v0 }
  0x51   : > { %566 = vperm.xlu1 %4301, %v304_v11   ;;  %4302 = vset.pattern.permute.xlu2 %v5805_v2 }
  0x52   : > { %765 = vperm.xlu2 %4302, %v303_v5  }
  0x56   : > { %781 = vperm.xlu0 %4312, %v4486_v12  }
  0x59   : > { %4303 = vset.pattern.permute.xlu1 %v5803_v7 }
  0x5a   : > { %968 = vperm.xlu1 %4303, %v303_v5   ;;  %4304 = vset.pattern.permute.xlu2 %v5803_v7  ;;  %v3783_v5 = vor.u32 %v4184_v60, %v3782_v59  ;;  %v4576_v59 = vperm.slane %v315_v45, 1  ;;  %v4583_v60 = vperm.slane %v315_v45, 2 }
  0x5b   : > { %972 = vperm.xlu2 %4304, %v304_v11   ;;  %v3511_v11 = vor.u32 %v4116_v8, %v3510_v6 }
  0x5c   : > { %2127 = vmatpush.bf16.msra.mxu2 %v3783_v5  ;;  %5904 = vst [vmem:[#allocation14_spill] sm:$0xff] %v4583_v60 }
  0x5d   : > { %2030 = vmatpush.bf16.msra.mxu0 %v3511_v11 }
  0x5e   : > { %4321 = vset.pattern.permute.xlu0 %v5807_v1 }
  0x5f   : > { %374 = vperm.xlu0 %4321, %v4510_v44  }
  0x60   : > { %2128 = vmatpush.bf16.msra.mxu2 %v3767_v33  ;;  %v4140_v33 = vld [vmem:[#allocation2 + $0x12c] sm:$0xf0] }
  0x61   : > { %2031 = vmatpush.bf16.msra.mxu0 %v3495_v37 }
  0x62   : > { %4305 = vset.pattern.permute.xlu1 %v5807_v1 }
  0x63   : > { %349 = vperm.xlu1 %4305, %v305_v9   ;;  %4306 = vset.pattern.permute.xlu2 %v5807_v1 }
  0x64   : > { %354 = vperm.xlu2 %4306, %v306_v10   ;;  %2129 = vmatpush.bf16.msra.mxu2 %v3751_v54 }
  0x67   : > { %4326 = vset.pattern.permute.xlu0 %v5803_v7 }
  0x68   : > { %992 = vperm.xlu0 %4326, %v4527_v18  }
  0x6b   : > { %4308 = vset.pattern.permute.xlu1 %v5809_v0 }
  0x6c   : > { %574 = vperm.xlu1 %4308, %v306_v10   ;;  %4309 = vset.pattern.permute.xlu2 %v5805_v2 }
  0x6d   : > { %773 = vperm.xlu2 %4309, %v305_v9  }
  0x6e   : > { %v4494_v13 = vpop.permute.xlu2 %749 }
  0x6f   : > { %v4595_v6 = vmul.f32 %v4542_v34, %v4494_v13  ;;  %v4599_v8 = vmul.f32 %v4544_v35, %v4494_v13  ;;  %v4608_v16 = vmul.f32 %v4547_v41, %v4494_v13  ;;  %v4612_v17 = vmul.f32 %v4549_v42, %v4494_v13 }
  0x70   : > { %4331 = vset.pattern.permute.xlu0 %v5809_v0 }
  0x71   : > { %5906 = vst [vmem:[#allocation16_spill] sm:$0xff] %v4608_v16 }
  0x72   : > { %5907 = vst [vmem:[#allocation17_spill] sm:$0xff] %v4612_v17 }
  0x74   : > { %4310 = vset.pattern.permute.xlu1 %v5805_v2 }
  0x75   : > { %777 = vperm.xlu1 %4310, %v306_v10   ;;  %4311 = vset.pattern.permute.xlu2 %v5803_v7 }
  0x76   : > { %976 = vperm.xlu2 %4311, %v305_v9   ;;  %v4498_v14 = vpop.permute.xlu2 %753  ;;  %v3911_v9 = vor.u32 %v4216_v3, %v3910_v63  ;;  %v4585_v63 = vperm.slane %v315_v45, 3  ;;  %v3862_v45 = vld [vmem:[#allocation2 + $0x320] sm:$0xf] }
  0x77   : > { %v4621_v25 = vmul.f32 %v4542_v34, %v4498_v14  ;;  %v4625_v27 = vmul.f32 %v4544_v35, %v4498_v14  ;;  %v4639_v29 = vmul.f32 %v4549_v42, %v4498_v14 }
  0x78   : > { %2176 = vmatpush.bf16.msra.mxu3 %v3911_v9  ;;  %5905 = vst [vmem:[#allocation15_spill] sm:$0xff] %v4585_v63 }
  0x7c   : > { %2177 = vmatpush.bf16.msra.mxu3 %v3895_v36  ;;  %v3734_v36 = vld [vmem:[#allocation2 + $0x220] sm:$0xf] }
  0x7d   : > { %4313 = vset.pattern.permute.xlu1 %v5807_v1 }
  0x7e   : > { %359 = vperm.xlu1 %4313, %v4486_v12   ;;  %4314 = vset.pattern.permute.xlu2 %v5807_v1 }
  0x7f   : > { %364 = vperm.xlu2 %4314, %v4501_v26   ;;  %v4507_v40 = vpop.permute.xlu2 %329 }
  0x80   : > { %v414_v3 = vmul.f32 %v4563_v50, %v4507_v40  ;;  %v415_v4 = vmul.f32 %v4566_v51, %v4507_v40  ;;  %v416_v9 = vmul.f32 %v4568_v52, %v4507_v40  ;;  %v417_v19 = vmul.f32 %v4572_v57, %v4507_v40  ;;  %2178 = vmatpush.bf16.msra.mxu3 %v3879_v15 }
  0x81   : > { %v4635_v40 = vmul.f32 %v4547_v41, %v4498_v14  ;;  %v3479_v14 = vor.u32 %v4108_v22, %v3478_v21  ;;  %v3462_v21 = vld [vmem:[#allocation2] sm:$0xf]  ;;  %v4104_v22 = vld [vmem:[#allocation2 + $0xc] sm:$0xf0] }
  0x82   : > { %v4642_v30 = vadd.f32 %v4574_v58, %v414_v3  ;;  %v4645_v31 = vadd.f32 %v4576_v59, %v415_v4  ;;  %v4651_v38 = vadd.f32 %v4583_v60, %v416_v9  ;;  %v4661_v56 = vadd.f32 %v4585_v63, %v417_v19 }
  0x83   : > { %2032 = vmatpush.bf16.msra.mxu0 %v3479_v14 }
  0x85   : > { %v4513_v61 = vpop.permute.xlu1 %546  ;;  %v4515_v62 = vpop.permute.xlu0 %319 }
  0x86   : > { %4315 = vset.pattern.permute.xlu1 %v5809_v0  ;;  %v406_v13 = vmul.f32 %v4563_v50, %v4515_v62  ;;  %v407_v37 = vmul.f32 %v4566_v51, %v4515_v62  ;;  %v618_v54 = vmul.f32 %v4551_v43, %v4513_v61  ;;  %v409_v55 = vmul.f32 %v4572_v57, %v4515_v62 }
  0x87   : > { %578 = vperm.xlu1 %4315, %v4486_v12   ;;  %4316 = vset.pattern.permute.xlu2 %v5809_v0  ;;  %v619_v3 = vmul.f32 %v4557_v47, %v4513_v61  ;;  %v620_v4 = vmul.f32 %v4559_v48, %v4513_v61  ;;  %v4676_v0 = vld [vmem:[%s4458_s14 + $0x68] sm:$0xff]  ;;  %v621_v17 = vmul.f32 %v4561_v49, %v4513_v61 }
  0x88   : > { %582 = vperm.xlu2 %4316, %v4501_v26   ;;  %v4521_v10 = vpop.permute.xlu2 %554  ;;  %v479_v9 = vadd.f32 %v4574_v58, %v406_v13  ;;  %5909 = vst [vmem:[#allocation19_spill] sm:$0xff] %v4676_v0  ;;  %v480_v13 = vadd.f32 %v4576_v59, %v407_v37  ;;  %598 = vperm.xlu0 %4331, %v4676_v0  }
  0x89   : > { %v626_v61 = vmul.f32 %v4551_v43, %v4521_v10  ;;  %v3463_v37 = vor.u32 %v4104_v22, %v3462_v21  ;;  %v628_v0 = vmul.f32 %v4559_v48, %v4521_v10 }
  0x8a   : > { %v683_v22 = vadd.f32 %v619_v3, %v480_v13 }
  0x8b   : > { %2033 = vmatpush.bf16.msra.mxu0 %v3463_v37 }
  0x8d   : > { %v4532_v23 = vpop.permute.xlu1 %550  ;;  %v4534_v24 = vpop.permute.xlu0 %324 }
  0x8e   : > { %v410_v15 = vmul.f32 %v4563_v50, %v4534_v24  ;;  %v412_v14 = vmul.f32 %v4568_v52, %v4534_v24  ;;  %v413_v16 = vmul.f32 %v4572_v57, %v4534_v24 }
  0x8f   : > { %4317 = vset.pattern.permute.xlu1 %v5805_v2  ;;  %v3735_v2 = vor.u32 %v4172_v39, %v3734_v36  ;;  %v3718_v39 = vld [vmem:[#allocation2 + $0x200] sm:$0xf] }
  0x90   : > { %785 = vperm.xlu1 %4317, %v4501_v26   ;;  %4318 = vset.pattern.permute.xlu2 %v5803_v7  ;;  %v483_v57 = vadd.f32 %v4574_v58, %v410_v15  ;;  %v623_v15 = vmul.f32 %v4557_v47, %v4532_v23 }
  0x91   : > { %984 = vperm.xlu2 %4318, %v4486_v12   ;;  %v4570_v53 = vpop.permute.xlu2 %761  ;;  %v4581_v12 = vld [vmem:[%s5796_s1 + $0x3] ss:$4 sm:$0xf]  ;;  %2130 = vmatpush.bf16.msra.mxu2 %v3735_v2 }
  0x92   : > { %v4617_v20 = vperm.slane %v4581_v12, 0  ;;  %v4630_v28 = vperm.slane %v4581_v12, 1  ;;  %v4703_v21 = vperm.slane %v4581_v12, 2 }
  0x95   : > { %v4591_v5 = vpop.permute.xlu0 %339 }
  0x96   : > { %v4603_v11 = vpop.permute.xlu1 %956 }
  0x98   : > { %4319 = vset.pattern.permute.xlu1 %v5803_v7  ;;  %v3607_v7 = vor.u32 %v4140_v33, %v3606_v32  ;;  %v482_v33 = vadd.f32 %v4585_v63, %v409_v55  ;;  %v3846_v55 = vld [vmem:[#allocation2 + $0x300] sm:$0xf] }
  0x99   : > { %988 = vperm.xlu1 %4319, %v4501_v26   ;;  %4320 = vset.pattern.permute.xlu2 %v5807_v1  ;;  %v408_v26 = vmul.f32 %v4568_v52, %v4515_v62  ;;  %v411_v62 = vmul.f32 %v4566_v51, %v4534_v24  ;;  %v3863_v1 = vor.u32 %v4204_v46, %v3862_v45  ;;  %v3590_v51 = vld [vmem:[#allocation2 + $0x100] sm:$0xf]  ;;  %v4168_v45 = vld [vmem:[#allocation2 + $0x20c] sm:$0xf0] }
  0x9a   : > { %369 = vperm.xlu2 %4320, %v4527_v18   ;;  %v4673_v19 = vpop.permute.xlu2 %964  ;;  %2081 = vmatpush.bf16.msra.mxu1 %v3607_v7  ;;  %v682_v24 = vadd.f32 %v618_v54, %v479_v9  ;;  %v627_v46 = vmul.f32 %v4557_v47, %v4521_v10  ;;  %v5912_v54 = vmov 1   ;;  %v485_v52 = vadd.f32 %v4583_v60, %v412_v14 }
  0x9b   : > { %5908 = vst [vmem:[#allocation18_spill] sm:$0xff] %v4673_v19  ;;  %v4136_v19 = vld [vmem:[#allocation2 + $0x10c] sm:$0xf0]  ;;  %v481_v32 = vadd.f32 %v4583_v60, %v408_v26  ;;  %v629_v26 = vmul.f32 %v4561_v49, %v4521_v10  ;;  %v484_v7 = vadd.f32 %v4576_v59, %v411_v62  ;;  %2179 = vmatpush.bf16.msra.mxu3 %v3863_v1  ;;  %v4714_v62 = vperm.slane %v4581_v12, 3 }
  0x9c   : > { %v3591_v9 = vor.u32 %v4136_v19, %v3590_v51  ;;  %v3719_v2 = vor.u32 %v4168_v45, %v3718_v39  ;;  %v622_v10 = vmul.f32 %v4551_v43, %v4532_v23  ;;  %v685_v3 = vadd.f32 %v621_v17, %v482_v33 }
  0x9d   : > { %v684_v51 = vadd.f32 %v620_v4, %v481_v32  ;;  %v625_v19 = vmul.f32 %v4561_v49, %v4532_v23  ;;  %v687_v14 = vadd.f32 %v623_v15, %v484_v7  ;;  %v4723_v39 = vadd.f32 %v626_v61, %v4642_v30 }
  0x9e   : > { %v4685_v50 = vpop.permute.xlu0 %558  ;;  %v686_v13 = vadd.f32 %v622_v10, %v483_v57  ;;  %v4726_v12 = vadd.f32 %v627_v46, %v4645_v31  ;;  %2082 = vmatpush.bf16.msra.mxu1 %v3591_v9  ;;  %v4731_v4 = vadd.f32 %v628_v0, %v4651_v38  ;;  %2131 = vmatpush.bf16.msra.mxu2 %v3719_v2 }
  0x9f   : > { %5910 = vst [vmem:[#allocation20_spill] sm:$0xff] %v4685_v50  ;;  %v4692_v36 = vpop.permute.xlu1 %334  ;;  %v4200_v50 = vld [vmem:[#allocation2 + $0x30c] sm:$0xf0]  ;;  %v4740_v57 = vmul.f32 %v4542_v34, %v4570_v53  ;;  %v4744_v30 = vmul.f32 %v4544_v35, %v4570_v53  ;;  %v4752_v0 = vmul.f32 %v4549_v42, %v4570_v53  ;;  %v1028_v31 = vmul.f32 %v4617_v20, %v4603_v11 }
  0xa0   : > { %5911 = vst [vmem:[#allocation21_spill] sm:$0xff] %v4692_v36  ;;  %v486_v36 = vadd.f32 %v4585_v63, %v413_v16  ;;  %v3847_v1 = vor.u32 %v4200_v50, %v3846_v55  ;;  %v624_v16 = vmul.f32 %v4559_v48, %v4532_v23  ;;  %v4734_v23 = vadd.f32 %v629_v26, %v4661_v56 }
  0xa1   : > { %4322 = vset.pattern.permute.xlu1 %v5912_v54  ;;  %v1029_v38 = vmul.f32 %v4630_v28, %v4603_v11  ;;  %v885_v33 = vadd.f32 %v4595_v6, %v682_v24  ;;  %v886_v61 = vadd.f32 %v4599_v8, %v683_v22  ;;  %v889_v45 = vadd.f32 %v4621_v25, %v686_v13  ;;  %v5915_v6 = vld [vmem:[#allocation10_spill] sm:$0xff]  ;;  %v5916_v8 = vld [vmem:[#allocation11_spill] sm:$0xff] }
  0xa2   : > { %586 = vperm.xlu1 %4322, %v4527_v18   ;;  %4323 = vset.pattern.permute.xlu2 %v5912_v54  ;;  %v688_v50 = vadd.f32 %v624_v16, %v485_v52  ;;  %v689_v17 = vadd.f32 %v625_v19, %v486_v36  ;;  %v4748_v52 = vmul.f32 %v4547_v41, %v4570_v53  ;;  %v5914_v36 = vmov 0  }
  0xa3   : > { %590 = vperm.xlu2 %4323, %v4510_v44   ;;  %v4728_v37 = vpop.permute.xlu2 %562  ;;  %2180 = vmatpush.bf16.msra.mxu3 %v3847_v1  ;;  %v890_v53 = vadd.f32 %v4625_v27, %v687_v14  ;;  %v1030_v46 = vmul.f32 %v4703_v21, %v4603_v11  ;;  %v1031_v26 = vmul.f32 %v4714_v62, %v4603_v11  ;;  %v5917_v25 = vmov 2  }
  0xa4   : > { %4336 = vset.pattern.permute.xlu0 %v5914_v36  ;;  %v891_v55 = vadd.f32 %v4635_v40, %v688_v50  ;;  %v892_v7 = vadd.f32 %v4639_v29, %v689_v17  ;;  %v4773_v24 = vmul.f32 %v5915_v6, %v4591_v5  ;;  %v4777_v9 = vmul.f32 %v5916_v8, %v4591_v5  ;;  %v5919_v40 = vld [vmem:[#allocation12_spill] sm:$0xff]  ;;  %v5920_v29 = vld [vmem:[#allocation13_spill] sm:$0xff] }
  0xa5   : > { %v1092_v15 = vadd.f32 %v1028_v31, %v889_v45  ;;  %v1093_v1 = vadd.f32 %v1029_v38, %v890_v53  ;;  %v4791_v16 = vmul.f32 %v5919_v40, %v4591_v5  ;;  %v4795_v19 = vmul.f32 %v5920_v29, %v4591_v5  ;;  %v5923_v50 = vld [vmem:[#allocation16_spill] sm:$0xff] }
  0xa6   : > { %v4736_v32 = vpop.permute.xlu0 %570  ;;  %v1094_v13 = vadd.f32 %v1030_v46, %v891_v55  ;;  %v1095_v14 = vadd.f32 %v1031_v26, %v892_v7  ;;  %v887_v17 = vadd.f32 %v5923_v50, %v684_v51 }
  0xa7   : > { %5913 = vst [vmem:[#allocation22_spill] sm:$0xff] %v4736_v32  ;;  %v5918_v27 = vld [vmem:[#allocation21_spill] sm:$0xff] }
  0xa8   : > { %v4758_v56 = vpop.permute.xlu1 %757  ;;  %v418_v22 = vmul.f32 %v5915_v6, %v5918_v27  ;;  %v419_v11 = vmul.f32 %v5916_v8, %v5918_v27  ;;  %v420_v2 = vmul.f32 %v5919_v40, %v5918_v27  ;;  %v421_v10 = vmul.f32 %v5920_v29, %v5918_v27  ;;  %5921 = vst [vmem:[#allocation21_spill] sm:$0xff] %v4791_v16  ;;  %v5924_v32 = vld [vmem:[#allocation17_spill] sm:$0xff] }
  0xa9   : > { %5922 = vst [vmem:[#allocation23_spill] sm:$0xff] %v4795_v19  ;;  %v888_v27 = vadd.f32 %v5924_v32, %v685_v3  ;;  %v1158_v29 = vmax.f32 %v1094_v13, 0.0  ;;  %v4821_v19 = vld [vmem:[%s4458_s14 + $0x60] sm:$0xff] }
  0xaa   : > { %4324 = vset.pattern.permute.xlu1 %v5917_v25  ;;  %v491_v53 = vadd.f32 %v4574_v58, %v418_v22  ;;  %v492_v51 = vadd.f32 %v4576_v59, %v419_v11  ;;  %v493_v3 = vadd.f32 %v4583_v60, %v420_v2  ;;  %v494_v32 = vadd.f32 %v4585_v63, %v421_v10 }
  0xab   : > { %789 = vperm.xlu1 %4324, %v4527_v18   ;;  %4325 = vset.pattern.permute.xlu2 %v5917_v25  ;;  %v5925_v18 = vld [vmem:[#allocation20_spill] sm:$0xff]  ;;  %v1156_v25 = vmax.f32 %v1092_v15, 0.0  ;;  %v1157_v22 = vmax.f32 %v1093_v1, 0.0  ;;  %v1159_v11 = vmax.f32 %v1095_v14, 0.0  ;;  %v5927_v63 = vmov 3   ;;  %v5928_v1 = vld [vmem:[#allocation18_spill] sm:$0xff] }
  0xac   : > { %793 = vperm.xlu2 %4325, %v4510_v44   ;;  %v630_v31 = vmul.f32 %v4551_v43, %v5925_v18  ;;  %v631_v38 = vmul.f32 %v4557_v47, %v5925_v18  ;;  %v632_v5 = vmul.f32 %v4559_v48, %v5925_v18  ;;  %v633_v45 = vmul.f32 %v4561_v49, %v5925_v18  ;;  %v4813_v26 = vpop.permute.xlu2 %765 }
  0xad   : > { %5926 = vst [vmem:[#allocation16_spill] sm:$0xff] %v4813_v26  ;;  %v1038_v13 = vmul.f32 %v4703_v21, %v5928_v1  ;;  %v1039_v14 = vmul.f32 %v4714_v62, %v5928_v1 }
  0xae   : > { %v694_v54 = vadd.f32 %v630_v31, %v491_v53  ;;  %v695_v26 = vadd.f32 %v631_v38, %v492_v51  ;;  %v696_v49 = vadd.f32 %v632_v5, %v493_v3  ;;  %v697_v48 = vadd.f32 %v633_v45, %v494_v32  ;;  %v4871_v45 = vld [vmem:[%s4458_s14 + $0x70] sm:$0xff] }
  0xaf   : > { %v953_v46 = vpop.permute.xlu0 %952  ;;  %v829_v38 = vmul.f32 %v4542_v34, %v4758_v56  ;;  %v830_v5 = vmul.f32 %v4544_v35, %v4758_v56  ;;  %389 = vperm.xlu0 %4336, %v4871_v45  }
  0xb0   : > { %v1024_v55 = vmul.f32 %v4617_v20, %v953_v46  ;;  %v1025_v7 = vmul.f32 %v4630_v28, %v953_v46  ;;  %v1026_v50 = vmul.f32 %v4703_v21, %v953_v46  ;;  %v1027_v18 = vmul.f32 %v4714_v62, %v953_v46 }
  0xb1   : > { %v961_v40 = vpop.permute.xlu1 %960  ;;  %v898_v31 = vadd.f32 %v4744_v30, %v695_v26  ;;  %v893_v53 = vadd.f32 %v829_v38, %v4723_v39  ;;  %v894_v51 = vadd.f32 %v830_v5, %v4726_v12 }
  0xb2   : > { %v1088_v2 = vadd.f32 %v1024_v55, %v885_v33  ;;  %v1089_v8 = vadd.f32 %v1025_v7, %v886_v61  ;;  %v1090_v10 = vadd.f32 %v1026_v50, %v887_v17  ;;  %v1091_v6 = vadd.f32 %v1027_v18, %v888_v27 }
  0xb3   : > { %4327 = vset.pattern.permute.xlu1 %v5927_v63  ;;  %v1036_v33 = vmul.f32 %v4617_v20, %v5928_v1  ;;  %v1037_v61 = vmul.f32 %v4630_v28, %v5928_v1  ;;  %v897_v27 = vadd.f32 %v4740_v57, %v694_v54  ;;  %v832_v54 = vmul.f32 %v4549_v42, %v4758_v56  ;;  %v5938_v1 = vld [vmem:[#allocation8_spill] sm:$0xff] }
  0xb4   : > { %v1152_v60 = vmax.f32 %v1088_v2, 0.0  ;;  %v1153_v16 = vmax.f32 %v1089_v8, 0.0  ;;  %v1154_v46 = vmax.f32 %v1090_v10, 0.0  ;;  %v1155_v15 = vmax.f32 %v1091_v6, 0.0  ;;  %996 = vperm.xlu1 %4327, %v4510_v44   ;;  %4328 = vset.pattern.permute.xlu2 %v5914_v36  ;;  %v5936_v10 = vld [vmem:[#allocation23_spill] sm:$0xff] }
  0xb5   : > { %379 = vperm.xlu2 %4328, %v4821_v19   ;;  %v1032_v57 = vmul.f32 %v4617_v20, %v961_v40  ;;  %v1033_v30 = vmul.f32 %v4630_v28, %v961_v40  ;;  %v1034_v3 = vmul.f32 %v4703_v21, %v961_v40  ;;  %v1101_v26 = vadd.f32 %v1037_v61, %v898_v31  ;;  %v5939_v61 = vld [vmem:[#allocation9_spill] sm:$0xff] }
  0xb6   : > { %v4833_v17 = vpack.c.bf16 %v1156_v25, %v1152_v60  ;;  %v4835_v8 = vpack.c.bf16 %v1157_v22, %v1153_v16  ;;  %v4837_v6 = vpack.c.bf16 %v1158_v29, %v1154_v46  ;;  %v4839_v44 = vpack.c.bf16 %v1159_v11, %v1155_v15  ;;  %v5933_v22 = vld [vmem:[#allocation19_spill] sm:$0xff]  ;;  %v5934_v11 = vld [vmem:[#allocation21_spill] sm:$0xff] }
  0xb7   : > { %v899_v60 = vadd.f32 %v4748_v52, %v696_v49  ;;  %v900_v25 = vadd.f32 %v4752_v0, %v697_v48  ;;  %v831_v29 = vmul.f32 %v4547_v41, %v4758_v56  ;;  %v4860_v49 = vpop.permute.xlu2 %972  ;;  %v495_v48 = vadd.f32 %v4574_v58, %v4773_v24  ;;  %v4877_v32 = vpop.permute.xlu0 %980  ;;  %v5937_v46 = vld [vmem:[#allocation15_spill] sm:$0xff] }
  0xb8   : > { %5929 = vst [vmem:[#allocation17_spill] sm:$0xff] %v4833_v17  ;;  %2034 = vmatmul.bf16.vlgmr.msra.gmra.mxu0 %v4833_v17  ;;  %2083 = vmatmul.bf16.vlgmr.msra.gmra.mxu1 %v4835_v8  ;;  %v496_v52 = vadd.f32 %v4576_v59, %v4777_v9  ;;  %v634_v0 = vmul.f32 %v4551_v43, %v4728_v37  ;;  %v1165_v31 = vmax.f32 %v1101_v26, 0.0 }
  0xb9   : > { %5930 = vst [vmem:[#allocation20_spill] sm:$0xff] %v4835_v8  ;;  %2132 = vmatmul.bf16.vlgmr.msra.gmra.mxu2 %v4837_v6  ;;  %2181 = vmatmul.bf16.vlgmr.msra.gmra.mxu3 %v4839_v44  ;;  %v635_v56 = vmul.f32 %v4557_v47, %v4728_v37  ;;  %v1035_v24 = vmul.f32 %v4714_v62, %v961_v40  ;;  %v5935_v40 = vld [vmem:[#allocation14_spill] sm:$0xff] }
  0xba   : > { %5931 = vst [vmem:[#allocation18_spill] sm:$0xff] %v4837_v6  ;;  %v345_v16 = vpop.permute.xlu1 %344  ;;  %v1100_v9 = vadd.f32 %v1036_v33, %v897_v27  ;;  %v1102_v55 = vadd.f32 %v1038_v13, %v899_v60  ;;  %v1103_v7 = vadd.f32 %v1039_v14, %v900_v25  ;;  %v895_v50 = vadd.f32 %v831_v29, %v4731_v4 }
  0xbb   : > { %5932 = vst [vmem:[#allocation24_spill] sm:$0xff] %v4839_v44  ;;  %v896_v39 = vadd.f32 %v832_v54, %v4734_v23  ;;  %v1096_v18 = vadd.f32 %v1032_v57, %v893_v53  ;;  %v1097_v12 = vadd.f32 %v1033_v30, %v894_v51  ;;  %v497_v2 = vadd.f32 %v5935_v40, %v5934_v11  ;;  %v5941_v53 = vld [vmem:[#allocation10_spill] sm:$0xff] }
  0xbc   : > { %4329 = vset.pattern.permute.xlu1 %v5914_v36  ;;  %v498_v15 = vadd.f32 %v5937_v46, %v5936_v10  ;;  %v636_v33 = vmul.f32 %v5938_v1, %v4728_v37  ;;  %v637_v13 = vmul.f32 %v5939_v61, %v4728_v37  ;;  %v5940_v14 = vmov 1   ;;  %v5942_v37 = vld [vmem:[#allocation11_spill] sm:$0xff] }
  0xbd   : > { %384 = vperm.xlu1 %4329, %v5933_v22   ;;  %4330 = vset.pattern.permute.xlu2 %v5940_v14  ;;  %v1098_v4 = vadd.f32 %v1034_v3, %v895_v50  ;;  %v1099_v23 = vadd.f32 %v1035_v24, %v896_v39  ;;  %v1164_v27 = vmax.f32 %v1100_v9, 0.0  ;;  %v1166_v38 = vmax.f32 %v1102_v55, 0.0  ;;  %v5943_v24 = vld [vmem:[#allocation12_spill] sm:$0xff]  ;;  %v5944_v39 = vld [vmem:[#allocation13_spill] sm:$0xff] }
  0xbe   : > { %594 = vperm.xlu2 %4330, %v4821_v19   ;;  %v1167_v5 = vmax.f32 %v1103_v7, 0.0  ;;  %v1160_v60 = vmax.f32 %v1096_v18, 0.0  ;;  %v1161_v25 = vmax.f32 %v1097_v12, 0.0  ;;  %v698_v29 = vadd.f32 %v634_v0, %v495_v48  ;;  %v4901_v7 = vld [vmem:[%s4458_s14 + $0x78] sm:$0xff] }
  0xbf   : > { %v699_v54 = vadd.f32 %v635_v56, %v496_v52  ;;  %v700_v57 = vadd.f32 %v636_v33, %v497_v2  ;;  %v701_v30 = vadd.f32 %v637_v13, %v498_v15  ;;  %v426_v51 = vmul.f32 %v5941_v53, %v345_v16  ;;  %v4898_v55 = vpop.permute.xlu2 %354  ;;  %v5946_v48 = vld [vmem:[#allocation16_spill] sm:$0xff] }
  0xc0   : > { %v427_v11 = vmul.f32 %v5942_v37, %v345_v16  ;;  %v1162_v10 = vmax.f32 %v1098_v4, 0.0  ;;  %v1163_v3 = vmax.f32 %v1099_v23, 0.0  ;;  %v428_v50 = vmul.f32 %v5943_v24, %v345_v16  ;;  %v770_v15 = vpop.permute.xlu0 %769 }
  0xc1   : > { %v429_v9 = vmul.f32 %v5944_v39, %v345_v16  ;;  %v5945_v18 = vmov 2   ;;  %v837_v52 = vmul.f32 %v4542_v34, %v5946_v48  ;;  %v838_v0 = vmul.f32 %v4544_v35, %v5946_v48 }
  0xc2   : > { %4341 = vset.pattern.permute.xlu0 %v5945_v18  ;;  %v839_v16 = vmul.f32 %v4547_v41, %v5946_v48  ;;  %v840_v2 = vmul.f32 %v4549_v42, %v5946_v48  ;;  %v4916_v33 = vpack.c.bf16 %v1164_v27, %v1160_v60  ;;  %v4918_v13 = vpack.c.bf16 %v1165_v31, %v1161_v25 }
  0xc3   : > { %v567_v26 = vpop.permute.xlu1 %566  ;;  %809 = vperm.xlu0 %4341, %v4901_v7   ;;  %v499_v4 = vadd.f32 %v4574_v58, %v426_v51  ;;  %v500_v23 = vadd.f32 %v4576_v59, %v427_v11  ;;  %v501_v8 = vadd.f32 %v5935_v40, %v428_v50  ;;  %v502_v48 = vadd.f32 %v5937_v46, %v429_v9 }
  0xc4   : > { %v638_v56 = vmul.f32 %v4551_v43, %v567_v26  ;;  %v639_v12 = vmul.f32 %v4557_v47, %v567_v26  ;;  %5947 = vst [vmem:[#allocation19_spill] sm:$0xff] %v4916_v33  ;;  %v640_v44 = vmul.f32 %v5938_v1, %v567_v26  ;;  %v641_v6 = vmul.f32 %v5939_v61, %v567_v26 }
  0xc5   : > { %4332 = vset.pattern.permute.xlu1 %v5945_v18  ;;  %5948 = vst [vmem:[#allocation21_spill] sm:$0xff] %v4918_v13  ;;  %v4927_v17 = vpack.c.bf16 %v1166_v38, %v1162_v10  ;;  %v4929_v27 = vpack.c.bf16 %v1167_v5, %v1163_v3  ;;  %v841_v25 = vmul.f32 %v4542_v34, %v770_v15 }
  0xc6   : > { %797 = vperm.xlu1 %4332, %v4821_v19   ;;  %4333 = vset.pattern.permute.xlu2 %v5945_v18  ;;  %v702_v31 = vadd.f32 %v638_v56, %v499_v4  ;;  %v703_v60 = vadd.f32 %v639_v12, %v500_v23  ;;  %v842_v51 = vmul.f32 %v4544_v35, %v770_v15 }
  0xc7   : > { %5949 = vst [vmem:[#allocation14_spill] sm:$0xff] %v4927_v17  ;;  %v704_v11 = vadd.f32 %v640_v44, %v501_v8  ;;  %v705_v50 = vadd.f32 %v641_v6, %v502_v48  ;;  %v843_v38 = vmul.f32 %v4547_v41, %v770_v15  ;;  %v844_v5 = vmul.f32 %v4549_v42, %v770_v15 }
  0xc8   : > { %5950 = vst [vmem:[#allocation23_spill] sm:$0xff] %v4929_v27  ;;  %2039 = vmatmul.bf16.gmra.mxu0 %v4916_v33  ;;  %2088 = vmatmul.bf16.gmra.mxu1 %v4918_v13  ;;  %v901_v10 = vadd.f32 %v837_v52, %v698_v29  ;;  %v902_v3 = vadd.f32 %v838_v0, %v699_v54 }
  0xc9   : > { %2137 = vmatmul.bf16.gmra.mxu2 %v4927_v17  ;;  %2186 = vmatmul.bf16.gmra.mxu3 %v4929_v27  ;;  %v903_v9 = vadd.f32 %v839_v16, %v700_v57  ;;  %v904_v26 = vadd.f32 %v840_v2, %v701_v30  ;;  %v1044_v56 = vmul.f32 %v4617_v20, %v4860_v49  ;;  %v4950_v30 = vpop.permute.xlu2 %773 }
  0xca   : > { %801 = vperm.xlu2 %4333, %v5933_v22   ;;  %v1045_v12 = vmul.f32 %v4630_v28, %v4860_v49  ;;  %v905_v8 = vadd.f32 %v841_v25, %v702_v31  ;;  %v906_v6 = vadd.f32 %v842_v51, %v703_v60  ;;  %v1046_v52 = vmul.f32 %v4703_v21, %v4860_v49 }
  0xcb   : > { %4344 = vset.pattern.permute.xlu0 %v5927_v63  ;;  %v1047_v0 = vmul.f32 %v4714_v62, %v4860_v49  ;;  %v907_v16 = vadd.f32 %v843_v38, %v704_v11  ;;  %v908_v2 = vadd.f32 %v844_v5, %v705_v50  ;;  %v4194_v11 = vld [vmem:[#allocation2 + $0x2e4] sm:$0xf]  ;;  %v3832_v50 = vld [vmem:[#allocation2 + $0x2f0] sm:$0xf0] }
  0xcc   : > { %v969_v44 = vpop.permute.xlu1 %968  ;;  %v1108_v60 = vadd.f32 %v1044_v56, %v905_v8  ;;  %v1109_v25 = vadd.f32 %v1045_v12, %v906_v6 }
  0xcd   : > { %v1040_v15 = vmul.f32 %v4617_v20, %v969_v44  ;;  %v1041_v29 = vmul.f32 %v4630_v28, %v969_v44  ;;  %v1042_v54 = vmul.f32 %v4703_v21, %v969_v44  ;;  %v1043_v57 = vmul.f32 %v4714_v62, %v969_v44 }
  0xce   : > { %4334 = vset.pattern.permute.xlu1 %v5927_v63  ;;  %v1110_v51 = vadd.f32 %v1046_v52, %v907_v16  ;;  %v1111_v44 = vadd.f32 %v1047_v0, %v908_v2  ;;  %v1172_v5 = vmax.f32 %v1108_v60, 0.0  ;;  %v4226_v0 = vld [vmem:[#allocation2 + $0x3e4] sm:$0xf] }
  0xcf   : > { %v1104_v4 = vadd.f32 %v1040_v15, %v901_v10  ;;  %v1105_v23 = vadd.f32 %v1041_v29, %v902_v3  ;;  %1000 = vperm.xlu1 %4334, %v4821_v19   ;;  %v1106_v48 = vadd.f32 %v1042_v54, %v903_v9  ;;  %v1107_v31 = vadd.f32 %v1043_v57, %v904_v26  ;;  %v3576_v15 = vld [vmem:[#allocation2 + $0xf0] sm:$0xf0]  ;;  %v5953_v29 = vld [vmem:[#allocation22_spill] sm:$0xff]  ;;  %v4162_v2 = vld [vmem:[#allocation2 + $0x1e4] sm:$0xf] }
  0xd0   : > { %v1173_v10 = vmax.f32 %v1109_v25, 0.0  ;;  %v3835_v19 = vor.u32 %v4194_v11, %v3832_v50  ;;  %v1174_v26 = vmax.f32 %v1110_v51, 0.0  ;;  %v1175_v56 = vmax.f32 %v1111_v44, 0.0 }
  0xd1   : > { %v1168_v27 = vmax.f32 %v1104_v4, 0.0  ;;  %v1169_v17 = vmax.f32 %v1105_v23, 0.0  ;;  %v1170_v13 = vmax.f32 %v1106_v48, 0.0  ;;  %v1171_v49 = vmax.f32 %v1107_v31, 0.0  ;;  %v4967_v6 = vpop.permute.xlu2 %976  ;;  %v3704_v4 = vld [vmem:[#allocation2 + $0x1f0] sm:$0xf0] }
  0xd2   : > { %4335 = vset.pattern.permute.xlu2 %v5927_v63  ;;  %2320 = vmatpush.bf16.msrb.mxu2 %v3835_v19  ;;  %v642_v54 = vmul.f32 %v4551_v43, %v5953_v29  ;;  %v644_v60 = vmul.f32 %v5938_v1, %v5953_v29  ;;  %v645_v25 = vmul.f32 %v5939_v61, %v5953_v29 }
  0xd3   : > { %1004 = vperm.xlu2 %4335, %v5933_v22   ;;  %v4963_v12 = vpack.c.bf16 %v1172_v5, %v1168_v27  ;;  %v4965_v8 = vpack.c.bf16 %v1173_v10, %v1169_v17  ;;  %v4130_v22 = vld [vmem:[#allocation2 + $0xe4] sm:$0xf]  ;;  %v4972_v57 = vpack.c.bf16 %v1174_v26, %v1170_v13  ;;  %v4974_v52 = vpack.c.bf16 %v1175_v56, %v1171_v49 }
  0xd4   : > { %v643_v13 = vmul.f32 %v4557_v47, %v5953_v29  ;;  %v3579_v48 = vor.u32 %v4130_v22, %v3576_v15  ;;  %v3707_v51 = vor.u32 %v4162_v2, %v3704_v4  ;;  %v845_v44 = vmul.f32 %v4542_v34, %v4950_v30 }
  0xd5   : > { %v350_v38 = vpop.permute.xlu1 %349  ;;  %5951 = vst [vmem:[#allocation15_spill] sm:$0xff] %v4963_v12  ;;  %v5002_v5 = vmul.f32 %v4630_v28, %v4877_v32  ;;  %v846_v10 = vmul.f32 %v4544_v35, %v4950_v30  ;;  %v435_v26 = vmul.f32 %v5942_v37, %v4898_v55  ;;  %v436_v56 = vmul.f32 %v5943_v24, %v4898_v55 }
  0xd6   : > { %v430_v3 = vmul.f32 %v5941_v53, %v350_v38  ;;  %v431_v9 = vmul.f32 %v5942_v37, %v350_v38  ;;  %5952 = vst [vmem:[#allocation8_spill] sm:$0xff] %v4965_v8  ;;  %v432_v27 = vmul.f32 %v5943_v24, %v350_v38  ;;  %v433_v17 = vmul.f32 %v5944_v39, %v350_v38 }
  0xd7   : > { %4337 = vset.pattern.permute.xlu1 %v5914_v36  ;;  %5954 = vst [vmem:[#allocation9_spill] sm:$0xff] %v4972_v57  ;;  %v3960_v36 = vld [vmem:[#allocation2 + $0x3f0] sm:$0xf0]  ;;  %v4998_v38 = vmul.f32 %v4617_v20, %v4877_v32  ;;  %2222 = vmatpush.bf16.msrb.mxu0 %v3579_v48  ;;  %v437_v22 = vmul.f32 %v5944_v39, %v4898_v55 }
  0xd8   : > { %394 = vperm.xlu1 %4337, %v4901_v7   ;;  %5955 = vst [vmem:[#allocation10_spill] sm:$0xff] %v4974_v52  ;;  %v503_v16 = vadd.f32 %v4574_v58, %v430_v3  ;;  %2044 = vmatmul.bf16.gmra.mxu0 %v4963_v12  ;;  %v504_v23 = vadd.f32 %v4576_v59, %v431_v9 }
  0xd9   : > { %2093 = vmatmul.bf16.gmra.mxu1 %v4965_v8  ;;  %2142 = vmatmul.bf16.gmra.mxu2 %v4972_v57  ;;  %v3963_v31 = vor.u32 %v4226_v0, %v3960_v36  ;;  %v505_v49 = vadd.f32 %v5935_v40, %v432_v27  ;;  %v506_v11 = vadd.f32 %v5937_v46, %v433_v17  ;;  %v5014_v15 = vpop.permute.xlu2 %364  ;;  %v3944_v57 = vld [vmem:[#allocation2 + $0x3d0] sm:$0xf0] }
  0xda   : > { %2191 = vmatmul.bf16.gmra.mxu3 %v4974_v52  ;;  %v706_v50 = vadd.f32 %v642_v54, %v503_v16  ;;  %v707_v19 = vadd.f32 %v643_v13, %v504_v23  ;;  %v434_v9 = vmul.f32 %v5941_v53, %v4898_v55  ;;  %v847_v29 = vmul.f32 %v4547_v41, %v4950_v30  ;;  %v4222_v52 = vld [vmem:[#allocation2 + $0x3c4] sm:$0xf] }
  0xdb   : > { %4338 = vset.pattern.permute.xlu2 %v5940_v14  ;;  %2369 = vmatpush.bf16.msrb.mxu3 %v3963_v31  ;;  %v848_v54 = vmul.f32 %v4549_v42, %v4950_v30  ;;  %v1048_v0 = vmul.f32 %v4617_v20, %v4967_v6  ;;  %v708_v36 = vadd.f32 %v644_v60, %v505_v49 }
  0xdc   : > { %602 = vperm.xlu2 %4338, %v4871_v45   ;;  %2271 = vmatpush.bf16.msrb.mxu1 %v3707_v51  ;;  %v709_v27 = vadd.f32 %v645_v25, %v506_v11  ;;  %v909_v17 = vadd.f32 %v845_v44, %v706_v50  ;;  %v1049_v55 = vmul.f32 %v4630_v28, %v4967_v6 }
  0xdd   : > { %v910_v16 = vadd.f32 %v846_v10, %v707_v19  ;;  %v1054_v13 = vmul.f32 %v4703_v21, %v4877_v32  ;;  %v507_v23 = vadd.f32 %v4574_v58, %v434_v9  ;;  %v508_v31 = vadd.f32 %v4576_v59, %v435_v26  ;;  %v3816_v10 = vld [vmem:[#allocation2 + $0x2d0] sm:$0xf0]  ;;  %v4126_v19 = vld [vmem:[#allocation2 + $0xc4] sm:$0xf] }
  0xde   : > { %v575_v3 = vpop.permute.xlu1 %574  ;;  %v509_v60 = vadd.f32 %v5935_v40, %v436_v56  ;;  %v510_v25 = vadd.f32 %v5937_v46, %v437_v22  ;;  %v1050_v51 = vmul.f32 %v4703_v21, %v4967_v6  ;;  %v911_v44 = vadd.f32 %v847_v29, %v708_v36  ;;  %v3560_v22 = vld [vmem:[#allocation2 + $0xd0] sm:$0xf0] }
  0xdf   : > { %v646_v2 = vmul.f32 %v4551_v43, %v575_v3  ;;  %v647_v4 = vmul.f32 %v4557_v47, %v575_v3  ;;  %v648_v30 = vmul.f32 %v5938_v1, %v575_v3  ;;  %v649_v48 = vmul.f32 %v5939_v61, %v575_v3 }
  0xe0   : > { %4339 = vset.pattern.permute.xlu1 %v5940_v14  ;;  %v1055_v14 = vmul.f32 %v4714_v62, %v4877_v32  ;;  %v912_v49 = vadd.f32 %v848_v54, %v709_v27  ;;  %v1051_v11 = vmul.f32 %v4714_v62, %v4967_v6  ;;  %v1112_v50 = vadd.f32 %v1048_v0, %v909_v17  ;;  %v4190_v32 = vld [vmem:[#allocation2 + $0x2c4] sm:$0xf]  ;;  %v3688_v17 = vld [vmem:[#allocation2 + $0x1d0] sm:$0xf0] }
  0xe1   : > { %606 = vperm.xlu1 %4339, %v4901_v7   ;;  %v1113_v3 = vadd.f32 %v1049_v55, %v910_v16  ;;  %v710_v9 = vadd.f32 %v646_v2, %v507_v23  ;;  %v711_v26 = vadd.f32 %v647_v4, %v508_v31  ;;  %v712_v56 = vadd.f32 %v648_v30, %v509_v60  ;;  %v4158_v0 = vld [vmem:[#allocation2 + $0x1c4] sm:$0xf] }
  0xe2   : > { %v713_v29 = vadd.f32 %v649_v48, %v510_v25  ;;  %v3819_v36 = vor.u32 %v4190_v32, %v3816_v10  ;;  %v3563_v27 = vor.u32 %v4126_v19, %v3560_v22  ;;  %v3947_v6 = vor.u32 %v4222_v52, %v3944_v57  ;;  %v5049_v30 = vpop.permute.xlu2 %582  ;;  %v4218_v22 = vld [vmem:[#allocation2 + $0x3a4] sm:$0xf] }
  0xe3   : > { %v1114_v2 = vadd.f32 %v1050_v51, %v911_v44  ;;  %v1115_v4 = vadd.f32 %v1051_v11, %v912_v49  ;;  %v3691_v23 = vor.u32 %v4158_v0, %v3688_v17  ;;  %v1176_v49 = vmax.f32 %v1112_v50, 0.0  ;;  %v4122_v50 = vld [vmem:[#allocation2 + $0xa4] sm:$0xf]  ;;  %v3672_v17 = vld [vmem:[#allocation2 + $0x1b0] sm:$0xf0] }
  0xe4   : > { %4340 = vset.pattern.permute.xlu2 %v5945_v18  ;;  %2321 = vmatpush.bf16.msrb.mxu2 %v3819_v36  ;;  %v1177_v11 = vmax.f32 %v1113_v3, 0.0  ;;  %v3544_v3 = vld [vmem:[#allocation2 + $0xb0] sm:$0xf0]  ;;  %v4154_v0 = vld [vmem:[#allocation2 + $0x1a4] sm:$0xf] }
  0xe5   : > { %805 = vperm.xlu2 %4340, %v4871_v45   ;;  %2223 = vmatpush.bf16.msrb.mxu0 %v3563_v27  ;;  %v1178_v32 = vmax.f32 %v1114_v2, 0.0  ;;  %v1179_v10 = vmax.f32 %v1115_v4, 0.0  ;;  %v3547_v27 = vor.u32 %v4122_v50, %v3544_v3  ;;  %v442_v2 = vmul.f32 %v5941_v53, %v5014_v15 }
  0xe6   : > { %2370 = vmatpush.bf16.msrb.mxu3 %v3947_v6  ;;  %2272 = vmatpush.bf16.msrb.mxu1 %v3691_v23 }
  0xe7   : > { %v778_v54 = vpop.permute.xlu1 %777 }
  0xe8   : > { %v849_v18 = vmul.f32 %v4542_v34, %v778_v54  ;;  %v850_v8 = vmul.f32 %v4544_v35, %v778_v54  ;;  %v851_v55 = vmul.f32 %v4547_v41, %v778_v54  ;;  %v852_v16 = vmul.f32 %v4549_v42, %v778_v54 }
  0xe9   : > { %4342 = vset.pattern.permute.xlu1 %v5927_v63  ;;  %2224 = vmatpush.bf16.msrb.mxu0 %v3547_v27  ;;  %v654_v27 = vmul.f32 %v4551_v43, %v5049_v30 }
  0xea   : > { %v913_v48 = vadd.f32 %v849_v18, %v710_v9  ;;  %v914_v57 = vadd.f32 %v850_v8, %v711_v26  ;;  %v915_v52 = vadd.f32 %v851_v55, %v712_v56  ;;  %v916_v31 = vadd.f32 %v852_v16, %v713_v29  ;;  %1008 = vperm.xlu1 %4342, %v4871_v45   ;;  %v3928_v29 = vld [vmem:[#allocation2 + $0x3b0] sm:$0xf0] }
  0xeb   : > { %v3931_v6 = vor.u32 %v4218_v22, %v3928_v29  ;;  %v3675_v16 = vor.u32 %v4154_v0, %v3672_v17  ;;  %v656_v0 = vmul.f32 %v5938_v1, %v5049_v30  ;;  %v657_v17 = vmul.f32 %v5939_v61, %v5049_v30 }
  0xec   : > { %v1116_v60 = vadd.f32 %v4998_v38, %v913_v48  ;;  %v1117_v25 = vadd.f32 %v5002_v5, %v914_v57  ;;  %v1118_v51 = vadd.f32 %v1054_v13, %v915_v52  ;;  %v1119_v44 = vadd.f32 %v1055_v14, %v916_v31  ;;  %v5064_v14 = vpop.permute.xlu2 %984 }
  0xed   : > { %4343 = vset.pattern.permute.xlu2 %v5927_v63  ;;  %v4186_v63 = vld [vmem:[#allocation2 + $0x2a4] sm:$0xf]  ;;  %2371 = vmatpush.bf16.msrb.mxu3 %v3931_v6  ;;  %v655_v6 = vmul.f32 %v4557_v47, %v5049_v30 }
  0xee   : > { %v1180_v19 = vmax.f32 %v1116_v60, 0.0  ;;  %v1181_v9 = vmax.f32 %v1117_v25, 0.0  ;;  %v1182_v8 = vmax.f32 %v1118_v51, 0.0  ;;  %v1183_v26 = vmax.f32 %v1119_v44, 0.0  ;;  %1012 = vperm.xlu2 %4343, %v4901_v7   ;;  %v3800_v7 = vld [vmem:[#allocation2 + $0x2b0] sm:$0xf0]  ;;  %2273 = vmatpush.bf16.msrb.mxu1 %v3675_v16  ;;  %v782_v25 = vpop.permute.xlu0 %781 }
  0xef   : > { %v3803_v36 = vor.u32 %v4186_v63, %v3800_v7  ;;  %v443_v51 = vmul.f32 %v5942_v37, %v5014_v15  ;;  %v444_v44 = vmul.f32 %v5943_v24, %v5014_v15  ;;  %v855_v63 = vmul.f32 %v4547_v41, %v782_v25  ;;  %v4182_v16 = vld [vmem:[#allocation2 + $0x284] sm:$0xf] }
  0xf0   : > { %v360_v45 = vpop.permute.xlu1 %359  ;;  %v5056_v56 = vpack.c.bf16 %v1180_v19, %v1176_v49  ;;  %v5058_v38 = vpack.c.bf16 %v1181_v9, %v1177_v11  ;;  %v5060_v5 = vpack.c.bf16 %v1182_v8, %v1178_v32  ;;  %v5062_v13 = vpack.c.bf16 %v1183_v26, %v1179_v10 }
  0xf1   : > { %v438_v18 = vmul.f32 %v5941_v53, %v360_v45  ;;  %2322 = vmatpush.bf16.msrb.mxu2 %v3803_v36  ;;  %v439_v4 = vmul.f32 %v5942_v37, %v360_v45  ;;  %v440_v23 = vmul.f32 %v5943_v24, %v360_v45  ;;  %v441_v48 = vmul.f32 %v5944_v39, %v360_v45 }
  0xf2   : > { %5956 = vst [vmem:[#allocation11_spill] sm:$0xff] %v5056_v56  ;;  %2049 = vmatmul.bf16.gmra.mxu0 %v5056_v56  ;;  %2098 = vmatmul.bf16.gmra.mxu1 %v5058_v38  ;;  %v445_v49 = vmul.f32 %v5944_v39, %v5014_v15  ;;  %v515_v32 = vadd.f32 %v4574_v58, %v442_v2  ;;  %v3784_v2 = vld [vmem:[#allocation2 + $0x290] sm:$0xf0] }
  0xf3   : > { %5957 = vst [vmem:[#allocation12_spill] sm:$0xff] %v5058_v38  ;;  %2147 = vmatmul.bf16.gmra.mxu2 %v5060_v5  ;;  %2196 = vmatmul.bf16.gmra.mxu3 %v5062_v13  ;;  %v511_v11 = vadd.f32 %v4574_v58, %v438_v18  ;;  %v512_v10 = vadd.f32 %v4576_v59, %v439_v4 }
  0xf4   : > { %5958 = vst [vmem:[#allocation13_spill] sm:$0xff] %v5060_v5  ;;  %v5071_v55 = vpop.permute.xlu2 %369  ;;  %v513_v19 = vadd.f32 %v5935_v40, %v440_v23  ;;  %v514_v9 = vadd.f32 %v5937_v46, %v441_v48  ;;  %v853_v26 = vmul.f32 %v4542_v34, %v782_v25  ;;  %v854_v45 = vmul.f32 %v4544_v35, %v782_v25  ;;  %v4214_v5 = vld [vmem:[#allocation2 + $0x384] sm:$0xf] }
  0xf5   : > { %5959 = vst [vmem:[#allocation16_spill] sm:$0xff] %v5062_v13  ;;  %v856_v3 = vmul.f32 %v4549_v42, %v782_v25  ;;  %v516_v29 = vadd.f32 %v4576_v59, %v443_v51  ;;  %v518_v36 = vadd.f32 %v5937_v46, %v445_v49  ;;  %v1056_v18 = vmul.f32 %v4617_v20, %v5064_v14 }
  0xf6   : > { %v1057_v23 = vmul.f32 %v4630_v28, %v5064_v14  ;;  %v1058_v48 = vmul.f32 %v4703_v21, %v5064_v14  ;;  %v3787_v25 = vor.u32 %v4182_v16, %v3784_v2  ;;  %v4118_v16 = vld [vmem:[#allocation2 + $0x84] sm:$0xf]  ;;  %v3528_v2 = vld [vmem:[#allocation2 + $0x90] sm:$0xf0] }
  0xf8   : > { %2323 = vmatpush.bf16.msrb.mxu2 %v3787_v25 }
  0xf9   : > { %v579_v54 = vpop.permute.xlu1 %578 }
  0xfa   : > { %v650_v57 = vmul.f32 %v4551_v43, %v579_v54  ;;  %v651_v52 = vmul.f32 %v4557_v47, %v579_v54  ;;  %v652_v31 = vmul.f32 %v5938_v1, %v579_v54  ;;  %v653_v60 = vmul.f32 %v5939_v61, %v579_v54 }
  0xfb   : > { %v517_v54 = vadd.f32 %v5935_v40, %v444_v44 }
  0xfc   : > { %v714_v8 = vadd.f32 %v650_v57, %v511_v11  ;;  %v715_v7 = vadd.f32 %v651_v52, %v512_v10  ;;  %v716_v50 = vadd.f32 %v652_v31, %v513_v19  ;;  %v717_v15 = vadd.f32 %v653_v60, %v514_v9 }
  0xfd   : > { %v1059_v57 = vmul.f32 %v4714_v62, %v5064_v14  ;;  %v5116_v52 = vpop.permute.xlu2 %590  ;;  %v718_v10 = vadd.f32 %v654_v27, %v515_v32  ;;  %v719_v19 = vadd.f32 %v655_v6, %v516_v29  ;;  %v720_v9 = vadd.f32 %v656_v0, %v517_v54  ;;  %v3912_v54 = vld [vmem:[#allocation2 + $0x390] sm:$0xf0] }
  0xfe   : > { %v917_v4 = vadd.f32 %v853_v26, %v714_v8  ;;  %v918_v31 = vadd.f32 %v854_v45, %v715_v7  ;;  %v919_v60 = vadd.f32 %v855_v63, %v716_v50  ;;  %v920_v30 = vadd.f32 %v856_v3, %v717_v15  ;;  %v3656_v27 = vld [vmem:[#allocation2 + $0x190] sm:$0xf0] }
  0xff   : > { %v721_v8 = vadd.f32 %v657_v17, %v518_v36  ;;  %v4150_v36 = vld [vmem:[#allocation2 + $0x184] sm:$0xf]  ;;  %v3531_v6 = vor.u32 %v4118_v16, %v3528_v2  ;;  %v3915_v0 = vor.u32 %v4214_v5, %v3912_v54  ;;  %v449_v16 = vmul.f32 %v5944_v39, %v5071_v55 }
 0x100   : > { %v1120_v14 = vadd.f32 %v1056_v18, %v917_v4  ;;  %v1121_v26 = vadd.f32 %v1057_v23, %v918_v31  ;;  %v1122_v13 = vadd.f32 %v1058_v48, %v919_v60  ;;  %v1123_v45 = vadd.f32 %v1059_v57, %v920_v30 }
 0x101   : > { %v3659_v17 = vor.u32 %v4150_v36, %v3656_v27  ;;  %2225 = vmatpush.bf16.msrb.mxu0 %v3531_v6  ;;  %2372 = vmatpush.bf16.msrb.mxu3 %v3915_v0  ;;  %v664_v36 = vmul.f32 %v5938_v1, %v5116_v52 }
 0x102   : > { %v786_v22 = vpop.permute.xlu1 %785  ;;  %v1184_v57 = vmax.f32 %v1120_v14, 0.0  ;;  %v1185_v31 = vmax.f32 %v1121_v26, 0.0  ;;  %v1186_v60 = vmax.f32 %v1122_v13, 0.0  ;;  %v1187_v30 = vmax.f32 %v1123_v45, 0.0  ;;  %v4178_v26 = vld [vmem:[#allocation2 + $0x264] sm:$0xf] }
 0x103   : > { %v857_v51 = vmul.f32 %v4542_v34, %v786_v22  ;;  %v858_v44 = vmul.f32 %v4544_v35, %v786_v22  ;;  %v859_v49 = vmul.f32 %v4547_v41, %v786_v22  ;;  %v860_v11 = vmul.f32 %v4549_v42, %v786_v22  ;;  %2274 = vmatpush.bf16.msrb.mxu1 %v3659_v17  ;;  %v3768_v45 = vld [vmem:[#allocation2 + $0x270] sm:$0xf0] }
 0x104   : > { %v3771_v2 = vor.u32 %v4178_v26, %v3768_v45 }
 0x105   : > { %v921_v63 = vadd.f32 %v857_v51, %v718_v10  ;;  %v922_v7 = vadd.f32 %v858_v44, %v719_v19  ;;  %v923_v50 = vadd.f32 %v859_v49, %v720_v9  ;;  %v924_v15 = vadd.f32 %v860_v11, %v721_v8  ;;  %v375_v10 = vpop.permute.xlu0 %374 }
 0x106   : > { %v5126_v25 = vpop.permute.xlu2 %793  ;;  %v450_v13 = vmul.f32 %v5941_v53, %v375_v10  ;;  %v451_v8 = vmul.f32 %v5942_v37, %v375_v10  ;;  %2324 = vmatpush.bf16.msrb.mxu2 %v3771_v2 }
 0x108   : > { %v524_v54 = vadd.f32 %v4576_v59, %v451_v8 }
 0x10b   : > { %v989_v3 = vpop.permute.xlu1 %988 }
 0x10c   : > { %v1060_v38 = vmul.f32 %v4617_v20, %v989_v3  ;;  %v1061_v22 = vmul.f32 %v4630_v28, %v989_v3  ;;  %v1062_v32 = vmul.f32 %v4703_v21, %v989_v3  ;;  %v1063_v29 = vmul.f32 %v4714_v62, %v989_v3 }
 0x10d   : > { %v448_v3 = vmul.f32 %v5943_v24, %v5071_v55 }
 0x10e   : > { %v1124_v18 = vadd.f32 %v1060_v38, %v921_v63  ;;  %v1125_v4 = vadd.f32 %v1061_v22, %v922_v7  ;;  %v1126_v23 = vadd.f32 %v1062_v32, %v923_v50  ;;  %v1127_v48 = vadd.f32 %v1063_v29, %v924_v15 }
 0x10f   : > { %v446_v63 = vmul.f32 %v5941_v53, %v5071_v55  ;;  %v452_v7 = vmul.f32 %v5943_v24, %v375_v10  ;;  %v453_v50 = vmul.f32 %v5944_v39, %v375_v10  ;;  %v447_v15 = vmul.f32 %v5942_v37, %v5071_v55  ;;  %v5164_v0 = vpop.permute.xlu2 %379 }
 0x110   : > { %v1188_v51 = vmax.f32 %v1124_v18, 0.0  ;;  %v1189_v44 = vmax.f32 %v1125_v4, 0.0  ;;  %v1190_v49 = vmax.f32 %v1126_v23, 0.0  ;;  %v1191_v11 = vmax.f32 %v1127_v48, 0.0  ;;  %v993_v23 = vpop.permute.xlu0 %992  ;;  %v4114_v48 = vld [vmem:[#allocation2 + $0x64] sm:$0xf] }
 0x111   : > { %v662_v22 = vmul.f32 %v4551_v43, %v5116_v52  ;;  %v663_v32 = vmul.f32 %v4557_v47, %v5116_v52  ;;  %v523_v29 = vadd.f32 %v4574_v58, %v450_v13  ;;  %v665_v55 = vmul.f32 %v5939_v61, %v5116_v52 }
 0x112   : > { %v5128_v5 = vpack.c.bf16 %v1188_v51, %v1184_v57  ;;  %v5130_v38 = vpack.c.bf16 %v1189_v44, %v1185_v31  ;;  %v5132_v19 = vpack.c.bf16 %v1190_v49, %v1186_v60  ;;  %v5134_v9 = vpack.c.bf16 %v1191_v11, %v1187_v30  ;;  %v3512_v57 = vld [vmem:[#allocation2 + $0x70] sm:$0xf0]  ;;  %v4210_v51 = vld [vmem:[#allocation2 + $0x364] sm:$0xf] }
 0x113   : > { %v525_v27 = vadd.f32 %v5935_v40, %v452_v7  ;;  %v526_v6 = vadd.f32 %v5937_v46, %v453_v50  ;;  %v519_v17 = vadd.f32 %v4574_v58, %v446_v63  ;;  %v520_v18 = vadd.f32 %v4576_v59, %v447_v15  ;;  %v3896_v44 = vld [vmem:[#allocation2 + $0x370] sm:$0xf0]  ;;  %v4146_v50 = vld [vmem:[#allocation2 + $0x164] sm:$0xf] }
 0x114   : > { %5960 = vst [vmem:[#allocation22_spill] sm:$0xff] %v5128_v5  ;;  %v587_v14 = vpop.permute.xlu1 %586  ;;  %2054 = vmatmul.bf16.gmra.mxu0 %v5128_v5  ;;  %2103 = vmatmul.bf16.gmra.mxu1 %v5130_v38  ;;  %v521_v4 = vadd.f32 %v5935_v40, %v448_v3  ;;  %v522_v31 = vadd.f32 %v5937_v46, %v449_v16  ;;  %v3640_v15 = vld [vmem:[#allocation2 + $0x170] sm:$0xf0] }
 0x115   : > { %5961 = vst [vmem:[#allocation25_spill] sm:$0xff] %v5130_v38  ;;  %2152 = vmatmul.bf16.gmra.mxu2 %v5132_v19  ;;  %2201 = vmatmul.bf16.gmra.mxu3 %v5134_v9  ;;  %v726_v60 = vadd.f32 %v662_v22, %v523_v29  ;;  %v727_v30 = vadd.f32 %v663_v32, %v524_v54 }
 0x116   : > { %5962 = vst [vmem:[#allocation26_spill] sm:$0xff] %v5132_v19  ;;  %v3515_v52 = vor.u32 %v4114_v48, %v3512_v57  ;;  %v658_v49 = vmul.f32 %v4551_v43, %v587_v14  ;;  %v659_v11 = vmul.f32 %v4557_v47, %v587_v14  ;;  %v660_v10 = vmul.f32 %v5938_v1, %v587_v14 }
 0x117   : > { %5963 = vst [vmem:[#allocation27_spill] sm:$0xff] %v5134_v9  ;;  %v661_v13 = vmul.f32 %v5939_v61, %v587_v14  ;;  %v728_v8 = vadd.f32 %v664_v36, %v525_v27  ;;  %v729_v26 = vadd.f32 %v665_v55, %v526_v6  ;;  %v1064_v63 = vmul.f32 %v4617_v20, %v993_v23 }
 0x118   : > { %2226 = vmatpush.bf16.msrb.mxu0 %v3515_v52  ;;  %v3899_v7 = vor.u32 %v4210_v51, %v3896_v44  ;;  %v1065_v32 = vmul.f32 %v4630_v28, %v993_v23  ;;  %v1066_v14 = vmul.f32 %v4703_v21, %v993_v23  ;;  %v1067_v29 = vmul.f32 %v4714_v62, %v993_v23 }
 0x119   : > { %v3643_v54 = vor.u32 %v4146_v50, %v3640_v15  ;;  %v722_v36 = vadd.f32 %v658_v49, %v519_v17  ;;  %v723_v55 = vadd.f32 %v659_v11, %v520_v18  ;;  %v724_v27 = vadd.f32 %v660_v10, %v521_v4  ;;  %v5190_v18 = vpop.permute.xlu2 %594 }
 0x11a   : > { %2373 = vmatpush.bf16.msrb.mxu3 %v3899_v7  ;;  %v725_v6 = vadd.f32 %v661_v13, %v522_v31  ;;  %v865_v48 = vmul.f32 %v4542_v34, %v5126_v25  ;;  %v866_v57 = vmul.f32 %v4544_v35, %v5126_v25  ;;  %v867_v52 = vmul.f32 %v4547_v41, %v5126_v25 }
 0x11b   : > { %v868_v51 = vmul.f32 %v4549_v42, %v5126_v25  ;;  %2275 = vmatpush.bf16.msrb.mxu1 %v3643_v54 }
 0x11c   : > { %v929_v4 = vadd.f32 %v865_v48, %v726_v60  ;;  %v930_v31 = vadd.f32 %v866_v57, %v727_v30  ;;  %v931_v49 = vadd.f32 %v867_v52, %v728_v8  ;;  %v3496_v48 = vld [vmem:[#allocation2 + $0x50] sm:$0xf0] }
 0x11d   : > { %v790_v45 = vpop.permute.xlu1 %789  ;;  %v932_v11 = vadd.f32 %v868_v51, %v729_v26 }
 0x11e   : > { %v861_v3 = vmul.f32 %v4542_v34, %v790_v45  ;;  %v862_v16 = vmul.f32 %v4544_v35, %v790_v45  ;;  %v863_v2 = vmul.f32 %v4547_v41, %v790_v45  ;;  %v864_v22 = vmul.f32 %v4549_v42, %v790_v45 }
 0x120   : > { %v925_v23 = vadd.f32 %v861_v3, %v722_v36  ;;  %v926_v44 = vadd.f32 %v862_v16, %v723_v55  ;;  %v927_v45 = vadd.f32 %v863_v2, %v724_v27  ;;  %v928_v17 = vadd.f32 %v864_v22, %v725_v6  ;;  %v4174_v55 = vld [vmem:[#allocation2 + $0x244] sm:$0xf]  ;;  %v3752_v27 = vld [vmem:[#allocation2 + $0x250] sm:$0xf0] }
 0x121   : > { %v4110_v6 = vld [vmem:[#allocation2 + $0x44] sm:$0xf] }
 0x122   : > { %v1128_v10 = vadd.f32 %v1064_v63, %v925_v23  ;;  %v1129_v13 = vadd.f32 %v1065_v32, %v926_v44  ;;  %v1130_v7 = vadd.f32 %v1066_v14, %v927_v45  ;;  %v1131_v50 = vadd.f32 %v1067_v29, %v928_v17  ;;  %v4206_v44 = vld [vmem:[#allocation2 + $0x344] sm:$0xf]  ;;  %v3880_v45 = vld [vmem:[#allocation2 + $0x350] sm:$0xf0] }
 0x123   : > { %v3755_v17 = vor.u32 %v4174_v55, %v3752_v27 }
 0x124   : > { %v1192_v30 = vmax.f32 %v1128_v10, 0.0  ;;  %v1193_v8 = vmax.f32 %v1129_v13, 0.0  ;;  %v1194_v26 = vmax.f32 %v1130_v7, 0.0  ;;  %v1195_v63 = vmax.f32 %v1131_v50, 0.0  ;;  %v802_v57 = vpop.permute.xlu2 %801 }
 0x125   : > { %2325 = vmatpush.bf16.msrb.mxu2 %v3755_v17  ;;  %v873_v17 = vmul.f32 %v4542_v34, %v802_v57 }
 0x126   : > { %v997_v15 = vpop.permute.xlu1 %996 }
 0x127   : > { %v1068_v9 = vmul.f32 %v4617_v20, %v997_v15  ;;  %v1069_v25 = vmul.f32 %v4630_v28, %v997_v15  ;;  %v1070_v3 = vmul.f32 %v4703_v21, %v997_v15  ;;  %v1071_v16 = vmul.f32 %v4714_v62, %v997_v15  ;;  %v5214_v15 = vld [vmem:[%s5799_s4] sm:$0xf] }
 0x128   : > { %5968 = vst [vmem:[#allocation32_spill] sm:$0xff] %v5214_v15 }
 0x129   : > { %v1132_v2 = vadd.f32 %v1068_v9, %v929_v4  ;;  %v1133_v22 = vadd.f32 %v1069_v25, %v930_v31  ;;  %v1134_v54 = vadd.f32 %v1070_v3, %v931_v49  ;;  %v1135_v60 = vadd.f32 %v1071_v16, %v932_v11  ;;  %v599_v49 = vpop.permute.xlu0 %598 }
 0x12a   : > { %v3499_v4 = vor.u32 %v4110_v6, %v3496_v48  ;;  %v3883_v11 = vor.u32 %v4206_v44, %v3880_v45  ;;  %v454_v25 = vmul.f32 %v5941_v53, %v5164_v0  ;;  %v455_v3 = vmul.f32 %v5942_v37, %v5164_v0 }
 0x12b   : > { %v1196_v32 = vmax.f32 %v1132_v2, 0.0  ;;  %v1197_v14 = vmax.f32 %v1133_v22, 0.0  ;;  %v1198_v29 = vmax.f32 %v1134_v54, 0.0  ;;  %v1199_v36 = vmax.f32 %v1135_v60, 0.0  ;;  %v4142_v22 = vld [vmem:[#allocation2 + $0x144] sm:$0xf] }
 0x12c   : > { %v670_v2 = vmul.f32 %v4551_v43, %v599_v49  ;;  %2227 = vmatpush.bf16.msrb.mxu0 %v3499_v4  ;;  %v3624_v54 = vld [vmem:[#allocation2 + $0x150] sm:$0xf0]  ;;  %v456_v60 = vmul.f32 %v5943_v24, %v5164_v0  ;;  %2374 = vmatpush.bf16.msrb.mxu3 %v3883_v11  ;;  %v527_v55 = vadd.f32 %v4574_v58, %v454_v25 }
 0x12d   : > { %v5196_v52 = vpack.c.bf16 %v1196_v32, %v1192_v30  ;;  %v5198_v51 = vpack.c.bf16 %v1197_v14, %v1193_v8  ;;  %v5200_v9 = vpack.c.bf16 %v1198_v29, %v1194_v26  ;;  %v5202_v23 = vpack.c.bf16 %v1199_v36, %v1195_v63 }
 0x12e   : > { %v671_v8 = vmul.f32 %v4557_v47, %v599_v49  ;;  %v5228_v26 = vperm.slane %v5214_v15, 0  ;;  %v672_v14 = vmul.f32 %v5938_v1, %v599_v49  ;;  %v673_v29 = vmul.f32 %v5939_v61, %v599_v49  ;;  %v3480_v15 = vld [vmem:[#allocation2 + $0x30] sm:$0xf0] }
 0x12f   : > { %5964 = vst [vmem:[#allocation28_spill] sm:$0xff] %v5196_v52  ;;  %v385_v31 = vpop.permute.xlu1 %384  ;;  %2059 = vmatmul.bf16.gmra.mxu0 %v5196_v52  ;;  %2108 = vmatmul.bf16.gmra.mxu1 %v5198_v51  ;;  %v457_v36 = vmul.f32 %v5944_v39, %v5164_v0  ;;  %v3627_v48 = vor.u32 %v4142_v22, %v3624_v54 }
 0x130   : > { %5965 = vst [vmem:[#allocation29_spill] sm:$0xff] %v5198_v51  ;;  %v458_v10 = vmul.f32 %v5941_v53, %v385_v31  ;;  %v459_v13 = vmul.f32 %v5942_v37, %v385_v31  ;;  %v460_v7 = vmul.f32 %v5943_v24, %v385_v31  ;;  %v461_v50 = vmul.f32 %v5944_v39, %v385_v31 }
 0x131   : > { %5966 = vst [vmem:[#allocation30_spill] sm:$0xff] %v5200_v9  ;;  %2157 = vmatmul.bf16.gmra.mxu2 %v5200_v9  ;;  %2206 = vmatmul.bf16.gmra.mxu3 %v5202_v23  ;;  %v528_v44 = vadd.f32 %v4576_v59, %v455_v3  ;;  %v666_v45 = vmul.f32 %v4551_v43, %v5190_v18  ;;  %v4138_v9 = vld [vmem:[#allocation2 + $0x124] sm:$0xf] }
 0x132   : > { %5967 = vst [vmem:[#allocation31_spill] sm:$0xff] %v5202_v23  ;;  %v531_v16 = vadd.f32 %v4574_v58, %v458_v10  ;;  %v532_v30 = vadd.f32 %v4576_v59, %v459_v13  ;;  %v533_v63 = vadd.f32 %v5935_v40, %v460_v7  ;;  %v534_v32 = vadd.f32 %v5937_v46, %v461_v50  ;;  %v1005_v10 = vpop.permute.xlu2 %1004  ;;  %v4202_v23 = vld [vmem:[#allocation2 + $0x324] sm:$0xf] }
 0x133   : > { %v529_v31 = vadd.f32 %v5935_v40, %v456_v60  ;;  %v874_v49 = vmul.f32 %v4544_v35, %v802_v57  ;;  %2276 = vmatpush.bf16.msrb.mxu1 %v3627_v48  ;;  %v875_v13 = vmul.f32 %v4547_v41, %v802_v57  ;;  %v876_v7 = vmul.f32 %v4549_v42, %v802_v57  ;;  %v4170_v57 = vld [vmem:[#allocation2 + $0x224] sm:$0xf] }
 0x134   : > { %v734_v4 = vadd.f32 %v670_v2, %v531_v16  ;;  %v735_v11 = vadd.f32 %v671_v8, %v532_v30  ;;  %v736_v50 = vadd.f32 %v672_v14, %v533_v63  ;;  %v737_v25 = vadd.f32 %v673_v29, %v534_v32  ;;  %v3736_v63 = vld [vmem:[#allocation2 + $0x230] sm:$0xf0]  ;;  %v4106_v48 = vld [vmem:[#allocation2 + $0x24] sm:$0xf] }
 0x135   : > { %v2035_v27 = vpop.f32.mrf.mxu0  ;;  %v2084_v6 = vpop.f32.mrf.mxu1  ;;  %v530_v22 = vadd.f32 %v5937_v46, %v457_v36  ;;  %v667_v16 = vmul.f32 %v4557_v47, %v5190_v18  ;;  %v668_v2 = vmul.f32 %v5938_v1, %v5190_v18  ;;  %v669_v60 = vmul.f32 %v5939_v61, %v5190_v18 }
 0x136   : > { %v2036_v0 = vadd.f32 %v2035_v27, %v5228_v26  ;;  %v730_v30 = vadd.f32 %v666_v45, %v527_v55  ;;  %v937_v8 = vadd.f32 %v873_v17, %v734_v4  ;;  %v1076_v27 = vmul.f32 %v4617_v20, %v1005_v10  ;;  %v3864_v4 = vld [vmem:[#allocation2 + $0x330] sm:$0xf0] }
 0x137   : > { %v938_v32 = vadd.f32 %v874_v49, %v735_v11  ;;  %v1077_v14 = vmul.f32 %v4630_v28, %v1005_v10  ;;  %v1078_v29 = vmul.f32 %v4703_v21, %v1005_v10  ;;  %v1079_v36 = vmul.f32 %v4714_v62, %v1005_v10  ;;  %v3608_v49 = vld [vmem:[#allocation2 + $0x130] sm:$0xf0] }
 0x138   : > { %v798_v3 = vpop.permute.xlu1 %797  ;;  %v2085_v54 = vadd.f32 %v2084_v6, %v2036_v0  ;;  %v939_v6 = vadd.f32 %v875_v13, %v736_v50  ;;  %v940_v0 = vadd.f32 %v876_v7, %v737_v25  ;;  %v3739_v13 = vor.u32 %v4170_v57, %v3736_v63 }
 0x139   : > { %v869_v18 = vmul.f32 %v4542_v34, %v798_v3  ;;  %v870_v55 = vmul.f32 %v4544_v35, %v798_v3  ;;  %v871_v11 = vmul.f32 %v4547_v41, %v798_v3  ;;  %v872_v51 = vmul.f32 %v4549_v42, %v798_v3 }
 0x13a   : > { %v731_v7 = vadd.f32 %v667_v16, %v528_v44  ;;  %v732_v50 = vadd.f32 %v668_v2, %v529_v31  ;;  %v733_v25 = vadd.f32 %v669_v60, %v530_v22  ;;  %v1140_v38 = vadd.f32 %v1076_v27, %v937_v8  ;;  %2326 = vmatpush.bf16.msrb.mxu2 %v3739_v13  ;;  %v3464_v13 = vld [vmem:[#allocation2 + $0x10] sm:$0xf0] }
 0x13b   : > { %v3483_v56 = vor.u32 %v4106_v48, %v3480_v15  ;;  %v3867_v12 = vor.u32 %v4202_v23, %v3864_v4  ;;  %v3611_v33 = vor.u32 %v4138_v9, %v3608_v49  ;;  %v1141_v35 = vadd.f32 %v1077_v14, %v938_v32  ;;  %v390_v23 = vpop.permute.xlu0 %389  ;;  %v3720_v4 = vld [vmem:[#allocation2 + $0x210] sm:$0xf0]  ;;  %v4102_v49 = vld [vmem:[#allocation2 + $0x4] sm:$0xf] }
 0x13c   : > { %v2133_v45 = vpop.f32.mrf.mxu2  ;;  %v2182_v17 = vpop.f32.mrf.mxu3  ;;  %v1142_v41 = vadd.f32 %v1078_v29, %v939_v6  ;;  %v1143_v34 = vadd.f32 %v1079_v36, %v940_v0  ;;  %v933_v3 = vadd.f32 %v869_v18, %v730_v30  ;;  %v462_v48 = vmul.f32 %v5941_v53, %v390_v23 }
 0x13d   : > { %v2134_v52 = vadd.f32 %v2133_v45, %v2085_v54  ;;  %v5261_v10 = vpop.f32.mrf.mxu0  ;;  %v5263_v19 = vpop.f32.mrf.mxu1  ;;  %v934_v45 = vadd.f32 %v870_v55, %v731_v7  ;;  %2228 = vmatpush.bf16.msrb.mxu0 %v3483_v56  ;;  %2375 = vmatpush.bf16.msrb.mxu3 %v3867_v12  ;;  %v1204_v56 = vmax.f32 %v1140_v38, 0.0  ;;  %v1205_v12 = vmax.f32 %v1141_v35, 0.0  ;;  %v4198_v7 = vld [vmem:[#allocation2 + $0x304] sm:$0xf] }
 0x13e   : > { %5969 = vst [vmem:[#allocation33_spill] sm:$0xff] %v5261_v10  ;;  %v5267_v54 = vpop.permute.xlu2 %602  ;;  %v935_v10 = vadd.f32 %v871_v11, %v732_v50  ;;  %2277 = vmatpush.bf16.msrb.mxu1 %v3611_v33  ;;  %v1206_v30 = vmax.f32 %v1142_v41, 0.0  ;;  %v1207_v8 = vmax.f32 %v1143_v34, 0.0  ;;  %v464_v6 = vmul.f32 %v5943_v24, %v390_v23  ;;  %v3848_v50 = vld [vmem:[#allocation2 + $0x310] sm:$0xf0] }
 0x13f   : > { %5970 = vst [vmem:[#allocation34_spill] sm:$0xff] %v5263_v19  ;;  %v5265_v5 = vadd.f32 %v2182_v17, %v2134_v52  ;;  %v936_v19 = vadd.f32 %v872_v51, %v733_v25  ;;  %v4166_v17 = vld [vmem:[#allocation2 + $0x204] sm:$0xf]  ;;  %v465_v11 = vmul.f32 %v5944_v39, %v390_v23 }
 0x141   : > { %v1001_v57 = vpop.permute.xlu1 %1000 }
 0x142   : > { %v1072_v44 = vmul.f32 %v4617_v20, %v1001_v57  ;;  %v1073_v52 = vmul.f32 %v4630_v28, %v1001_v57  ;;  %v1074_v15 = vmul.f32 %v4703_v21, %v1001_v57  ;;  %v1075_v9 = vmul.f32 %v4714_v62, %v1001_v57 }
 0x143   : > { %v810_v57 = vpop.permute.xlu0 %809 }
 0x144   : > { %v1136_v31 = vadd.f32 %v1072_v44, %v933_v3  ;;  %v1137_v22 = vadd.f32 %v1073_v52, %v934_v45  ;;  %v1138_v16 = vadd.f32 %v1074_v15, %v935_v10  ;;  %v1139_v2 = vadd.f32 %v1075_v9, %v936_v19  ;;  %v5273_v60 = vpop.f32.mrf.mxu2  ;;  %v5275_v51 = vpop.f32.mrf.mxu3  ;;  %v4134_v15 = vld [vmem:[#allocation2 + $0x104] sm:$0xf]  ;;  %v3592_v9 = vld [vmem:[#allocation2 + $0x110] sm:$0xf0] }
 0x145   : > { %v2040_v27 = vpop.f32.mrf.mxu0  ;;  %v2089_v36 = vpop.f32.mrf.mxu1  ;;  %v463_v19 = vmul.f32 %v5942_v37, %v390_v23  ;;  %v535_v10 = vadd.f32 %v4574_v58, %v462_v48  ;;  %v537_v3 = vadd.f32 %v5935_v40, %v464_v6  ;;  %v3723_v44 = vor.u32 %v4166_v17, %v3720_v4  ;;  %v5974_v6 = vld [vmem:[#allocation7_spill] sm:$0xff] }
 0x146   : > { %v1200_v63 = vmax.f32 %v1136_v31, 0.0  ;;  %v1201_v32 = vmax.f32 %v1137_v22, 0.0  ;;  %v1202_v14 = vmax.f32 %v1138_v16, 0.0  ;;  %v1203_v29 = vmax.f32 %v1139_v2, 0.0  ;;  %v806_v55 = vpop.permute.xlu2 %805 }
 0x147   : > { %v2041_v33 = vadd.f32 %v2040_v27, %v5228_v26  ;;  %v536_v25 = vadd.f32 %v4576_v59, %v463_v19  ;;  %v3467_v52 = vor.u32 %v4102_v49, %v3464_v13  ;;  %v674_v23 = vmul.f32 %v4551_v43, %v5267_v54  ;;  %2327 = vmatpush.bf16.msrb.mxu2 %v3723_v44 }
 0x148   : > { %v5281_v0 = vpack.c.bf16 %v1204_v56, %v1200_v63  ;;  %v5283_v38 = vpack.c.bf16 %v1205_v12, %v1201_v32  ;;  %v5285_v35 = vpack.c.bf16 %v1206_v30, %v1202_v14  ;;  %v5287_v34 = vpack.c.bf16 %v1207_v8, %v1203_v29 }
 0x149   : > { %v2090_v41 = vadd.f32 %v2089_v36, %v2041_v33  ;;  %v675_v31 = vmul.f32 %v4557_v47, %v5267_v54  ;;  %v676_v22 = vmul.f32 %v5938_v1, %v5267_v54  ;;  %2229 = vmatpush.bf16.msrb.mxu0 %v3467_v52  ;;  %v3851_v27 = vor.u32 %v4198_v7, %v3848_v50 }
 0x14a   : > { %v395_v18 = vpop.permute.xlu1 %394  ;;  %2064 = vmatmul.bf16.gmra.mxu0 %v5281_v0  ;;  %2113 = vmatmul.bf16.gmra.mxu1 %v5283_v38  ;;  %v3595_v29 = vor.u32 %v4134_v15, %v3592_v9  ;;  %v677_v36 = vmul.f32 %v5939_v61, %v5267_v54  ;;  %v538_v33 = vadd.f32 %v5937_v46, %v465_v11 }
 0x14b   : > { %2162 = vmatmul.bf16.gmra.mxu2 %v5285_v35  ;;  %2211 = vmatmul.bf16.gmra.mxu3 %v5287_v34  ;;  %v466_v12 = vmul.f32 %v5941_v53, %v395_v18  ;;  %v467_v30 = vmul.f32 %v5942_v37, %v395_v18  ;;  %v468_v63 = vmul.f32 %v5943_v24, %v395_v18  ;;  %v5972_v53 = vld [vmem:[#allocation5_spill] sm:$0xff]  ;;  %v5973_v37 = vld [vmem:[#allocation6_spill] sm:$0xff] }
 0x14c   : > { %v2138_v45 = vpop.f32.mrf.mxu2  ;;  %v2187_v2 = vpop.f32.mrf.mxu3  ;;  %v469_v32 = vmul.f32 %v5944_v39, %v395_v18  ;;  %v881_v48 = vmul.f32 %v5972_v53, %v810_v57  ;;  %2376 = vmatpush.bf16.msrb.mxu3 %v3851_v27  ;;  %v882_v19 = vmul.f32 %v5973_v37, %v810_v57  ;;  %v884_v17 = vmul.f32 %v4549_v42, %v810_v57 }
 0x14d   : > { %v2139_v16 = vadd.f32 %v2138_v45, %v2090_v41  ;;  %v5303_v56 = vpop.f32.mrf.mxu0  ;;  %v5307_v8 = vpop.f32.mrf.mxu1  ;;  %v883_v41 = vmul.f32 %v5974_v6, %v810_v57  ;;  %v738_v24 = vadd.f32 %v674_v23, %v535_v10  ;;  %2278 = vmatpush.bf16.msrb.mxu1 %v3595_v29  ;;  %v877_v39 = vmul.f32 %v5972_v53, %v806_v55 }
 0x14e   : > { %v878_v18 = vmul.f32 %v5973_v37, %v806_v55  ;;  %v1013_v4 = vpop.permute.xlu2 %1012  ;;  %v739_v49 = vadd.f32 %v675_v31, %v536_v25  ;;  %v740_v54 = vadd.f32 %v676_v22, %v537_v3  ;;  %v539_v11 = vadd.f32 %v4574_v58, %v466_v12 }
 0x14f   : > { %v5311_v14 = vadd.f32 %v2187_v2, %v2139_v16  ;;  %v540_v13 = vadd.f32 %v4576_v59, %v467_v30  ;;  %v541_v7 = vadd.f32 %v5935_v40, %v468_v63  ;;  %v542_v50 = vadd.f32 %v5937_v46, %v469_v32 }
 0x150   : > { %v879_v25 = vmul.f32 %v5974_v6, %v806_v55  ;;  %v880_v58 = vmul.f32 %v4549_v42, %v806_v55  ;;  %v1084_v40 = vmul.f32 %v4617_v20, %v1013_v4  ;;  %v1085_v46 = vmul.f32 %v4630_v28, %v1013_v4  ;;  %v3838_v6 = vld [vmem:[#allocation2 + $0x2e8] sm:$0xf] }
 0x151   : > { %5971 = vst [vmem:[#allocation35_spill] sm:$0xff] %v5311_v14  ;;  %v1087_v31 = vmul.f32 %v4714_v62, %v1013_v4  ;;  %v741_v22 = vadd.f32 %v677_v36, %v538_v33  ;;  %v941_v32 = vadd.f32 %v877_v39, %v738_v24  ;;  %v942_v29 = vadd.f32 %v878_v18, %v739_v49  ;;  %v4133_v33 = vld [vmem:[#allocation2 + $0xf4] sm:$0xf0]  ;;  %v3966_v39 = vld [vmem:[#allocation2 + $0x3e8] sm:$0xf] }
 0x152   : > { %v943_v53 = vadd.f32 %v879_v25, %v740_v54  ;;  %v4229_v18 = vld [vmem:[#allocation2 + $0x3f4] sm:$0xf0]  ;;  %v3710_v49 = vld [vmem:[#allocation2 + $0x1e8] sm:$0xf] }
 0x153   : > { %v607_v45 = vpop.permute.xlu1 %606  ;;  %v944_v37 = vadd.f32 %v880_v58, %v741_v22 }
 0x154   : > { %v678_v57 = vmul.f32 %v4551_v43, %v607_v45  ;;  %v679_v10 = vmul.f32 %v4557_v47, %v607_v45  ;;  %v680_v44 = vmul.f32 %v5938_v1, %v607_v45  ;;  %v681_v52 = vmul.f32 %v5939_v61, %v607_v45  ;;  %v5330_v15 = vpop.f32.mrf.mxu2  ;;  %v5334_v59 = vpop.f32.mrf.mxu3 }
 0x155   : > { %v2045_v3 = vpop.f32.mrf.mxu0  ;;  %v1086_v61 = vmul.f32 %v4703_v21, %v1013_v4 }
 0x156   : > { %v742_v43 = vadd.f32 %v678_v57, %v539_v11  ;;  %v743_v9 = vadd.f32 %v679_v10, %v540_v13  ;;  %v744_v47 = vadd.f32 %v680_v44, %v541_v7  ;;  %v745_v23 = vadd.f32 %v681_v52, %v542_v50  ;;  %v2094_v16 = vpop.f32.mrf.mxu1  ;;  %v4197_v11 = vld [vmem:[#allocation2 + $0x2f4] sm:$0xf0]  ;;  %v3582_v13 = vld [vmem:[#allocation2 + $0xe8] sm:$0xf] }
 0x157   : > { %v2046_v1 = vadd.f32 %v2045_v3, %v5228_v26  ;;  %v3839_v57 = vor.u32 %v4197_v11, %v3838_v6  ;;  %v3583_v10 = vor.u32 %v4133_v33, %v3582_v13  ;;  %v3967_v44 = vor.u32 %v4229_v18, %v3966_v39  ;;  %v4165_v52 = vld [vmem:[#allocation2 + $0x1f4] sm:$0xf0]  ;;  %v5980_v33 = vld [vmem:[#allocation17_spill] sm:$0xff] }
 0x158   : > { %v945_v42 = vadd.f32 %v881_v48, %v742_v43  ;;  %v946_v55 = vadd.f32 %v882_v19, %v743_v9  ;;  %v947_v2 = vadd.f32 %v883_v41, %v744_v47  ;;  %v948_v12 = vadd.f32 %v884_v17, %v745_v23  ;;  %v4189_v39 = vld [vmem:[#allocation2 + $0x2b4] sm:$0xf0] }
 0x159   : > { %v2095_v30 = vadd.f32 %v2094_v16, %v2046_v1  ;;  %2516 = vmatpush.bf16.msra.mxu2 %v3839_v57  ;;  %2418 = vmatpush.bf16.msra.mxu0 %v3583_v10  ;;  %v3822_v16 = vld [vmem:[#allocation2 + $0x2c8] sm:$0xf] }
 0x15a   : > { %v1148_v27 = vadd.f32 %v1084_v40, %v945_v42  ;;  %v1149_v63 = vadd.f32 %v1085_v46, %v946_v55  ;;  %v1150_v7 = vadd.f32 %v1086_v61, %v947_v2  ;;  %v1151_v50 = vadd.f32 %v1087_v31, %v948_v12  ;;  %2565 = vmatpush.bf16.msra.mxu3 %v3967_v44  ;;  %v4193_v42 = vld [vmem:[#allocation2 + $0x2d4] sm:$0xf0]  ;;  %v3566_v55 = vld [vmem:[#allocation2 + $0xc8] sm:$0xf] }
 0x15b   : > { %v3823_v12 = vor.u32 %v4193_v42, %v3822_v16  ;;  %v3550_v10 = vld [vmem:[#allocation2 + $0xa8] sm:$0xf]  ;;  %v4125_v44 = vld [vmem:[#allocation2 + $0xb4] sm:$0xf0] }
 0x15c   : > { %v1212_v45 = vmax.f32 %v1148_v27, 0.0  ;;  %v1213_v4 = vmax.f32 %v1149_v63, 0.0  ;;  %v1009_v36 = vpop.permute.xlu1 %1008  ;;  %v2143_v48 = vpop.f32.mrf.mxu2  ;;  %v1215_v43 = vmax.f32 %v1151_v50, 0.0  ;;  %v3950_v27 = vld [vmem:[#allocation2 + $0x3c8] sm:$0xf] }
 0x15d   : > { %v1080_v19 = vmul.f32 %v4617_v20, %v1009_v36  ;;  %v1081_v41 = vmul.f32 %v4630_v28, %v1009_v36  ;;  %v1082_v17 = vmul.f32 %v4703_v21, %v1009_v36  ;;  %v1083_v24 = vmul.f32 %v4714_v62, %v1009_v36  ;;  %v2192_v25 = vpop.f32.mrf.mxu3  ;;  %v5359_v2 = vpop.f32.mrf.mxu0  ;;  %v4225_v63 = vld [vmem:[#allocation2 + $0x3d4] sm:$0xf0]  ;;  %2517 = vmatpush.bf16.msra.mxu2 %v3823_v12  ;;  %v3534_v16 = vld [vmem:[#allocation2 + $0x88] sm:$0xf] }
 0x15e   : > { %v2144_v54 = vadd.f32 %v2143_v48, %v2095_v30  ;;  %v1214_v20 = vmax.f32 %v1150_v7, 0.0  ;;  %v3711_v21 = vor.u32 %v4165_v52, %v3710_v49  ;;  %5976 = vst [vmem:[#allocation6_spill] sm:$0xff] %v5359_v2  ;;  %v4129_v30 = vld [vmem:[#allocation2 + $0xd4] sm:$0xf0]  ;;  %v5361_v6 = vpop.f32.mrf.mxu1  ;;  %v3934_v52 = vld [vmem:[#allocation2 + $0x3a8] sm:$0xf] }
 0x15f   : > { %v1144_v58 = vadd.f32 %v1080_v19, %v941_v32  ;;  %v1145_v40 = vadd.f32 %v1081_v41, %v942_v29  ;;  %v1146_v46 = vadd.f32 %v1082_v17, %v943_v53  ;;  %v1147_v3 = vadd.f32 %v1083_v24, %v944_v37  ;;  %v3694_v53 = vld [vmem:[#allocation2 + $0x1c8] sm:$0xf]  ;;  %v4161_v37 = vld [vmem:[#allocation2 + $0x1d4] sm:$0xf0]  ;;  %5977 = vst [vmem:[#allocation7_spill] sm:$0xff] %v5361_v6 }
 0x160   : > { %v5345_v28 = vadd.f32 %v2192_v25, %v2144_v54  ;;  %2467 = vmatpush.bf16.msra.mxu1 %v3711_v21  ;;  %v3567_v32 = vor.u32 %v4129_v30, %v3566_v55  ;;  %v3951_v29 = vor.u32 %v4225_v63, %v3950_v27  ;;  %v3695_v11 = vor.u32 %v4161_v37, %v3694_v53  ;;  %v5981_v48 = vld [vmem:[#allocation20_spill] sm:$0xff]  ;;  %v5982_v41 = vld [vmem:[#allocation18_spill] sm:$0xff]  ;;  %v5986_v21 = vld [vmem:[#allocation21_spill] sm:$0xff] }
 0x161   : > { %v1208_v62 = vmax.f32 %v1144_v58, 0.0  ;;  %v1209_v9 = vmax.f32 %v1145_v40, 0.0  ;;  %v1210_v47 = vmax.f32 %v1146_v46, 0.0  ;;  %v1211_v23 = vmax.f32 %v1147_v3, 0.0  ;;  %v5983_v17 = vld [vmem:[#allocation24_spill] sm:$0xff] }
 0x162   : > { %5975 = vst [vmem:[#allocation5_spill] sm:$0xff] %v5345_v28  ;;  %2419 = vmatpush.bf16.msra.mxu0 %v3567_v32  ;;  %2566 = vmatpush.bf16.msra.mxu3 %v3951_v29  ;;  %v3806_v24 = vld [vmem:[#allocation2 + $0x2a8] sm:$0xf]  ;;  %v3551_v25 = vor.u32 %v4125_v44, %v3550_v10  ;;  %v4221_v58 = vld [vmem:[#allocation2 + $0x3b4] sm:$0xf0] }
 0x163   : > { %v5347_v1 = vpack.c.bf16 %v1212_v45, %v1208_v62  ;;  %v5349_v61 = vpack.c.bf16 %v1213_v4, %v1209_v9  ;;  %v5351_v31 = vpack.c.bf16 %v1214_v20, %v1210_v47  ;;  %v5353_v22 = vpack.c.bf16 %v1215_v43, %v1211_v23  ;;  %v3678_v40 = vld [vmem:[#allocation2 + $0x1a8] sm:$0xf]  ;;  %v4157_v46 = vld [vmem:[#allocation2 + $0x1b4] sm:$0xf0]  ;;  %v5985_v43 = vld [vmem:[#allocation19_spill] sm:$0xff] }
 0x164   : > { %2468 = vmatpush.bf16.msra.mxu1 %v3695_v11  ;;  %v5363_v13 = vpop.f32.mrf.mxu2  ;;  %v3807_v49 = vor.u32 %v4189_v39, %v3806_v24  ;;  %v3935_v3 = vor.u32 %v4221_v58, %v3934_v52  ;;  %v3679_v20 = vor.u32 %v4157_v46, %v3678_v40  ;;  %v5987_v62 = vld [vmem:[#allocation14_spill] sm:$0xff]  ;;  %v5988_v9 = vld [vmem:[#allocation23_spill] sm:$0xff]  ;;  %v4185_v23 = vld [vmem:[#allocation2 + $0x294] sm:$0xf0] }
 0x165   : > { %2069 = vmatmul.bf16.gmra.mxu0 %v5347_v1  ;;  %2118 = vmatmul.bf16.gmra.mxu1 %v5349_v61  ;;  %5978 = vst [vmem:[#allocation36_spill] sm:$0xff] %v5363_v13  ;;  %v5365_v50 = vpop.f32.mrf.mxu3  ;;  %v3790_v47 = vld [vmem:[#allocation2 + $0x288] sm:$0xf]  ;;  %v4121_v55 = vld [vmem:[#allocation2 + $0x94] sm:$0xf0]  ;;  %v5993_v39 = vld [vmem:[#allocation15_spill] sm:$0xff] }
 0x166   : > { %2167 = vmatmul.bf16.gmra.mxu2 %v5351_v31  ;;  %2216 = vmatmul.bf16.gmra.mxu3 %v5353_v22  ;;  %5979 = vst [vmem:[#allocation37_spill] sm:$0xff] %v5365_v50  ;;  %v3791_v42 = vor.u32 %v4185_v23, %v3790_v47  ;;  %v3918_v12 = vld [vmem:[#allocation2 + $0x388] sm:$0xf]  ;;  %v4217_v30 = vld [vmem:[#allocation2 + $0x394] sm:$0xf0]  ;;  %v3535_v27 = vor.u32 %v4121_v55, %v3534_v16 }
 0x167   : > { %2518 = vmatpush.bf16.msra.mxu2 %v3807_v49  ;;  %2420 = vmatpush.bf16.msra.mxu0 %v3551_v25  ;;  %v3919_v63 = vor.u32 %v4217_v30, %v3918_v12  ;;  %v3662_v32 = vld [vmem:[#allocation2 + $0x188] sm:$0xf]  ;;  %v4153_v29 = vld [vmem:[#allocation2 + $0x194] sm:$0xf0]  ;;  %v5995_v49 = vld [vmem:[#allocation9_spill] sm:$0xff] }
 0x168   : > { %2567 = vmatpush.bf16.msra.mxu3 %v3935_v3  ;;  %2469 = vmatpush.bf16.msra.mxu1 %v3679_v20  ;;  %v3663_v37 = vor.u32 %v4153_v29, %v3662_v32  ;;  %v3774_v44 = vld [vmem:[#allocation2 + $0x268] sm:$0xf]  ;;  %v4181_v52 = vld [vmem:[#allocation2 + $0x274] sm:$0xf0] }
 0x169   : > { %v3518_v25 = vld [vmem:[#allocation2 + $0x68] sm:$0xf]  ;;  %v3775_v40 = vor.u32 %v4181_v52, %v3774_v44  ;;  %v4117_v46 = vld [vmem:[#allocation2 + $0x74] sm:$0xf0] }
 0x16a   : > { %v3902_v3 = vld [vmem:[#allocation2 + $0x368] sm:$0xf]  ;;  %v4213_v20 = vld [vmem:[#allocation2 + $0x374] sm:$0xf0]  ;;  %v3519_v23 = vor.u32 %v4117_v46, %v3518_v25 }
 0x16b   : > { %2519 = vmatpush.bf16.msra.mxu2 %v3791_v42  ;;  %2421 = vmatpush.bf16.msra.mxu0 %v3535_v27  ;;  %v3903_v16 = vor.u32 %v4213_v20, %v3902_v3  ;;  %v3646_v42 = vld [vmem:[#allocation2 + $0x168] sm:$0xf]  ;;  %v4149_v55 = vld [vmem:[#allocation2 + $0x174] sm:$0xf0] }
 0x16c   : > { %2568 = vmatpush.bf16.msra.mxu3 %v3919_v63  ;;  %2470 = vmatpush.bf16.msra.mxu1 %v3663_v37  ;;  %v3647_v30 = vor.u32 %v4149_v55, %v3646_v42  ;;  %v5999_v63 = vld [vmem:[#allocation11_spill] sm:$0xff]  ;;  %v6000_v32 = vld [vmem:[#allocation12_spill] sm:$0xff]  ;;  %v6002_v37 = vld [vmem:[#allocation13_spill] sm:$0xff] }
 0x16d   : > { %v4113_v44 = vld [vmem:[#allocation2 + $0x54] sm:$0xf0]  ;;  %v3886_v52 = vld [vmem:[#allocation2 + $0x348] sm:$0xf] }
 0x16e   : > { %v3630_v46 = vld [vmem:[#allocation2 + $0x148] sm:$0xf]  ;;  %v4145_v3 = vld [vmem:[#allocation2 + $0x154] sm:$0xf0] }
 0x16f   : > { %v2050_v7 = vpop.f32.mrf.mxu0  ;;  %v2099_v4 = vpop.f32.mrf.mxu1  ;;  %2520 = vmatpush.bf16.msra.mxu2 %v3775_v40  ;;  %2422 = vmatpush.bf16.msra.mxu0 %v3519_v23  ;;  %v4209_v40 = vld [vmem:[#allocation2 + $0x354] sm:$0xf0]  ;;  %v3631_v23 = vor.u32 %v4145_v3, %v3630_v46  ;;  %v3742_v46 = vld [vmem:[#allocation2 + $0x228] sm:$0xf] }
 0x170   : > { %v2051_v45 = vadd.f32 %v2050_v7, %v5228_v26  ;;  %2569 = vmatpush.bf16.msra.mxu3 %v3903_v16  ;;  %2471 = vmatpush.bf16.msra.mxu1 %v3647_v30  ;;  %v4173_v3 = vld [vmem:[#allocation2 + $0x234] sm:$0xf0] }
 0x172   : > { %v2100_v36 = vadd.f32 %v2099_v4, %v2051_v45 }
 0x174   : > { %2472 = vmatpush.bf16.msra.mxu1 %v3631_v23  ;;  %v3870_v23 = vld [vmem:[#allocation2 + $0x328] sm:$0xf] }
 0x175   : > { %2230 = vmatmul.bf16.vlgmr.msrb.gmra.mxu0 %v5980_v33  ;;  %2279 = vmatmul.bf16.vlgmr.msrb.gmra.mxu1 %v5981_v48 }
 0x176   : > { %v2148_v19 = vpop.f32.mrf.mxu2  ;;  %2328 = vmatmul.bf16.vlgmr.msrb.gmra.mxu2 %v5982_v41  ;;  %2377 = vmatmul.bf16.vlgmr.msrb.gmra.mxu3 %v5983_v17  ;;  %v2197_v54 = vpop.f32.mrf.mxu3 }
 0x177   : > { %v2149_v18 = vadd.f32 %v2148_v19, %v2100_v36  ;;  %v5378_v53 = vpop.f32.mrf.mxu0  ;;  %v5380_v11 = vpop.f32.mrf.mxu1 }
 0x178   : > { %5989 = vst [vmem:[#allocation20_spill] sm:$0xff] %v5378_v53 }
 0x179   : > { %v5372_v57 = vadd.f32 %v2197_v54, %v2149_v18  ;;  %5990 = vst [vmem:[#allocation18_spill] sm:$0xff] %v5380_v11  ;;  %v5994_v18 = vld [vmem:[#allocation8_spill] sm:$0xff]  ;;  %v5996_v54 = vld [vmem:[#allocation10_spill] sm:$0xff] }
 0x17a   : > { %v4137_v11 = vld [vmem:[#allocation2 + $0x114] sm:$0xf0] }
 0x17b   : > { %5984 = vst [vmem:[#allocation17_spill] sm:$0xff] %v5372_v57 }
 0x17e   : > { %v5382_v7 = vpop.f32.mrf.mxu2  ;;  %v5384_v4 = vpop.f32.mrf.mxu3 }
 0x17f   : > { %5991 = vst [vmem:[#allocation24_spill] sm:$0xff] %v5382_v7  ;;  %v3598_v7 = vld [vmem:[#allocation2 + $0x108] sm:$0xf] }
 0x180   : > { %5992 = vst [vmem:[#allocation19_spill] sm:$0xff] %v5384_v4  ;;  %v3599_v50 = vor.u32 %v4137_v11, %v3598_v7  ;;  %v4131_v11 = vld [vmem:[#allocation2 + $0xec] sm:$0xf] }
 0x185   : > { %2235 = vmatmul.bf16.gmra.mxu0 %v5985_v43  ;;  %2284 = vmatmul.bf16.gmra.mxu1 %v5986_v21 }
 0x186   : > { %2333 = vmatmul.bf16.gmra.mxu2 %v5987_v62  ;;  %2382 = vmatmul.bf16.gmra.mxu3 %v5988_v9 }
 0x191   : > { %v2055_v45 = vpop.f32.mrf.mxu0  ;;  %v2104_v19 = vpop.f32.mrf.mxu1 }
 0x192   : > { %v2056_v36 = vadd.f32 %v2055_v45, %v5228_v26  ;;  %v6003_v45 = vld [vmem:[#allocation16_spill] sm:$0xff] }
 0x194   : > { %v2105_v24 = vadd.f32 %v2104_v19, %v2056_v36  ;;  %v3758_v36 = vld [vmem:[#allocation2 + $0x248] sm:$0xf]  ;;  %v4177_v19 = vld [vmem:[#allocation2 + $0x254] sm:$0xf0] }
 0x195   : > { %2240 = vmatmul.bf16.gmra.mxu0 %v5993_v39  ;;  %2289 = vmatmul.bf16.gmra.mxu1 %v5994_v18 }
 0x196   : > { %2338 = vmatmul.bf16.gmra.mxu2 %v5995_v49  ;;  %2387 = vmatmul.bf16.gmra.mxu3 %v5996_v54 }
 0x198   : > { %v2153_v10 = vpop.f32.mrf.mxu2  ;;  %v2202_v47 = vpop.f32.mrf.mxu3 }
 0x199   : > { %v2154_v58 = vadd.f32 %v2153_v10, %v2105_v24  ;;  %v5393_v27 = vpop.f32.mrf.mxu0  ;;  %v5397_v29 = vpop.f32.mrf.mxu1  ;;  %v3759_v24 = vor.u32 %v4177_v19, %v3758_v36  ;;  %v3502_v10 = vld [vmem:[#allocation2 + $0x48] sm:$0xf] }
 0x19a   : > { %5998 = vst [vmem:[#allocation14_spill] sm:$0xff] %v5393_v27 }
 0x19b   : > { %v5391_v12 = vadd.f32 %v2202_v47, %v2154_v58  ;;  %6001 = vst [vmem:[#allocation23_spill] sm:$0xff] %v5397_v29  ;;  %2521 = vmatpush.bf16.msra.mxu2 %v3759_v24  ;;  %v3503_v58 = vor.u32 %v4113_v44, %v3502_v10  ;;  %v3887_v47 = vor.u32 %v4209_v40, %v3886_v52  ;;  %v6007_v10 = vld [vmem:[#allocation25_spill] sm:$0xff]  ;;  %v6009_v52 = vld [vmem:[#allocation26_spill] sm:$0xff]  ;;  %v6010_v40 = vld [vmem:[#allocation27_spill] sm:$0xff] }
 0x19d   : > { %5997 = vst [vmem:[#allocation21_spill] sm:$0xff] %v5391_v12  ;;  %2423 = vmatpush.bf16.msra.mxu0 %v3503_v58  ;;  %2570 = vmatpush.bf16.msra.mxu3 %v3887_v47  ;;  %v6006_v12 = vld [vmem:[#allocation22_spill] sm:$0xff]  ;;  %v4109_v47 = vld [vmem:[#allocation2 + $0x34] sm:$0xf0] }
 0x19e   : > { %v3486_v58 = vld [vmem:[#allocation2 + $0x28] sm:$0xf] }
 0x1a0   : > { %v5401_v25 = vpop.f32.mrf.mxu2  ;;  %v5403_v16 = vpop.f32.mrf.mxu3 }
 0x1a1   : > { %6004 = vst [vmem:[#allocation15_spill] sm:$0xff] %v5401_v25 }
 0x1a2   : > { %6005 = vst [vmem:[#allocation8_spill] sm:$0xff] %v5403_v16  ;;  %v4141_v16 = vld [vmem:[#allocation2 + $0x134] sm:$0xf0] }
 0x1a5   : > { %2245 = vmatmul.bf16.gmra.mxu0 %v5999_v63  ;;  %2294 = vmatmul.bf16.gmra.mxu1 %v6000_v32 }
 0x1a6   : > { %2343 = vmatmul.bf16.gmra.mxu2 %v6002_v37  ;;  %2392 = vmatmul.bf16.gmra.mxu3 %v6003_v45 }
 0x1ac   : > { %v2060_v20 = vpop.f32.mrf.mxu0  ;;  %v2109_v55 = vpop.f32.mrf.mxu1 }
 0x1ad   : > { %v2061_v42 = vadd.f32 %v2060_v20, %v5228_v26  ;;  %v3743_v20 = vor.u32 %v4173_v3, %v3742_v46  ;;  %v6016_v3 = vld [vmem:[#allocation30_spill] sm:$0xff] }
 0x1af   : > { %v2110_v30 = vadd.f32 %v2109_v55, %v2061_v42  ;;  %v4205_v42 = vld [vmem:[#allocation2 + $0x334] sm:$0xf0]  ;;  %v3487_v55 = vor.u32 %v4109_v47, %v3486_v58  ;;  %2522 = vmatpush.bf16.msra.mxu2 %v3743_v20  ;;  %v6017_v58 = vld [vmem:[#allocation31_spill] sm:$0xff]  ;;  %v3726_v47 = vld [vmem:[#allocation2 + $0x208] sm:$0xf] }
 0x1b0   : > { %v4169_v20 = vld [vmem:[#allocation2 + $0x214] sm:$0xf0] }
 0x1b1   : > { %2424 = vmatpush.bf16.msra.mxu0 %v3487_v55  ;;  %v3727_v55 = vor.u32 %v4169_v20, %v3726_v47 }
 0x1b3   : > { %2523 = vmatpush.bf16.msra.mxu2 %v3727_v55 }
 0x1b4   : > { %v2158_v36 = vpop.f32.mrf.mxu2  ;;  %v2207_v24 = vpop.f32.mrf.mxu3 }
 0x1b5   : > { %v2159_v19 = vadd.f32 %v2158_v36, %v2110_v30  ;;  %2250 = vmatmul.bf16.gmra.mxu0 %v6006_v12  ;;  %2299 = vmatmul.bf16.gmra.mxu1 %v6007_v10  ;;  %v3871_v30 = vor.u32 %v4205_v42, %v3870_v23  ;;  %v3614_v36 = vld [vmem:[#allocation2 + $0x128] sm:$0xf]  ;;  %v5412_v29 = vpop.f32.mrf.mxu0 }
 0x1b6   : > { %2348 = vmatmul.bf16.gmra.mxu2 %v6009_v52  ;;  %2397 = vmatmul.bf16.gmra.mxu3 %v6010_v40  ;;  %v3615_v25 = vor.u32 %v4141_v16, %v3614_v36  ;;  %6011 = vst [vmem:[#allocation10_spill] sm:$0xff] %v5412_v29  ;;  %v3470_v16 = vld [vmem:[#allocation2 + $0x8] sm:$0xf]  ;;  %v4201_v36 = vld [vmem:[#allocation2 + $0x314] sm:$0xf0] }
 0x1b7   : > { %v5408_v44 = vadd.f32 %v2207_v24, %v2159_v19  ;;  %2571 = vmatpush.bf16.msra.mxu3 %v3871_v30  ;;  %v5414_v19 = vpop.f32.mrf.mxu1  ;;  %v6013_v24 = vld [vmem:[#allocation28_spill] sm:$0xff]  ;;  %v3854_v30 = vld [vmem:[#allocation2 + $0x308] sm:$0xf] }
 0x1b8   : > { %2473 = vmatpush.bf16.msra.mxu1 %v3615_v25  ;;  %6012 = vst [vmem:[#allocation11_spill] sm:$0xff] %v5414_v19  ;;  %v4105_v25 = vld [vmem:[#allocation2 + $0x14] sm:$0xf0]  ;;  %v3855_v27 = vor.u32 %v4201_v36, %v3854_v30  ;;  %v4163_v30 = vld [vmem:[#allocation2 + $0x1ec] sm:$0xf] }
 0x1b9   : > { %6008 = vst [vmem:[#allocation9_spill] sm:$0xff] %v5408_v44  ;;  %v6014_v44 = vld [vmem:[#allocation29_spill] sm:$0xff]  ;;  %v3471_v29 = vor.u32 %v4105_v25, %v3470_v16  ;;  %v3712_v36 = vld [vmem:[#allocation2 + $0x1f8] sm:$0xf0] }
 0x1bb   : > { %2425 = vmatpush.bf16.msra.mxu0 %v3471_v29  ;;  %2572 = vmatpush.bf16.msra.mxu3 %v3855_v27  ;;  %v4195_v27 = vld [vmem:[#allocation2 + $0x2ec] sm:$0xf] }
 0x1bc   : > { %v5418_v46 = vpop.f32.mrf.mxu2  ;;  %v5422_v23 = vpop.f32.mrf.mxu3  ;;  %2474 = vmatpush.bf16.msra.mxu1 %v3599_v50 }
 0x1bd   : > { %6015 = vst [vmem:[#allocation12_spill] sm:$0xff] %v5418_v46 }
 0x1be   : > { %6018 = vst [vmem:[#allocation13_spill] sm:$0xff] %v5422_v23 }
 0x1c5   : > { %2255 = vmatmul.bf16.gmra.mxu0 %v6013_v24  ;;  %2304 = vmatmul.bf16.gmra.mxu1 %v6014_v44 }
 0x1c6   : > { %2353 = vmatmul.bf16.gmra.mxu2 %v6016_v3  ;;  %2402 = vmatmul.bf16.gmra.mxu3 %v6017_v58 }
 0x1c7   : > { %v2065_v42 = vpop.f32.mrf.mxu0  ;;  %v2114_v57 = vpop.f32.mrf.mxu1 }
 0x1c8   : > { %v2066_v19 = vadd.f32 %v2065_v42, %v5228_v26 }
 0x1ca   : > { %v2115_v46 = vadd.f32 %v2114_v57, %v2066_v19 }
 0x1ce   : > { %v2163_v4 = vpop.f32.mrf.mxu2  ;;  %v2212_v28 = vpop.f32.mrf.mxu3 }
 0x1cf   : > { %v2164_v53 = vadd.f32 %v2163_v4, %v2115_v46  ;;  %v2067_v23 = vpop.f32.mrf.mxu0  ;;  %v2116_v13 = vpop.f32.mrf.mxu1  ;;  %v3840_v4 = vld [vmem:[#allocation2 + $0x2f8] sm:$0xf0] }
 0x1d0   : > { %v2068_v20 = vadd.f32 %v2067_v23, %v5228_v26  ;;  %v3843_v19 = vor.u32 %v4195_v27, %v3840_v4  ;;  %v3968_v46 = vld [vmem:[#allocation2 + $0x3f8] sm:$0xf0] }
 0x1d1   : > { %v2213_v47 = vadd.f32 %v2212_v28, %v2164_v53  ;;  %v3584_v28 = vld [vmem:[#allocation2 + $0xf8] sm:$0xf0]  ;;  %v4227_v53 = vld [vmem:[#allocation2 + $0x3ec] sm:$0xf] }
 0x1d2   : > { %v2117_v42 = vadd.f32 %v2116_v13, %v2068_v20  ;;  %v3587_v50 = vor.u32 %v4131_v11, %v3584_v28  ;;  %2712 = vmatpush.bf16.msrb.mxu2 %v3843_v19  ;;  %v3971_v16 = vor.u32 %v4227_v53, %v3968_v46  ;;  %v3715_v20 = vor.u32 %v4163_v30, %v3712_v36  ;;  %v4127_v19 = vld [vmem:[#allocation2 + $0xcc] sm:$0xf]  ;;  %v3952_v46 = vld [vmem:[#allocation2 + $0x3d8] sm:$0xf0] }
 0x1d3   : > { %v2858_v23 = vmax.f32 %v2213_v47, 0.0  ;;  %v4191_v47 = vld [vmem:[#allocation2 + $0x2cc] sm:$0xf] }
 0x1d4   : > { %2614 = vmatpush.bf16.msrb.mxu0 %v3587_v50  ;;  %2761 = vmatpush.bf16.msrb.mxu3 %v3971_v16  ;;  %v4223_v50 = vld [vmem:[#allocation2 + $0x3cc] sm:$0xf] }
 0x1d5   : > { %2260 = vmatmul.bf16.gmra.mxu0 %v5281_v0  ;;  %2309 = vmatmul.bf16.gmra.mxu1 %v5283_v38  ;;  %v3955_v30 = vor.u32 %v4223_v50, %v3952_v46 }
 0x1d6   : > { %v2165_v57 = vpop.f32.mrf.mxu2  ;;  %2358 = vmatmul.bf16.gmra.mxu2 %v5285_v35  ;;  %2407 = vmatmul.bf16.gmra.mxu3 %v5287_v34  ;;  %v2214_v7 = vpop.f32.mrf.mxu3 }
 0x1d7   : > { %v2166_v29 = vadd.f32 %v2165_v57, %v2117_v42  ;;  %2663 = vmatpush.bf16.msrb.mxu1 %v3715_v20 }
 0x1d8   : > { %2762 = vmatpush.bf16.msrb.mxu3 %v3955_v30  ;;  %v4219_v30 = vld [vmem:[#allocation2 + $0x3ac] sm:$0xf] }
 0x1d9   : > { %v2215_v13 = vadd.f32 %v2214_v7, %v2166_v29  ;;  %v3824_v29 = vld [vmem:[#allocation2 + $0x2d8] sm:$0xf0] }
 0x1da   : > { %v3827_v53 = vor.u32 %v4191_v47, %v3824_v29  ;;  %v3568_v7 = vld [vmem:[#allocation2 + $0xd8] sm:$0xf0] }
 0x1db   : > { %v2862_v55 = vmax.f32 %v2215_v13, 0.0 }
 0x1dc   : > { %2713 = vmatpush.bf16.msrb.mxu2 %v3827_v53 }
 0x1dd   : > { %v5430_v25 = vpack.c.bf16 %v2862_v55, %v2858_v23  ;;  %v3571_v55 = vor.u32 %v4127_v19, %v3568_v7 }
 0x1df   : > { %6019 = vst [vmem:[#allocation16_spill] sm:$0xff] %v5430_v25  ;;  %2615 = vmatpush.bf16.msrb.mxu0 %v3571_v55  ;;  %v6020_v25 = vld [vmem:[#allocation32_spill] sm:$0xff] }
 0x1e0   : > { %v5439_v6 = vperm.slane %v6020_v25, 1  ;;  %v4187_v25 = vld [vmem:[#allocation2 + $0x2ac] sm:$0xf]  ;;  %v3552_v55 = vld [vmem:[#allocation2 + $0xb8] sm:$0xf0] }
 0x1e2   : > { %v2070_v42 = vpop.f32.mrf.mxu0  ;;  %v2119_v57 = vpop.f32.mrf.mxu1 }
 0x1e3   : > { %v2071_v27 = vadd.f32 %v2070_v42, %v5228_v26 }
 0x1e5   : > { %v2120_v4 = vadd.f32 %v2119_v57, %v2071_v27  ;;  %2265 = vmatmul.bf16.gmra.mxu0 %v5347_v1  ;;  %2314 = vmatmul.bf16.gmra.mxu1 %v5349_v61  ;;  %v4159_v57 = vld [vmem:[#allocation2 + $0x1cc] sm:$0xf]  ;;  %v3696_v27 = vld [vmem:[#allocation2 + $0x1d8] sm:$0xf0] }
 0x1e6   : > { %2363 = vmatmul.bf16.gmra.mxu2 %v5351_v31  ;;  %2412 = vmatmul.bf16.gmra.mxu3 %v5353_v22  ;;  %v3699_v47 = vor.u32 %v4159_v57, %v3696_v27 }
 0x1e8   : > { %2664 = vmatpush.bf16.msrb.mxu1 %v3699_v47 }
 0x1e9   : > { %v2168_v11 = vpop.f32.mrf.mxu2  ;;  %v2217_v28 = vpop.f32.mrf.mxu3 }
 0x1ea   : > { %v2169_v13 = vadd.f32 %v2168_v11, %v2120_v4  ;;  %v2072_v16 = vpop.f32.mrf.mxu0  ;;  %v2121_v23 = vpop.f32.mrf.mxu1 }
 0x1eb   : > { %v2073_v36 = vadd.f32 %v2072_v16, %v5228_v26 }
 0x1ec   : > { %v2218_v20 = vadd.f32 %v2217_v28, %v2169_v13  ;;  %v3808_v13 = vld [vmem:[#allocation2 + $0x2b8] sm:$0xf0] }
 0x1ed   : > { %v2122_v42 = vadd.f32 %v2121_v23, %v2073_v36  ;;  %v3811_v16 = vor.u32 %v4187_v25, %v3808_v13  ;;  %v4123_v23 = vld [vmem:[#allocation2 + $0xac] sm:$0xf]  ;;  %v3680_v25 = vld [vmem:[#allocation2 + $0x1b8] sm:$0xf0] }
 0x1ee   : > { %v2866_v28 = vmax.f32 %v2218_v20, 0.0  ;;  %v3555_v36 = vor.u32 %v4123_v23, %v3552_v55 }
 0x1ef   : > { %2714 = vmatpush.bf16.msrb.mxu2 %v3811_v16 }
 0x1f0   : > { %2616 = vmatpush.bf16.msrb.mxu0 %v3555_v36 }
 0x1f1   : > { %v2170_v29 = vpop.f32.mrf.mxu2  ;;  %v2219_v2 = vpop.f32.mrf.mxu3 }
 0x1f2   : > { %v2171_v4 = vadd.f32 %v2170_v29, %v2122_v42  ;;  %v2231_v11 = vpop.f32.mrf.mxu0  ;;  %v2280_v19 = vpop.f32.mrf.mxu1  ;;  %v3936_v42 = vld [vmem:[#allocation2 + $0x3b8] sm:$0xf0] }
 0x1f3   : > { %v2232_v7 = vadd.f32 %v2231_v11, %v5439_v6  ;;  %v3939_v47 = vor.u32 %v4219_v30, %v3936_v42 }
 0x1f4   : > { %v2220_v50 = vadd.f32 %v2219_v2, %v2171_v4 }
 0x1f5   : > { %v2281_v53 = vadd.f32 %v2280_v19, %v2232_v7  ;;  %2426 = vmatmul.bf16.vlgmr.msra.gmra.mxu0 %v5980_v33  ;;  %2475 = vmatmul.bf16.vlgmr.msra.gmra.mxu1 %v5981_v48 }
 0x1f6   : > { %v2870_v46 = vmax.f32 %v2220_v50, 0.0  ;;  %2524 = vmatmul.bf16.vlgmr.msra.gmra.mxu2 %v5982_v41  ;;  %2573 = vmatmul.bf16.vlgmr.msra.gmra.mxu3 %v5983_v17  ;;  %v4155_v50 = vld [vmem:[#allocation2 + $0x1ac] sm:$0xf] }
 0x1f7   : > { %2763 = vmatpush.bf16.msrb.mxu3 %v3939_v47  ;;  %v3683_v13 = vor.u32 %v4155_v50, %v3680_v25 }
 0x1f8   : > { %v5446_v2 = vpack.c.bf16 %v2870_v46, %v2866_v28 }
 0x1f9   : > { %v2329_v57 = vpop.f32.mrf.mxu2  ;;  %v2378_v27 = vpop.f32.mrf.mxu3  ;;  %2665 = vmatpush.bf16.msrb.mxu1 %v3683_v13 }
 0x1fa   : > { %6021 = vst [vmem:[#allocation22_spill] sm:$0xff] %v5446_v2  ;;  %v2330_v20 = vadd.f32 %v2329_v57, %v2281_v53  ;;  %v2233_v29 = vpop.f32.mrf.mxu0  ;;  %v2282_v4 = vpop.f32.mrf.mxu1  ;;  %v4183_v57 = vld [vmem:[#allocation2 + $0x28c] sm:$0xf] }
 0x1fb   : > { %v2234_v11 = vadd.f32 %v2233_v29, %v5439_v6  ;;  %v3536_v29 = vld [vmem:[#allocation2 + $0x98] sm:$0xf0] }
 0x1fc   : > { %v2379_v19 = vadd.f32 %v2378_v27, %v2330_v20  ;;  %v3792_v27 = vld [vmem:[#allocation2 + $0x298] sm:$0xf0]  ;;  %v4119_v20 = vld [vmem:[#allocation2 + $0x8c] sm:$0xf] }
 0x1fd   : > { %v2283_v7 = vadd.f32 %v2282_v4, %v2234_v11  ;;  %v3795_v47 = vor.u32 %v4183_v57, %v3792_v27  ;;  %v4215_v4 = vld [vmem:[#allocation2 + $0x38c] sm:$0xf]  ;;  %v3664_v57 = vld [vmem:[#allocation2 + $0x198] sm:$0xf0] }
 0x1fe   : > { %v2811_v36 = vmax.f32 %v2379_v19, 0.0 }
 0x1ff   : > { %2715 = vmatpush.bf16.msrb.mxu2 %v3795_v47 }
 0x201   : > { %v2331_v23 = vpop.f32.mrf.mxu2  ;;  %v2380_v55 = vpop.f32.mrf.mxu3 }
 0x202   : > { %v2332_v28 = vadd.f32 %v2331_v23, %v2283_v7  ;;  %v2236_v46 = vpop.f32.mrf.mxu0  ;;  %v2285_v2 = vpop.f32.mrf.mxu1  ;;  %v3539_v7 = vor.u32 %v4119_v20, %v3536_v29 }
 0x203   : > { %v2237_v16 = vadd.f32 %v2236_v46, %v5439_v6 }
 0x204   : > { %v2381_v53 = vadd.f32 %v2380_v55, %v2332_v28  ;;  %2617 = vmatpush.bf16.msrb.mxu0 %v3539_v7 }
 0x205   : > { %v2286_v30 = vadd.f32 %v2285_v2, %v2237_v16  ;;  %2431 = vmatmul.bf16.gmra.mxu0 %v5985_v43  ;;  %2480 = vmatmul.bf16.gmra.mxu1 %v5986_v21  ;;  %v3920_v2 = vld [vmem:[#allocation2 + $0x398] sm:$0xf0] }
 0x206   : > { %v2815_v42 = vmax.f32 %v2381_v53, 0.0  ;;  %2529 = vmatmul.bf16.gmra.mxu2 %v5987_v62  ;;  %2578 = vmatmul.bf16.gmra.mxu3 %v5988_v9  ;;  %v3923_v13 = vor.u32 %v4215_v4, %v3920_v2  ;;  %v4151_v53 = vld [vmem:[#allocation2 + $0x18c] sm:$0xf] }
 0x207   : > { %v3667_v27 = vor.u32 %v4151_v53, %v3664_v57 }
 0x208   : > { %v5454_v11 = vpack.c.bf16 %v2815_v42, %v2811_v36  ;;  %2764 = vmatpush.bf16.msrb.mxu3 %v3923_v13 }
 0x209   : > { %v2334_v50 = vpop.f32.mrf.mxu2  ;;  %v2383_v25 = vpop.f32.mrf.mxu3  ;;  %2666 = vmatpush.bf16.msrb.mxu1 %v3667_v27 }
 0x20a   : > { %v2335_v19 = vadd.f32 %v2334_v50, %v2286_v30  ;;  %v2238_v23 = vpop.f32.mrf.mxu0  ;;  %v2287_v55 = vpop.f32.mrf.mxu1  ;;  %v4179_v50 = vld [vmem:[#allocation2 + $0x26c] sm:$0xf] }
 0x20b   : > { %v2239_v28 = vadd.f32 %v2238_v23, %v5439_v6  ;;  %v3520_v23 = vld [vmem:[#allocation2 + $0x78] sm:$0xf0] }
 0x20c   : > { %v2384_v46 = vadd.f32 %v2383_v25, %v2335_v19  ;;  %v3776_v25 = vld [vmem:[#allocation2 + $0x278] sm:$0xf0]  ;;  %v4115_v19 = vld [vmem:[#allocation2 + $0x6c] sm:$0xf] }
 0x20d   : > { %v2288_v16 = vadd.f32 %v2287_v55, %v2239_v28  ;;  %v3779_v13 = vor.u32 %v4179_v50, %v3776_v25  ;;  %v4211_v55 = vld [vmem:[#allocation2 + $0x36c] sm:$0xf]  ;;  %v3523_v28 = vor.u32 %v4115_v19, %v3520_v23  ;;  %v3648_v50 = vld [vmem:[#allocation2 + $0x178] sm:$0xf0] }
 0x20e   : > { %v2819_v7 = vmax.f32 %v2384_v46, 0.0 }
 0x20f   : > { %2716 = vmatpush.bf16.msrb.mxu2 %v3779_v13  ;;  %2618 = vmatpush.bf16.msrb.mxu0 %v3523_v28 }
 0x211   : > { %v2336_v36 = vpop.f32.mrf.mxu2  ;;  %v2385_v42 = vpop.f32.mrf.mxu3 }
 0x212   : > { %v2337_v20 = vadd.f32 %v2336_v36, %v2288_v16  ;;  %v2241_v29 = vpop.f32.mrf.mxu0  ;;  %v2290_v14 = vpop.f32.mrf.mxu1  ;;  %v3904_v16 = vld [vmem:[#allocation2 + $0x378] sm:$0xf0] }
 0x213   : > { %v2242_v47 = vadd.f32 %v2241_v29, %v5439_v6  ;;  %v3907_v27 = vor.u32 %v4211_v55, %v3904_v16 }
 0x214   : > { %v2386_v30 = vadd.f32 %v2385_v42, %v2337_v20 }
 0x215   : > { %v2291_v4 = vadd.f32 %v2290_v14, %v2242_v47  ;;  %2436 = vmatmul.bf16.gmra.mxu0 %v5993_v39  ;;  %2485 = vmatmul.bf16.gmra.mxu1 %v5994_v18 }
 0x216   : > { %v2823_v2 = vmax.f32 %v2386_v30, 0.0  ;;  %2534 = vmatmul.bf16.gmra.mxu2 %v5995_v49  ;;  %2583 = vmatmul.bf16.gmra.mxu3 %v5996_v54  ;;  %v4147_v30 = vld [vmem:[#allocation2 + $0x16c] sm:$0xf] }
 0x217   : > { %2765 = vmatpush.bf16.msrb.mxu3 %v3907_v27  ;;  %v3651_v25 = vor.u32 %v4147_v30, %v3648_v50 }
 0x218   : > { %v5462_v53 = vpack.c.bf16 %v2823_v2, %v2819_v7 }
 0x219   : > { %v2339_v14 = vpop.f32.mrf.mxu2  ;;  %v2388_v57 = vpop.f32.mrf.mxu3  ;;  %2667 = vmatpush.bf16.msrb.mxu1 %v3651_v25 }
 0x21a   : > { %6022 = vst [vmem:[#allocation25_spill] sm:$0xff] %v5462_v53  ;;  %v2340_v46 = vadd.f32 %v2339_v14, %v2291_v4  ;;  %v2243_v36 = vpop.f32.mrf.mxu0  ;;  %v2292_v42 = vpop.f32.mrf.mxu1  ;;  %v4175_v14 = vld [vmem:[#allocation2 + $0x24c] sm:$0xf] }
 0x21b   : > { %v2244_v20 = vadd.f32 %v2243_v36, %v5439_v6  ;;  %v3504_v36 = vld [vmem:[#allocation2 + $0x58] sm:$0xf0] }
 0x21c   : > { %v2389_v29 = vadd.f32 %v2388_v57, %v2340_v46  ;;  %v3760_v57 = vld [vmem:[#allocation2 + $0x258] sm:$0xf0]  ;;  %v4111_v46 = vld [vmem:[#allocation2 + $0x4c] sm:$0xf] }
 0x21d   : > { %v2293_v47 = vadd.f32 %v2292_v42, %v2244_v20  ;;  %v3763_v27 = vor.u32 %v4175_v14, %v3760_v57  ;;  %v4207_v42 = vld [vmem:[#allocation2 + $0x34c] sm:$0xf]  ;;  %v3507_v20 = vor.u32 %v4111_v46, %v3504_v36  ;;  %v3632_v14 = vld [vmem:[#allocation2 + $0x158] sm:$0xf0] }
 0x21e   : > { %v2827_v28 = vmax.f32 %v2389_v29, 0.0 }
 0x21f   : > { %2717 = vmatpush.bf16.msrb.mxu2 %v3763_v27  ;;  %2619 = vmatpush.bf16.msrb.mxu0 %v3507_v20 }
 0x221   : > { %v2341_v19 = vpop.f32.mrf.mxu2  ;;  %v2390_v23 = vpop.f32.mrf.mxu3 }
 0x222   : > { %v2342_v7 = vadd.f32 %v2341_v19, %v2293_v47  ;;  %v2246_v2 = vpop.f32.mrf.mxu0  ;;  %v2295_v53 = vpop.f32.mrf.mxu1  ;;  %v3888_v47 = vld [vmem:[#allocation2 + $0x358] sm:$0xf0] }
 0x223   : > { %v2247_v13 = vadd.f32 %v2246_v2, %v5439_v6  ;;  %v3891_v25 = vor.u32 %v4207_v42, %v3888_v47 }
 0x224   : > { %v2391_v4 = vadd.f32 %v2390_v23, %v2342_v7 }
 0x225   : > { %v2296_v55 = vadd.f32 %v2295_v53, %v2247_v13  ;;  %2441 = vmatmul.bf16.gmra.mxu0 %v5999_v63  ;;  %2490 = vmatmul.bf16.gmra.mxu1 %v6000_v32 }
 0x226   : > { %v2831_v16 = vmax.f32 %v2391_v4, 0.0  ;;  %2539 = vmatmul.bf16.gmra.mxu2 %v6002_v37  ;;  %2588 = vmatmul.bf16.gmra.mxu3 %v6003_v45  ;;  %v4143_v4 = vld [vmem:[#allocation2 + $0x14c] sm:$0xf] }
 0x227   : > { %2766 = vmatpush.bf16.msrb.mxu3 %v3891_v25  ;;  %v3635_v57 = vor.u32 %v4143_v4, %v3632_v14 }
 0x228   : > { %v5470_v30 = vpack.c.bf16 %v2831_v16, %v2827_v28 }
 0x229   : > { %v2344_v53 = vpop.f32.mrf.mxu2  ;;  %v2393_v50 = vpop.f32.mrf.mxu3  ;;  %2668 = vmatpush.bf16.msrb.mxu1 %v3635_v57 }
 0x22a   : > { %6023 = vst [vmem:[#allocation26_spill] sm:$0xff] %v5470_v30  ;;  %v2345_v29 = vadd.f32 %v2344_v53, %v2296_v55  ;;  %v2248_v19 = vpop.f32.mrf.mxu0  ;;  %v2297_v23 = vpop.f32.mrf.mxu1  ;;  %v4171_v53 = vld [vmem:[#allocation2 + $0x22c] sm:$0xf] }
 0x22b   : > { %v2249_v7 = vadd.f32 %v2248_v19, %v5439_v6  ;;  %v3488_v19 = vld [vmem:[#allocation2 + $0x38] sm:$0xf0] }
 0x22c   : > { %v2394_v2 = vadd.f32 %v2393_v50, %v2345_v29  ;;  %v3744_v50 = vld [vmem:[#allocation2 + $0x238] sm:$0xf0]  ;;  %v4107_v29 = vld [vmem:[#allocation2 + $0x2c] sm:$0xf] }
 0x22d   : > { %v2298_v13 = vadd.f32 %v2297_v23, %v2249_v7  ;;  %v3747_v25 = vor.u32 %v4171_v53, %v3744_v50  ;;  %v4203_v23 = vld [vmem:[#allocation2 + $0x32c] sm:$0xf]  ;;  %v3491_v7 = vor.u32 %v4107_v29, %v3488_v19  ;;  %v3616_v53 = vld [vmem:[#allocation2 + $0x138] sm:$0xf0] }
 0x22e   : > { %v2835_v20 = vmax.f32 %v2394_v2, 0.0 }
 0x22f   : > { %2718 = vmatpush.bf16.msrb.mxu2 %v3747_v25  ;;  %2620 = vmatpush.bf16.msrb.mxu0 %v3491_v7 }
 0x231   : > { %v2346_v46 = vpop.f32.mrf.mxu2  ;;  %v2395_v36 = vpop.f32.mrf.mxu3 }
 0x232   : > { %v2347_v28 = vadd.f32 %v2346_v46, %v2298_v13  ;;  %v2251_v16 = vpop.f32.mrf.mxu0  ;;  %v2300_v30 = vpop.f32.mrf.mxu1  ;;  %v3872_v13 = vld [vmem:[#allocation2 + $0x338] sm:$0xf0] }
 0x233   : > { %v2252_v27 = vadd.f32 %v2251_v16, %v5439_v6  ;;  %v3875_v57 = vor.u32 %v4203_v23, %v3872_v13 }
 0x234   : > { %v2396_v55 = vadd.f32 %v2395_v36, %v2347_v28 }
 0x235   : > { %v2301_v42 = vadd.f32 %v2300_v30, %v2252_v27  ;;  %2446 = vmatmul.bf16.gmra.mxu0 %v6006_v12  ;;  %2495 = vmatmul.bf16.gmra.mxu1 %v6007_v10 }
 0x236   : > { %v2839_v47 = vmax.f32 %v2396_v55, 0.0  ;;  %2544 = vmatmul.bf16.gmra.mxu2 %v6009_v52  ;;  %2593 = vmatmul.bf16.gmra.mxu3 %v6010_v40  ;;  %v4139_v55 = vld [vmem:[#allocation2 + $0x12c] sm:$0xf] }
 0x237   : > { %2767 = vmatpush.bf16.msrb.mxu3 %v3875_v57  ;;  %v3619_v50 = vor.u32 %v4139_v55, %v3616_v53 }
 0x238   : > { %v5478_v4 = vpack.c.bf16 %v2839_v47, %v2835_v20 }
 0x239   : > { %v2349_v30 = vpop.f32.mrf.mxu2  ;;  %v2398_v14 = vpop.f32.mrf.mxu3  ;;  %2669 = vmatpush.bf16.msrb.mxu1 %v3619_v50 }
 0x23a   : > { %6024 = vst [vmem:[#allocation27_spill] sm:$0xff] %v5478_v4  ;;  %v2350_v2 = vadd.f32 %v2349_v30, %v2301_v42  ;;  %v2253_v46 = vpop.f32.mrf.mxu0  ;;  %v2302_v36 = vpop.f32.mrf.mxu1  ;;  %v4167_v30 = vld [vmem:[#allocation2 + $0x20c] sm:$0xf] }
 0x23b   : > { %v2254_v28 = vadd.f32 %v2253_v46, %v5439_v6  ;;  %v3472_v46 = vld [vmem:[#allocation2 + $0x18] sm:$0xf0] }
 0x23c   : > { %v2399_v16 = vadd.f32 %v2398_v14, %v2350_v2  ;;  %v3728_v14 = vld [vmem:[#allocation2 + $0x218] sm:$0xf0]  ;;  %v4103_v2 = vld [vmem:[#allocation2 + $0xc] sm:$0xf] }
 0x23d   : > { %v2303_v27 = vadd.f32 %v2302_v36, %v2254_v28  ;;  %v3731_v57 = vor.u32 %v4167_v30, %v3728_v14  ;;  %v4199_v36 = vld [vmem:[#allocation2 + $0x30c] sm:$0xf]  ;;  %v3475_v28 = vor.u32 %v4103_v2, %v3472_v46  ;;  %v3600_v30 = vld [vmem:[#allocation2 + $0x118] sm:$0xf0] }
 0x23e   : > { %v2843_v7 = vmax.f32 %v2399_v16, 0.0 }
 0x23f   : > { %2719 = vmatpush.bf16.msrb.mxu2 %v3731_v57  ;;  %2621 = vmatpush.bf16.msrb.mxu0 %v3475_v28 }
 0x241   : > { %v2351_v29 = vpop.f32.mrf.mxu2  ;;  %v2400_v19 = vpop.f32.mrf.mxu3 }
 0x242   : > { %v2352_v20 = vadd.f32 %v2351_v29, %v2303_v27  ;;  %v2256_v47 = vpop.f32.mrf.mxu0  ;;  %v2305_v4 = vpop.f32.mrf.mxu1  ;;  %v3856_v27 = vld [vmem:[#allocation2 + $0x318] sm:$0xf0] }
 0x243   : > { %v2257_v25 = vadd.f32 %v2256_v47, %v5439_v6  ;;  %v3859_v50 = vor.u32 %v4199_v36, %v3856_v27 }
 0x244   : > { %v2401_v42 = vadd.f32 %v2400_v19, %v2352_v20 }
 0x245   : > { %v2306_v23 = vadd.f32 %v2305_v4, %v2257_v25  ;;  %2451 = vmatmul.bf16.gmra.mxu0 %v6013_v24  ;;  %2500 = vmatmul.bf16.gmra.mxu1 %v6014_v44 }
 0x246   : > { %v2847_v13 = vmax.f32 %v2401_v42, 0.0  ;;  %2549 = vmatmul.bf16.gmra.mxu2 %v6016_v3  ;;  %2598 = vmatmul.bf16.gmra.mxu3 %v6017_v58  ;;  %v4135_v42 = vld [vmem:[#allocation2 + $0x10c] sm:$0xf] }
 0x247   : > { %2768 = vmatpush.bf16.msrb.mxu3 %v3859_v50  ;;  %v3603_v14 = vor.u32 %v4135_v42, %v3600_v30 }
 0x248   : > { %v5486_v55 = vpack.c.bf16 %v2847_v13, %v2843_v7 }
 0x249   : > { %v2354_v4 = vpop.f32.mrf.mxu2  ;;  %v2403_v53 = vpop.f32.mrf.mxu3  ;;  %2670 = vmatpush.bf16.msrb.mxu1 %v3603_v14 }
 0x24a   : > { %6025 = vst [vmem:[#allocation28_spill] sm:$0xff] %v5486_v55  ;;  %v2355_v16 = vadd.f32 %v2354_v4, %v2306_v23  ;;  %v2258_v29 = vpop.f32.mrf.mxu0  ;;  %v2307_v19 = vpop.f32.mrf.mxu1 }
 0x24b   : > { %v2259_v20 = vadd.f32 %v2258_v29, %v5439_v6 }
 0x24c   : > { %v2404_v47 = vadd.f32 %v2403_v53, %v2355_v16 }
 0x24d   : > { %v2308_v25 = vadd.f32 %v2307_v19, %v2259_v20 }
 0x24e   : > { %v2851_v28 = vmax.f32 %v2404_v47, 0.0 }
 0x251   : > { %v2356_v2 = vpop.f32.mrf.mxu2  ;;  %v2405_v46 = vpop.f32.mrf.mxu3 }
 0x252   : > { %v2357_v7 = vadd.f32 %v2356_v2, %v2308_v25  ;;  %v2261_v13 = vpop.f32.mrf.mxu0  ;;  %v2310_v55 = vpop.f32.mrf.mxu1 }
 0x253   : > { %v2262_v57 = vadd.f32 %v2261_v13, %v5439_v6 }
 0x254   : > { %v2406_v23 = vadd.f32 %v2405_v46, %v2357_v7 }
 0x255   : > { %v2311_v36 = vadd.f32 %v2310_v55, %v2262_v57  ;;  %2456 = vmatmul.bf16.gmra.mxu0 %v5281_v0  ;;  %2505 = vmatmul.bf16.gmra.mxu1 %v5283_v38 }
 0x256   : > { %v2855_v27 = vmax.f32 %v2406_v23, 0.0  ;;  %2554 = vmatmul.bf16.gmra.mxu2 %v5285_v35  ;;  %2603 = vmatmul.bf16.gmra.mxu3 %v5287_v34 }
 0x258   : > { %v5494_v4 = vpack.c.bf16 %v2855_v27, %v2851_v28 }
 0x259   : > { %v2359_v53 = vpop.f32.mrf.mxu2  ;;  %v2408_v50 = vpop.f32.mrf.mxu3 }
 0x25a   : > { %v2360_v16 = vadd.f32 %v2359_v53, %v2311_v36  ;;  %v2263_v29 = vpop.f32.mrf.mxu0  ;;  %v2312_v19 = vpop.f32.mrf.mxu1  ;;  %v4253_v36 = vld [vmem:[%s5800_s5 + $0xb8] sm:$0xff] }
 0x25b   : > { %v2264_v20 = vadd.f32 %v2263_v29, %v5439_v6  ;;  %3264 = vmatpush.bf16.msra.mxu2 %v4253_v36 }
 0x25c   : > { %v2409_v55 = vadd.f32 %v2408_v50, %v2360_v16 }
 0x25d   : > { %v2313_v25 = vadd.f32 %v2312_v19, %v2264_v20 }
 0x25e   : > { %v2859_v57 = vmax.f32 %v2409_v55, 0.0 }
 0x261   : > { %v2361_v42 = vpop.f32.mrf.mxu2  ;;  %v2410_v30 = vpop.f32.mrf.mxu3 }
 0x262   : > { %v2362_v14 = vadd.f32 %v2361_v42, %v2313_v25  ;;  %v2266_v47 = vpop.f32.mrf.mxu0  ;;  %v2315_v2 = vpop.f32.mrf.mxu1  ;;  %v4237_v25 = vld [vmem:[%s5800_s5 + $0x38] sm:$0xff] }
 0x263   : > { %v2267_v46 = vadd.f32 %v2266_v47, %v5439_v6  ;;  %v4261_v42 = vld [vmem:[%s5800_s5 + $0xf8] sm:$0xff]  ;;  %3166 = vmatpush.bf16.msra.mxu0 %v4237_v25 }
 0x264   : > { %v2411_v7 = vadd.f32 %v2410_v30, %v2362_v14  ;;  %v4245_v30 = vld [vmem:[%s5800_s5 + $0x78] sm:$0xff]  ;;  %v5520_v14 = vld [vmem:[%s5799_s4] sm:$0xf]  ;;  %3313 = vmatpush.bf16.msra.mxu3 %v4261_v42 }
 0x265   : > { %v2316_v13 = vadd.f32 %v2315_v2, %v2267_v46  ;;  %2461 = vmatmul.bf16.gmra.mxu0 %v5347_v1  ;;  %2510 = vmatmul.bf16.gmra.mxu1 %v5349_v61 }
 0x266   : > { %v2863_v23 = vmax.f32 %v2411_v7, 0.0  ;;  %2559 = vmatmul.bf16.gmra.mxu2 %v5351_v31  ;;  %2608 = vmatmul.bf16.gmra.mxu3 %v5353_v22 }
 0x267   : > { %3215 = vmatpush.bf16.msra.mxu1 %v4245_v30  ;;  %v4244_v30 = vld [vmem:[%s5800_s5 + $0x70] sm:$0xff] }
 0x268   : > { %v5505_v28 = vpack.c.bf16 %v2863_v23, %v2859_v57 }
 0x269   : > { %v2364_v27 = vpop.f32.mrf.mxu2  ;;  %v2413_v53 = vpop.f32.mrf.mxu3 }
 0x26a   : > { %v2365_v50 = vadd.f32 %v2364_v27, %v2316_v13  ;;  %v2268_v16 = vpop.f32.mrf.mxu0  ;;  %v2317_v29 = vpop.f32.mrf.mxu1 }
 0x26b   : > { %v2269_v19 = vadd.f32 %v2268_v16, %v5439_v6  ;;  %v5523_v6 = vperm.slane %v5520_v14, 2  ;;  %3216 = vmatpush.bf16.msra.mxu1 %v4244_v30 }
 0x26c   : > { %v2414_v20 = vadd.f32 %v2413_v53, %v2365_v50  ;;  %v4252_v50 = vld [vmem:[%s5800_s5 + $0xb0] sm:$0xff] }
 0x26d   : > { %v2318_v55 = vadd.f32 %v2317_v29, %v2269_v19  ;;  %3265 = vmatpush.bf16.msra.mxu2 %v4252_v50  ;;  %v4251_v50 = vld [vmem:[%s5800_s5 + $0xa8] sm:$0xff] }
 0x26e   : > { %v2867_v27 = vmax.f32 %v2414_v20, 0.0 }
 0x271   : > { %v2366_v47 = vpop.f32.mrf.mxu2  ;;  %v2415_v2 = vpop.f32.mrf.mxu3  ;;  %3266 = vmatpush.bf16.msra.mxu2 %v4251_v50 }
 0x272   : > { %v2367_v46 = vadd.f32 %v2366_v47, %v2318_v55  ;;  %v2427_v7 = vpop.f32.mrf.mxu0  ;;  %v2476_v13 = vpop.f32.mrf.mxu1 }
 0x273   : > { %v2428_v57 = vadd.f32 %v2427_v7, %v5523_v6 }
 0x274   : > { %v2416_v23 = vadd.f32 %v2415_v2, %v2367_v46 }
 0x275   : > { %v2477_v36 = vadd.f32 %v2476_v13, %v2428_v57  ;;  %2622 = vmatmul.bf16.vlgmr.msrb.gmra.mxu0 %v5980_v33  ;;  %2671 = vmatmul.bf16.vlgmr.msrb.gmra.mxu1 %v5981_v48 }
 0x276   : > { %v2871_v53 = vmax.f32 %v2416_v23, 0.0  ;;  %2720 = vmatmul.bf16.vlgmr.msrb.gmra.mxu2 %v5982_v41  ;;  %2769 = vmatmul.bf16.vlgmr.msrb.gmra.mxu3 %v5983_v17  ;;  %v4236_v41 = vld [vmem:[%s5800_s5 + $0x30] sm:$0xff] }
 0x277   : > { %v4260_v17 = vld [vmem:[%s5800_s5 + $0xf0] sm:$0xff]  ;;  %3167 = vmatpush.bf16.msra.mxu0 %v4236_v41 }
 0x278   : > { %v5533_v16 = vpack.c.bf16 %v2871_v53, %v2867_v27  ;;  %3314 = vmatpush.bf16.msra.mxu3 %v4260_v17 }
 0x279   : > { %v2525_v29 = vpop.f32.mrf.mxu2  ;;  %v2574_v19 = vpop.f32.mrf.mxu3 }
 0x27a   : > { %v2526_v55 = vadd.f32 %v2525_v29, %v2477_v36  ;;  %v2429_v25 = vpop.f32.mrf.mxu0  ;;  %v2478_v33 = vpop.f32.mrf.mxu1 }
 0x27b   : > { %v2430_v48 = vadd.f32 %v2429_v25, %v5523_v6 }
 0x27c   : > { %v2575_v20 = vadd.f32 %v2574_v19, %v2526_v55 }
 0x27d   : > { %v2479_v42 = vadd.f32 %v2478_v33, %v2430_v48 }
 0x27e   : > { %v2812_v27 = vmax.f32 %v2575_v20, 0.0 }
 0x281   : > { %v2527_v47 = vpop.f32.mrf.mxu2  ;;  %v2576_v2 = vpop.f32.mrf.mxu3 }
 0x282   : > { %v2528_v46 = vadd.f32 %v2527_v47, %v2479_v42  ;;  %v2432_v7 = vpop.f32.mrf.mxu0  ;;  %v2481_v13 = vpop.f32.mrf.mxu1  ;;  %v4243_v42 = vld [vmem:[%s5800_s5 + $0x68] sm:$0xff] }
 0x283   : > { %v2433_v57 = vadd.f32 %v2432_v7, %v5523_v6  ;;  %3217 = vmatpush.bf16.msra.mxu1 %v4243_v42 }
 0x284   : > { %v2577_v23 = vadd.f32 %v2576_v2, %v2528_v46 }
 0x285   : > { %v2482_v36 = vadd.f32 %v2481_v13, %v2433_v57  ;;  %2627 = vmatmul.bf16.gmra.mxu0 %v5985_v43  ;;  %2676 = vmatmul.bf16.gmra.mxu1 %v5986_v21 }
 0x286   : > { %v2816_v53 = vmax.f32 %v2577_v23, 0.0  ;;  %2725 = vmatmul.bf16.gmra.mxu2 %v5987_v62  ;;  %2774 = vmatmul.bf16.gmra.mxu3 %v5988_v9  ;;  %v4235_v62 = vld [vmem:[%s5800_s5 + $0x28] sm:$0xff] }
 0x287   : > { %v4259_v9 = vld [vmem:[%s5800_s5 + $0xe8] sm:$0xff]  ;;  %3168 = vmatpush.bf16.msra.mxu0 %v4235_v62 }
 0x288   : > { %v5553_v29 = vpack.c.bf16 %v2816_v53, %v2812_v27  ;;  %3315 = vmatpush.bf16.msra.mxu3 %v4259_v9 }
 0x289   : > { %v2530_v19 = vpop.f32.mrf.mxu2  ;;  %v2579_v55 = vpop.f32.mrf.mxu3 }
 0x28a   : > { %v2531_v25 = vadd.f32 %v2530_v19, %v2482_v36  ;;  %v2434_v33 = vpop.f32.mrf.mxu0  ;;  %v2483_v43 = vpop.f32.mrf.mxu1  ;;  %v4250_v36 = vld [vmem:[%s5800_s5 + $0xa0] sm:$0xff] }
 0x28b   : > { %v2435_v21 = vadd.f32 %v2434_v33, %v5523_v6  ;;  %3267 = vmatpush.bf16.msra.mxu2 %v4250_v36 }
 0x28c   : > { %v2580_v48 = vadd.f32 %v2579_v55, %v2531_v25 }
 0x28d   : > { %v2484_v20 = vadd.f32 %v2483_v43, %v2435_v21  ;;  %v4242_v43 = vld [vmem:[%s5800_s5 + $0x60] sm:$0xff] }
 0x28e   : > { %v2820_v57 = vmax.f32 %v2580_v48, 0.0  ;;  %3218 = vmatpush.bf16.msra.mxu1 %v4242_v43 }
 0x291   : > { %v2532_v41 = vpop.f32.mrf.mxu2  ;;  %v2581_v17 = vpop.f32.mrf.mxu3 }
 0x292   : > { %v2533_v30 = vadd.f32 %v2532_v41, %v2484_v20  ;;  %v2437_v47 = vpop.f32.mrf.mxu0  ;;  %v2486_v2 = vpop.f32.mrf.mxu1 }
 0x293   : > { %v2438_v46 = vadd.f32 %v2437_v47, %v5523_v6 }
 0x294   : > { %v2582_v7 = vadd.f32 %v2581_v17, %v2533_v30 }
 0x295   : > { %v2487_v13 = vadd.f32 %v2486_v2, %v2438_v46  ;;  %2632 = vmatmul.bf16.gmra.mxu0 %v5993_v39  ;;  %2681 = vmatmul.bf16.gmra.mxu1 %v5994_v18  ;;  %v4249_v2 = vld [vmem:[%s5800_s5 + $0x98] sm:$0xff] }
 0x296   : > { %v2824_v23 = vmax.f32 %v2582_v7, 0.0  ;;  %2730 = vmatmul.bf16.gmra.mxu2 %v5995_v49  ;;  %2779 = vmatmul.bf16.gmra.mxu3 %v5996_v54  ;;  %v4234_v49 = vld [vmem:[%s5800_s5 + $0x20] sm:$0xff] }
 0x297   : > { %v4258_v54 = vld [vmem:[%s5800_s5 + $0xe0] sm:$0xff]  ;;  %3169 = vmatpush.bf16.msra.mxu0 %v4234_v49  ;;  %3268 = vmatpush.bf16.msra.mxu2 %v4249_v2 }
 0x298   : > { %v5573_v27 = vpack.c.bf16 %v2824_v23, %v2820_v57  ;;  %3316 = vmatpush.bf16.msra.mxu3 %v4258_v54 }
 0x299   : > { %v2535_v53 = vpop.f32.mrf.mxu2  ;;  %v2584_v50 = vpop.f32.mrf.mxu3 }
 0x29a   : > { %v2536_v19 = vadd.f32 %v2535_v53, %v2487_v13  ;;  %v2439_v55 = vpop.f32.mrf.mxu0  ;;  %v2488_v39 = vpop.f32.mrf.mxu1 }
 0x29b   : > { %v2440_v18 = vadd.f32 %v2439_v55, %v5523_v6 }
 0x29c   : > { %v2585_v25 = vadd.f32 %v2584_v50, %v2536_v19  ;;  %v4241_v50 = vld [vmem:[%s5800_s5 + $0x58] sm:$0xff] }
 0x29d   : > { %v2489_v33 = vadd.f32 %v2488_v39, %v2440_v18  ;;  %3219 = vmatpush.bf16.msra.mxu1 %v4241_v50 }
 0x29e   : > { %v2828_v30 = vmax.f32 %v2585_v25, 0.0 }
 0x2a1   : > { %v2537_v21 = vpop.f32.mrf.mxu2  ;;  %v2586_v48 = vpop.f32.mrf.mxu3 }
 0x2a2   : > { %v2538_v20 = vadd.f32 %v2537_v21, %v2489_v33  ;;  %v2442_v62 = vpop.f32.mrf.mxu0  ;;  %v2491_v9 = vpop.f32.mrf.mxu1 }
 0x2a3   : > { %v2443_v42 = vadd.f32 %v2442_v62, %v5523_v6 }
 0x2a4   : > { %v2587_v41 = vadd.f32 %v2586_v48, %v2538_v20  ;;  %v4248_v48 = vld [vmem:[%s5800_s5 + $0x90] sm:$0xff] }
 0x2a5   : > { %v2492_v17 = vadd.f32 %v2491_v9, %v2443_v42  ;;  %2637 = vmatmul.bf16.gmra.mxu0 %v5999_v63  ;;  %2686 = vmatmul.bf16.gmra.mxu1 %v6000_v32 }
 0x2a6   : > { %v2832_v47 = vmax.f32 %v2587_v41, 0.0  ;;  %2735 = vmatmul.bf16.gmra.mxu2 %v6002_v37  ;;  %2784 = vmatmul.bf16.gmra.mxu3 %v6003_v45  ;;  %v4233_v37 = vld [vmem:[%s5800_s5 + $0x18] sm:$0xff] }
 0x2a7   : > { %v4257_v45 = vld [vmem:[%s5800_s5 + $0xd8] sm:$0xff]  ;;  %3170 = vmatpush.bf16.msra.mxu0 %v4233_v37  ;;  %3269 = vmatpush.bf16.msra.mxu2 %v4248_v48 }
 0x2a8   : > { %v5593_v46 = vpack.c.bf16 %v2832_v47, %v2828_v30  ;;  %3317 = vmatpush.bf16.msra.mxu3 %v4257_v45  ;;  %v4240_v47 = vld [vmem:[%s5800_s5 + $0x50] sm:$0xff]  ;;  %v4247_v45 = vld [vmem:[%s5800_s5 + $0x88] sm:$0xff] }
 0x2a9   : > { %v2540_v7 = vpop.f32.mrf.mxu2  ;;  %v2589_v13 = vpop.f32.mrf.mxu3  ;;  %3220 = vmatpush.bf16.msra.mxu1 %v4240_v47 }
 0x2aa   : > { %v2541_v57 = vadd.f32 %v2540_v7, %v2492_v17  ;;  %v2444_v23 = vpop.f32.mrf.mxu0  ;;  %v2493_v63 = vpop.f32.mrf.mxu1 }
 0x2ab   : > { %v2445_v32 = vadd.f32 %v2444_v23, %v5523_v6  ;;  %3270 = vmatpush.bf16.msra.mxu2 %v4247_v45 }
 0x2ac   : > { %v2590_v36 = vadd.f32 %v2589_v13, %v2541_v57 }
 0x2ad   : > { %v2494_v53 = vadd.f32 %v2493_v63, %v2445_v32 }
 0x2ae   : > { %v2836_v43 = vmax.f32 %v2590_v36, 0.0 }
 0x2b1   : > { %v2542_v19 = vpop.f32.mrf.mxu2  ;;  %v2591_v55 = vpop.f32.mrf.mxu3 }
 0x2b2   : > { %v2543_v39 = vadd.f32 %v2542_v19, %v2494_v53  ;;  %v2447_v18 = vpop.f32.mrf.mxu0  ;;  %v2496_v25 = vpop.f32.mrf.mxu1 }
 0x2b3   : > { %v2448_v33 = vadd.f32 %v2447_v18, %v5523_v6 }
 0x2b4   : > { %v2592_v49 = vadd.f32 %v2591_v55, %v2543_v39 }
 0x2b5   : > { %v2497_v54 = vadd.f32 %v2496_v25, %v2448_v33  ;;  %2642 = vmatmul.bf16.gmra.mxu0 %v6006_v12  ;;  %2691 = vmatmul.bf16.gmra.mxu1 %v6007_v10 }
 0x2b6   : > { %v2840_v21 = vmax.f32 %v2592_v49, 0.0  ;;  %2740 = vmatmul.bf16.gmra.mxu2 %v6009_v52  ;;  %2789 = vmatmul.bf16.gmra.mxu3 %v6010_v40  ;;  %v4232_v52 = vld [vmem:[%s5800_s5 + $0x10] sm:$0xff]  ;;  %v4239_v49 = vld [vmem:[%s5800_s5 + $0x48] sm:$0xff] }
 0x2b7   : > { %v4256_v40 = vld [vmem:[%s5800_s5 + $0xd0] sm:$0xff]  ;;  %3171 = vmatpush.bf16.msra.mxu0 %v4232_v52  ;;  %3221 = vmatpush.bf16.msra.mxu1 %v4239_v49 }
 0x2b8   : > { %v5613_v20 = vpack.c.bf16 %v2840_v21, %v2836_v43  ;;  %3318 = vmatpush.bf16.msra.mxu3 %v4256_v40 }
 0x2b9   : > { %v2545_v62 = vpop.f32.mrf.mxu2  ;;  %v2594_v9 = vpop.f32.mrf.mxu3 }
 0x2ba   : > { %v2546_v42 = vadd.f32 %v2545_v62, %v2497_v54  ;;  %v2449_v41 = vpop.f32.mrf.mxu0  ;;  %v2498_v12 = vpop.f32.mrf.mxu1 }
 0x2bb   : > { %v2450_v10 = vadd.f32 %v2449_v41, %v5523_v6 }
 0x2bc   : > { %v2595_v17 = vadd.f32 %v2594_v9, %v2546_v42 }
 0x2bd   : > { %v2499_v30 = vadd.f32 %v2498_v12, %v2450_v10 }
 0x2be   : > { %v2844_v53 = vmax.f32 %v2595_v17, 0.0  ;;  %v4230_v17 = vld [vmem:[%s5800_s5] sm:$0xff] }
 0x2c1   : > { %v2547_v2 = vpop.f32.mrf.mxu2  ;;  %v2596_v7 = vpop.f32.mrf.mxu3 }
 0x2c2   : > { %v2548_v13 = vadd.f32 %v2547_v2, %v2499_v30  ;;  %v2452_v57 = vpop.f32.mrf.mxu0  ;;  %v2501_v23 = vpop.f32.mrf.mxu1  ;;  %v4238_v30 = vld [vmem:[%s5800_s5 + $0x40] sm:$0xff] }
 0x2c3   : > { %v2453_v63 = vadd.f32 %v2452_v57, %v5523_v6  ;;  %3222 = vmatpush.bf16.msra.mxu1 %v4238_v30  ;;  %v4254_v57 = vld [vmem:[%s5800_s5 + $0xc0] sm:$0xff] }
 0x2c4   : > { %v2597_v32 = vadd.f32 %v2596_v7, %v2548_v13 }
 0x2c5   : > { %v2502_v36 = vadd.f32 %v2501_v23, %v2453_v63  ;;  %2647 = vmatmul.bf16.gmra.mxu0 %v6013_v24  ;;  %2696 = vmatmul.bf16.gmra.mxu1 %v6014_v44  ;;  %v6026_v23 = vld [vmem:[#allocation33_spill] sm:$0xff] }
 0x2c6   : > { %v2848_v37 = vmax.f32 %v2597_v32, 0.0  ;;  %2745 = vmatmul.bf16.gmra.mxu2 %v6016_v3  ;;  %2794 = vmatmul.bf16.gmra.mxu3 %v6017_v58  ;;  %v4231_v3 = vld [vmem:[%s5800_s5 + $0x8] sm:$0xff]  ;;  %v2038_v63 = vadd.f32 %v6026_v23, %v5228_v26  ;;  %v6028_v23 = vld [vmem:[#allocation35_spill] sm:$0xff] }
 0x2c7   : > { %v4255_v58 = vld [vmem:[%s5800_s5 + $0xc8] sm:$0xff]  ;;  %3172 = vmatpush.bf16.msra.mxu0 %v4231_v3 }
 0x2c8   : > { %v5633_v50 = vpack.c.bf16 %v2848_v37, %v2844_v53  ;;  %3319 = vmatpush.bf16.msra.mxu3 %v4255_v58 }
 0x2c9   : > { %v2550_v19 = vpop.f32.mrf.mxu2  ;;  %v2599_v55 = vpop.f32.mrf.mxu3 }
 0x2ca   : > { %v2551_v39 = vadd.f32 %v2550_v19, %v2502_v36  ;;  %v2454_v18 = vpop.f32.mrf.mxu0  ;;  %v2503_v24 = vpop.f32.mrf.mxu1 }
 0x2cb   : > { %v2455_v44 = vadd.f32 %v2454_v18, %v5523_v6  ;;  %3173 = vmatpush.bf16.msra.mxu0 %v4230_v17 }
 0x2cc   : > { %v2600_v25 = vadd.f32 %v2599_v55, %v2551_v39  ;;  %3320 = vmatpush.bf16.msra.mxu3 %v4254_v57  ;;  %v6027_v39 = vld [vmem:[#allocation34_spill] sm:$0xff] }
 0x2cd   : > { %v2504_v33 = vadd.f32 %v2503_v24, %v2455_v44  ;;  %v2087_v18 = vadd.f32 %v6027_v39, %v2038_v63 }
 0x2ce   : > { %v2852_v12 = vmax.f32 %v2600_v25, 0.0 }
 0x2d1   : > { %v2552_v54 = vpop.f32.mrf.mxu2  ;;  %v2601_v43 = vpop.f32.mrf.mxu3 }
 0x2d2   : > { %v2553_v21 = vadd.f32 %v2552_v54, %v2504_v33  ;;  %v2457_v48 = vpop.f32.mrf.mxu0  ;;  %v2506_v62 = vpop.f32.mrf.mxu1  ;;  %v2136_v33 = vadd.f32 %v5273_v60, %v2087_v18 }
 0x2d3   : > { %v2458_v9 = vadd.f32 %v2457_v48, %v5523_v6 }
 0x2d4   : > { %v2602_v42 = vadd.f32 %v2601_v43, %v2553_v21  ;;  %v2185_v48 = vadd.f32 %v5275_v51, %v2136_v33  ;;  %v6032_v33 = vld [vmem:[#allocation36_spill] sm:$0xff] }
 0x2d5   : > { %v2507_v41 = vadd.f32 %v2506_v62, %v2458_v9  ;;  %2652 = vmatmul.bf16.gmra.mxu0 %v5281_v0  ;;  %2701 = vmatmul.bf16.gmra.mxu1 %v5283_v38  ;;  %v4246_v0 = vld [vmem:[%s5800_s5 + $0x80] sm:$0xff] }
 0x2d6   : > { %v2856_v10 = vmax.f32 %v2602_v42, 0.0  ;;  %2750 = vmatmul.bf16.gmra.mxu2 %v5285_v35  ;;  %2799 = vmatmul.bf16.gmra.mxu3 %v5287_v34  ;;  %v2814_v9 = vmax.f32 %v2185_v48, 0.0 }
 0x2d7   : > { %3271 = vmatpush.bf16.msra.mxu2 %v4246_v0  ;;  %v5682_v0 = vperm.slane %v5520_v14, 3 }
 0x2d8   : > { %v5659_v38 = vpack.c.bf16 %v2856_v10, %v2852_v12 }
 0x2d9   : > { %v2555_v52 = vpop.f32.mrf.mxu2  ;;  %v2604_v35 = vpop.f32.mrf.mxu3 }
 0x2da   : > { %v2556_v34 = vadd.f32 %v2555_v52, %v2507_v41  ;;  %v2459_v40 = vpop.f32.mrf.mxu0  ;;  %v2508_v47 = vpop.f32.mrf.mxu1 }
 0x2db   : > { %v2460_v2 = vadd.f32 %v2459_v40, %v5523_v6 }
 0x2dc   : > { %v2605_v7 = vadd.f32 %v2604_v35, %v2556_v34 }
 0x2dd   : > { %v2509_v13 = vadd.f32 %v2508_v47, %v2460_v2 }
 0x2de   : > { %v2860_v44 = vmax.f32 %v2605_v7, 0.0 }
 0x2e1   : > { %v2557_v32 = vpop.f32.mrf.mxu2  ;;  %v2606_v36 = vpop.f32.mrf.mxu3 }
 0x2e2   : > { %v2558_v53 = vadd.f32 %v2557_v32, %v2509_v13  ;;  %v2462_v37 = vpop.f32.mrf.mxu0  ;;  %v2511_v45 = vpop.f32.mrf.mxu1 }
 0x2e3   : > { %v2463_v19 = vadd.f32 %v2462_v37, %v5523_v6 }
 0x2e4   : > { %v2607_v55 = vadd.f32 %v2606_v36, %v2558_v53 }
 0x2e5   : > { %v2512_v24 = vadd.f32 %v2511_v45, %v2463_v19  ;;  %2657 = vmatmul.bf16.gmra.mxu0 %v5347_v1  ;;  %2706 = vmatmul.bf16.gmra.mxu1 %v5349_v61 }
 0x2e6   : > { %v2864_v25 = vmax.f32 %v2607_v55, 0.0  ;;  %2755 = vmatmul.bf16.gmra.mxu2 %v5351_v31  ;;  %2804 = vmatmul.bf16.gmra.mxu3 %v5353_v22  ;;  %v2810_v31 = vmax.f32 %v5265_v5, 0.0  ;;  %v2043_v22 = vadd.f32 %v5303_v56, %v5228_v26 }
 0x2e8   : > { %v5674_v3 = vpack.c.bf16 %v2864_v25, %v2860_v44  ;;  %v2874_v17 = vpack.c.bf16 %v2814_v9, %v2810_v31  ;;  %v2092_v51 = vadd.f32 %v5307_v8, %v2043_v22 }
 0x2e9   : > { %v2560_v58 = vpop.f32.mrf.mxu2  ;;  %v2609_v49 = vpop.f32.mrf.mxu3 }
 0x2ea   : > { %v2561_v54 = vadd.f32 %v2560_v58, %v2512_v24  ;;  %v2464_v43 = vpop.f32.mrf.mxu0  ;;  %v2513_v21 = vpop.f32.mrf.mxu1  ;;  %v2141_v56 = vadd.f32 %v5330_v15, %v2092_v51  ;;  %v6029_v15 = vld [vmem:[#allocation6_spill] sm:$0xff]  ;;  %v6031_v24 = vld [vmem:[#allocation25_spill] sm:$0xff] }
 0x2eb   : > { %v2465_v1 = vadd.f32 %v2464_v43, %v5523_v6  ;;  %v2048_v63 = vadd.f32 %v6029_v15, %v5228_v26 }
 0x2ec   : > { %v2610_v61 = vadd.f32 %v2609_v49, %v2561_v54  ;;  %v2190_v2 = vadd.f32 %v5334_v59, %v2141_v56  ;;  %v6030_v59 = vld [vmem:[#allocation7_spill] sm:$0xff] }
 0x2ed   : > { %v2514_v62 = vadd.f32 %v2513_v21, %v2465_v1  ;;  %v2097_v18 = vadd.f32 %v6030_v59, %v2048_v63  ;;  %v6041_v59 = vld [vmem:[#allocation14_spill] sm:$0xff] }
 0x2ee   : > { %v2868_v6 = vmax.f32 %v2610_v61, 0.0  ;;  %v2822_v13 = vmax.f32 %v2190_v2, 0.0  ;;  %v6033_v61 = vld [vmem:[#allocation37_spill] sm:$0xff] }
 0x2ef   : > { %v2146_v58 = vadd.f32 %v6032_v33, %v2097_v18  ;;  %v2058_v18 = vadd.f32 %v6041_v59, %v5228_v26 }
 0x2f1   : > { %v2562_v60 = vpop.f32.mrf.mxu2  ;;  %v2611_v42 = vpop.f32.mrf.mxu3 }
 0x2f2   : > { %v2563_v41 = vadd.f32 %v2562_v60, %v2514_v62  ;;  %v2623_v12 = vpop.f32.mrf.mxu0  ;;  %v2672_v10 = vpop.f32.mrf.mxu1  ;;  %v2195_v62 = vadd.f32 %v6033_v61, %v2146_v58 }
 0x2f3   : > { %v2624_v52 = vadd.f32 %v2623_v12, %v5682_v0  ;;  %v6035_v12 = vld [vmem:[#allocation20_spill] sm:$0xff] }
 0x2f4   : > { %v2612_v30 = vadd.f32 %v2611_v42, %v2563_v41  ;;  %v2830_v60 = vmax.f32 %v2195_v62, 0.0  ;;  %v6034_v41 = vld [vmem:[#allocation5_spill] sm:$0xff] }
 0x2f5   : > { %3174 = vmatmul.bf16.vlgmr.msra.gmra.mxu0 %v2874_v17  ;;  %3223 = vmatmul.bf16.vlgmr.msra.gmra.mxu1 %v5454_v11  ;;  %v2673_v8 = vadd.f32 %v2672_v10, %v2624_v52  ;;  %v2053_v10 = vadd.f32 %v6035_v12, %v5228_v26 }
 0x2f6   : > { %v2872_v5 = vmax.f32 %v2612_v30, 0.0  ;;  %3272 = vmatmul.bf16.vlgmr.msra.gmra.mxu2 %v5553_v29  ;;  %v2818_v29 = vmax.f32 %v6028_v23, 0.0 }
 0x2f8   : > { %v5689_v35 = vpack.c.bf16 %v2872_v5, %v2868_v6  ;;  %v2878_v55 = vpack.c.bf16 %v2822_v13, %v2818_v29 }
 0x2f9   : > { %v2721_v34 = vpop.f32.mrf.mxu2  ;;  %v2770_v40 = vpop.f32.mrf.mxu3 }
 0x2fa   : > { %v2625_v47 = vpop.f32.mrf.mxu0  ;;  %v2674_v14 = vpop.f32.mrf.mxu1  ;;  %v2722_v11 = vadd.f32 %v2721_v34, %v2673_v8 }
 0x2fb   : > { %v2626_v7 = vadd.f32 %v2625_v47, %v5682_v0 }
 0x2fc   : > { %v2771_v53 = vadd.f32 %v2770_v40, %v2722_v11  ;;  %v6036_v40 = vld [vmem:[#allocation18_spill] sm:$0xff] }
 0x2fd   : > { %v2675_v57 = vadd.f32 %v2674_v14, %v2626_v7  ;;  %v2102_v47 = vadd.f32 %v6036_v40, %v2053_v10  ;;  %v6037_v14 = vld [vmem:[#allocation26_spill] sm:$0xff]  ;;  %v6038_v7 = vld [vmem:[#allocation24_spill] sm:$0xff] }
 0x2fe   : > { %v2813_v44 = vmax.f32 %v2771_v53, 0.0  ;;  %v6045_v10 = vld [vmem:[#allocation8_spill] sm:$0xff] }
 0x2ff   : > { %v2151_v11 = vadd.f32 %v6038_v7, %v2102_v47 }
 0x301   : > { %v2723_v32 = vpop.f32.mrf.mxu2  ;;  %v2772_v36 = vpop.f32.mrf.mxu3 }
 0x302   : > { %v2724_v37 = vadd.f32 %v2723_v32, %v2675_v57  ;;  %v2628_v45 = vpop.f32.mrf.mxu0  ;;  %v2677_v19 = vpop.f32.mrf.mxu1  ;;  %v6039_v32 = vld [vmem:[#allocation19_spill] sm:$0xff] }
 0x303   : > { %v2629_v54 = vadd.f32 %v2628_v45, %v5682_v0 }
 0x304   : > { %v2773_v39 = vadd.f32 %v2772_v36, %v2724_v37  ;;  %v2200_v36 = vadd.f32 %v6039_v32, %v2151_v11 }
 0x305   : > { %3179 = vmatmul.bf16.gmra.mxu0 %v2878_v55  ;;  %3228 = vmatmul.bf16.gmra.mxu1 %v6031_v24  ;;  %v2678_v9 = vadd.f32 %v2677_v19, %v2629_v54 }
 0x306   : > { %v2817_v25 = vmax.f32 %v2773_v39, 0.0  ;;  %3277 = vmatmul.bf16.gmra.mxu2 %v5573_v27  ;;  %v2826_v27 = vmax.f32 %v6034_v41, 0.0  ;;  %v2838_v19 = vmax.f32 %v2200_v36, 0.0  ;;  %v6040_v39 = vld [vmem:[#allocation17_spill] sm:$0xff]  ;;  %v6050_v36 = vld [vmem:[#allocation12_spill] sm:$0xff] }
 0x308   : > { %v2877_v49 = vpack.c.bf16 %v2817_v25, %v2813_v44  ;;  %v2882_v52 = vpack.c.bf16 %v2830_v60, %v2826_v27 }
 0x309   : > { %v2726_v43 = vpop.f32.mrf.mxu2  ;;  %v2775_v21 = vpop.f32.mrf.mxu3 }
 0x30a   : > { %3321 = vmatmul.bf16.vlgmr.msra.gmra.mxu3 %v2877_v49  ;;  %v2630_v48 = vpop.f32.mrf.mxu0  ;;  %v2679_v1 = vpop.f32.mrf.mxu1  ;;  %v2727_v22 = vadd.f32 %v2726_v43, %v2678_v9  ;;  %v6044_v9 = vld [vmem:[#allocation15_spill] sm:$0xff] }
 0x30b   : > { %v2631_v31 = vadd.f32 %v2630_v48, %v5682_v0 }
 0x30c   : > { %v2776_v51 = vadd.f32 %v2775_v21, %v2727_v22  ;;  %v6042_v21 = vld [vmem:[#allocation23_spill] sm:$0xff] }
 0x30d   : > { %v2680_v42 = vadd.f32 %v2679_v1, %v2631_v31  ;;  %v2107_v48 = vadd.f32 %v6042_v21, %v2058_v18  ;;  %v6043_v1 = vld [vmem:[#allocation27_spill] sm:$0xff] }
 0x30e   : > { %v2821_v2 = vmax.f32 %v2776_v51, 0.0 }
 0x30f   : > { %v2156_v31 = vadd.f32 %v6044_v9, %v2107_v48 }
 0x311   : > { %v2728_v17 = vpop.f32.mrf.mxu2  ;;  %v2777_v30 = vpop.f32.mrf.mxu3 }
 0x312   : > { %v2729_v6 = vadd.f32 %v2728_v17, %v2680_v42  ;;  %v2633_v5 = vpop.f32.mrf.mxu0  ;;  %v2682_v56 = vpop.f32.mrf.mxu1  ;;  %v2205_v17 = vadd.f32 %v6045_v10, %v2156_v31 }
 0x313   : > { %v2634_v13 = vadd.f32 %v2633_v5, %v5682_v0 }
 0x314   : > { %v2778_v34 = vadd.f32 %v2777_v30, %v2729_v6  ;;  %v2846_v5 = vmax.f32 %v2205_v17, 0.0 }
 0x315   : > { %3184 = vmatmul.bf16.gmra.mxu0 %v2882_v52  ;;  %3233 = vmatmul.bf16.gmra.mxu1 %v6037_v14  ;;  %v2683_v53 = vadd.f32 %v2682_v56, %v2634_v13  ;;  %v6046_v52 = vld [vmem:[#allocation21_spill] sm:$0xff] }
 0x316   : > { %v2825_v8 = vmax.f32 %v2778_v34, 0.0  ;;  %3282 = vmatmul.bf16.gmra.mxu2 %v5593_v46  ;;  %v2834_v46 = vmax.f32 %v6040_v39, 0.0  ;;  %v6047_v34 = vld [vmem:[#allocation10_spill] sm:$0xff] }
 0x317   : > { %v2063_v40 = vadd.f32 %v6047_v34, %v5228_v26  ;;  %v6053_v34 = vld [vmem:[#allocation16_spill] sm:$0xff] }
 0x318   : > { %v2881_v57 = vpack.c.bf16 %v2825_v8, %v2821_v2  ;;  %v2886_v54 = vpack.c.bf16 %v2838_v19, %v2834_v46  ;;  %v6051_v46 = vld [vmem:[#allocation13_spill] sm:$0xff] }
 0x319   : > { %v2731_v23 = vpop.f32.mrf.mxu2  ;;  %v2780_v29 = vpop.f32.mrf.mxu3 }
 0x31a   : > { %3326 = vmatmul.bf16.gmra.mxu3 %v2881_v57  ;;  %v2635_v15 = vpop.f32.mrf.mxu0  ;;  %v2684_v63 = vpop.f32.mrf.mxu1  ;;  %v2732_v45 = vadd.f32 %v2731_v23, %v2683_v53  ;;  %v6048_v23 = vld [vmem:[#allocation11_spill] sm:$0xff] }
 0x31b   : > { %v2636_v37 = vadd.f32 %v2635_v15, %v5682_v0  ;;  %v6049_v15 = vld [vmem:[#allocation28_spill] sm:$0xff] }
 0x31c   : > { %v2781_v25 = vadd.f32 %v2780_v29, %v2732_v45  ;;  %v2112_v29 = vadd.f32 %v6048_v23, %v2063_v40 }
 0x31d   : > { %v2685_v55 = vadd.f32 %v2684_v63, %v2636_v37 }
 0x31e   : > { %v2829_v61 = vmax.f32 %v2781_v25, 0.0  ;;  %v2161_v53 = vadd.f32 %v6050_v36, %v2112_v29 }
 0x320   : > { %v2210_v59 = vadd.f32 %v6051_v46, %v2161_v53 }
 0x321   : > { %v2733_v24 = vpop.f32.mrf.mxu2  ;;  %v2782_v44 = vpop.f32.mrf.mxu3 }
 0x322   : > { %v2734_v33 = vadd.f32 %v2733_v24, %v2685_v55  ;;  %v2638_v58 = vpop.f32.mrf.mxu0  ;;  %v2687_v49 = vpop.f32.mrf.mxu1  ;;  %v2854_v25 = vmax.f32 %v2210_v59, 0.0 }
 0x323   : > { %v2639_v22 = vadd.f32 %v2638_v58, %v5682_v0  ;;  %v6052_v58 = vld [vmem:[#allocation9_spill] sm:$0xff] }
 0x324   : > { %v2783_v43 = vadd.f32 %v2782_v44, %v2734_v33 }
 0x325   : > { %3189 = vmatmul.bf16.gmra.mxu0 %v2886_v54  ;;  %3238 = vmatmul.bf16.gmra.mxu1 %v6043_v1  ;;  %v2688_v30 = vadd.f32 %v2687_v49, %v2639_v22 }
 0x326   : > { %v2833_v62 = vmax.f32 %v2783_v43, 0.0  ;;  %3287 = vmatmul.bf16.gmra.mxu2 %v5613_v20  ;;  %v2842_v20 = vmax.f32 %v6046_v52, 0.0 }
 0x328   : > { %v2885_v60 = vpack.c.bf16 %v2833_v62, %v2829_v61  ;;  %v2890_v13 = vpack.c.bf16 %v2846_v5, %v2842_v20 }
 0x329   : > { %v2736_v42 = vpop.f32.mrf.mxu2  ;;  %v2785_v41 = vpop.f32.mrf.mxu3 }
 0x32a   : > { %3331 = vmatmul.bf16.gmra.mxu3 %v2885_v60  ;;  %v2640_v27 = vpop.f32.mrf.mxu0  ;;  %v2689_v12 = vpop.f32.mrf.mxu1  ;;  %v2737_v6 = vadd.f32 %v2736_v42, %v2688_v30 }
 0x32b   : > { %v2641_v51 = vadd.f32 %v2640_v27, %v5682_v0 }
 0x32c   : > { %v2786_v2 = vadd.f32 %v2785_v41, %v2737_v6 }
 0x32d   : > { %v2690_v56 = vadd.f32 %v2689_v12, %v2641_v51 }
 0x32e   : > { %v2837_v63 = vmax.f32 %v2786_v2, 0.0 }
 0x331   : > { %v2738_v47 = vpop.f32.mrf.mxu2  ;;  %v2787_v14 = vpop.f32.mrf.mxu3 }
 0x332   : > { %v2739_v8 = vadd.f32 %v2738_v47, %v2690_v56  ;;  %v2643_v7 = vpop.f32.mrf.mxu0  ;;  %v2692_v11 = vpop.f32.mrf.mxu1 }
 0x333   : > { %v2644_v26 = vadd.f32 %v2643_v7, %v5682_v0 }
 0x334   : > { %v2788_v57 = vadd.f32 %v2787_v14, %v2739_v8 }
 0x335   : > { %3194 = vmatmul.bf16.gmra.mxu0 %v2890_v13  ;;  %3243 = vmatmul.bf16.gmra.mxu1 %v6049_v15  ;;  %v2693_v18 = vadd.f32 %v2692_v11, %v2644_v26 }
 0x336   : > { %v2841_v32 = vmax.f32 %v2788_v57, 0.0  ;;  %3292 = vmatmul.bf16.gmra.mxu2 %v5633_v50  ;;  %v2850_v50 = vmax.f32 %v6052_v58, 0.0 }
 0x338   : > { %v2889_v37 = vpack.c.bf16 %v2841_v32, %v2837_v63  ;;  %v2894_v61 = vpack.c.bf16 %v2854_v25, %v2850_v50 }
 0x339   : > { %v2741_v45 = vpop.f32.mrf.mxu2  ;;  %v2790_v19 = vpop.f32.mrf.mxu3 }
 0x33a   : > { %3336 = vmatmul.bf16.gmra.mxu3 %v2889_v37  ;;  %v2645_v55 = vpop.f32.mrf.mxu0  ;;  %v2694_v39 = vpop.f32.mrf.mxu1  ;;  %v2742_v44 = vadd.f32 %v2741_v45, %v2693_v18  ;;  %v6054_v37 = vld [vmem:[#allocation22_spill] sm:$0xff] }
 0x33b   : > { %v2646_v24 = vadd.f32 %v2645_v55, %v5682_v0 }
 0x33c   : > { %v2791_v43 = vadd.f32 %v2790_v19, %v2742_v44 }
 0x33d   : > { %v2695_v33 = vadd.f32 %v2694_v39, %v2646_v24 }
 0x33e   : > { %v2845_v9 = vmax.f32 %v2791_v43, 0.0 }
 0x341   : > { %v2743_v49 = vpop.f32.mrf.mxu2  ;;  %v2792_v54 = vpop.f32.mrf.mxu3 }
 0x342   : > { %v2744_v21 = vadd.f32 %v2743_v49, %v2695_v33  ;;  %v2648_v48 = vpop.f32.mrf.mxu0  ;;  %v2697_v1 = vpop.f32.mrf.mxu1 }
 0x343   : > { %v2649_v60 = vadd.f32 %v2648_v48, %v5682_v0 }
 0x344   : > { %v2793_v62 = vadd.f32 %v2792_v54, %v2744_v21 }
 0x345   : > { %3199 = vmatmul.bf16.gmra.mxu0 %v2894_v61  ;;  %3248 = vmatmul.bf16.gmra.mxu1 %v5494_v4  ;;  %v2698_v10 = vadd.f32 %v2697_v1, %v2649_v60 }
 0x346   : > { %v2849_v31 = vmax.f32 %v2793_v62, 0.0  ;;  %3297 = vmatmul.bf16.gmra.mxu2 %v5659_v38 }
 0x348   : > { %v2893_v22 = vpack.c.bf16 %v2849_v31, %v2845_v9 }
 0x349   : > { %v2746_v42 = vpop.f32.mrf.mxu2  ;;  %v2795_v41 = vpop.f32.mrf.mxu3 }
 0x34a   : > { %3341 = vmatmul.bf16.gmra.mxu3 %v2893_v22  ;;  %v2650_v27 = vpop.f32.mrf.mxu0  ;;  %v2699_v12 = vpop.f32.mrf.mxu1  ;;  %v2747_v30 = vadd.f32 %v2746_v42, %v2698_v10 }
 0x34b   : > { %v2651_v17 = vadd.f32 %v2650_v27, %v5682_v0 }
 0x34c   : > { %v2796_v4 = vadd.f32 %v2795_v41, %v2747_v30 }
 0x34d   : > { %v2700_v51 = vadd.f32 %v2699_v12, %v2651_v17 }
 0x34e   : > { %v2853_v40 = vmax.f32 %v2796_v4, 0.0 }
 0x351   : > { %v2748_v6 = vpop.f32.mrf.mxu2  ;;  %v2797_v5 = vpop.f32.mrf.mxu3 }
 0x352   : > { %v2749_v56 = vadd.f32 %v2748_v6, %v2700_v51  ;;  %v2653_v52 = vpop.f32.mrf.mxu0  ;;  %v2702_v20 = vpop.f32.mrf.mxu1 }
 0x353   : > { %v2654_v2 = vadd.f32 %v2653_v52, %v5682_v0 }
 0x354   : > { %v2798_v38 = vadd.f32 %v2797_v5, %v2749_v56 }
 0x355   : > { %3204 = vmatmul.bf16.gmra.mxu0 %v6053_v34  ;;  %3253 = vmatmul.bf16.gmra.mxu1 %v5505_v28  ;;  %v2703_v57 = vadd.f32 %v2702_v20, %v2654_v2 }
 0x356   : > { %v2857_v47 = vmax.f32 %v2798_v38, 0.0  ;;  %3302 = vmatmul.bf16.gmra.mxu2 %v5674_v3 }
 0x358   : > { %v2897_v14 = vpack.c.bf16 %v2857_v47, %v2853_v40 }
 0x359   : > { %v2751_v8 = vpop.f32.mrf.mxu2  ;;  %v2800_v7 = vpop.f32.mrf.mxu3 }
 0x35a   : > { %3346 = vmatmul.bf16.gmra.mxu3 %v2897_v14  ;;  %v2655_v11 = vpop.f32.mrf.mxu0  ;;  %v2704_v13 = vpop.f32.mrf.mxu1  ;;  %v2752_v29 = vadd.f32 %v2751_v8, %v2703_v57 }
 0x35b   : > { %v2656_v23 = vadd.f32 %v2655_v11, %v5682_v0 }
 0x35c   : > { %v2801_v28 = vadd.f32 %v2800_v7, %v2752_v29 }
 0x35d   : > { %v2705_v15 = vadd.f32 %v2704_v13, %v2656_v23 }
 0x35e   : > { %v2861_v45 = vmax.f32 %v2801_v28, 0.0 }
 0x361   : > { %v2753_v63 = vpop.f32.mrf.mxu2  ;;  %v2802_v32 = vpop.f32.mrf.mxu3 }
 0x362   : > { %v2754_v36 = vadd.f32 %v2753_v63, %v2705_v15  ;;  %v2658_v53 = vpop.f32.mrf.mxu0  ;;  %v2707_v26 = vpop.f32.mrf.mxu1 }
 0x363   : > { %v2659_v39 = vadd.f32 %v2658_v53, %v5682_v0 }
 0x364   : > { %v2803_v3 = vadd.f32 %v2802_v32, %v2754_v36 }
 0x365   : > { %3209 = vmatmul.bf16.gmra.mxu0 %v6054_v37  ;;  %3258 = vmatmul.bf16.gmra.mxu1 %v5533_v16  ;;  %v2708_v44 = vadd.f32 %v2707_v26, %v2659_v39 }
 0x366   : > { %v2865_v19 = vmax.f32 %v2803_v3, 0.0  ;;  %3307 = vmatmul.bf16.gmra.mxu2 %v5689_v35 }
 0x368   : > { %v2901_v55 = vpack.c.bf16 %v2865_v19, %v2861_v45 }
 0x369   : > { %v2756_v46 = vpop.f32.mrf.mxu2  ;;  %v2805_v59 = vpop.f32.mrf.mxu3 }
 0x36a   : > { %3351 = vmatmul.bf16.gmra.mxu3 %v2901_v55  ;;  %v2660_v18 = vpop.f32.mrf.mxu0  ;;  %v2709_v24 = vpop.f32.mrf.mxu1  ;;  %v2757_v33 = vadd.f32 %v2756_v46, %v2708_v44 }
 0x36b   : > { %v2661_v25 = vadd.f32 %v2660_v18, %v5682_v0  ;;  %v5751_v0 = vld [vmem:[%s5801_s6] ss:$0 sm:$0xff] }
 0x36c   : > { %v2806_v49 = vadd.f32 %v2805_v59, %v2757_v33 }
 0x36d   : > { %v2710_v58 = vadd.f32 %v2709_v24, %v2661_v25 }
 0x36e   : > { %v2869_v48 = vmax.f32 %v2806_v49, 0.0 }
 0x371   : > { %v2758_v50 = vpop.f32.mrf.mxu2  ;;  %v2807_v21 = vpop.f32.mrf.mxu3 }
 0x372   : > { %v2759_v16 = vadd.f32 %v2758_v50, %v2710_v58  ;;  %v3175_v54 = vpop.f32.mrf.mxu0  ;;  %v3224_v43 = vpop.f32.mrf.mxu1 }
 0x373   : > { %v3176_v41 = vadd.f32 %v5751_v0, %v3175_v54 }
 0x374   : > { %v2808_v35 = vadd.f32 %v2807_v21, %v2759_v16 }
 0x375   : > { %v3225_v12 = vadd.f32 %v3224_v43, %v3176_v41 }
 0x376   : > { %v2873_v1 = vmax.f32 %v2808_v35, 0.0 }
 0x378   : > { %v2905_v61 = vpack.c.bf16 %v2873_v1, %v2869_v48 }
 0x379   : > { %v3273_v62 = vpop.f32.mrf.mxu2 }
 0x37a   : > { %3356 = vmatmul.bf16.gmra.mxu3 %v2905_v61  ;;  %v3177_v9 = vpop.f32.mrf.mxu0  ;;  %v3226_v31 = vpop.f32.mrf.mxu1  ;;  %v3274_v30 = vadd.f32 %v3273_v62, %v3225_v12 }
 0x37b   : > { %v3178_v6 = vadd.f32 %v5751_v0, %v3177_v9 }
 0x37d   : > { %v3227_v56 = vadd.f32 %v3226_v31, %v3178_v6 }
 0x381   : > { %v3275_v22 = vpop.f32.mrf.mxu2 }
 0x382   : > { %v3180_v60 = vpop.f32.mrf.mxu0  ;;  %v3229_v42 = vpop.f32.mrf.mxu1  ;;  %v3276_v38 = vadd.f32 %v3275_v22, %v3227_v56 }
 0x383   : > { %v3181_v40 = vadd.f32 %v5751_v0, %v3180_v60 }
 0x385   : > { %v3230_v2 = vadd.f32 %v3229_v42, %v3181_v40 }
 0x389   : > { %v3278_v27 = vpop.f32.mrf.mxu2 }
 0x38a   : > { %v3182_v10 = vpop.f32.mrf.mxu0  ;;  %v3231_v17 = vpop.f32.mrf.mxu1  ;;  %v3279_v7 = vadd.f32 %v3278_v27, %v3230_v2 }
 0x38b   : > { %v3183_v57 = vadd.f32 %v5751_v0, %v3182_v10 }
 0x38d   : > { %v3322_v51 = vpop.f32.mrf.mxu3  ;;  %v3232_v15 = vadd.f32 %v3231_v17, %v3183_v57 }
 0x38e   : > { %v3323_v5 = vadd.f32 %v3322_v51, %v3274_v30 }
 0x390   : > { %3362 = vst [vmem:[%s5759_s17] sm:$0xff] %v3323_v5 }
 0x391   : > { %v3280_v4 = vpop.f32.mrf.mxu2 }
 0x392   : > { %v3185_v52 = vpop.f32.mrf.mxu0  ;;  %v3234_v20 = vpop.f32.mrf.mxu1  ;;  %v3281_v32 = vadd.f32 %v3280_v4, %v3232_v15 }
 0x393   : > { %v3186_v36 = vadd.f32 %v5751_v0, %v3185_v52 }
 0x395   : > { %v3324_v34 = vpop.f32.mrf.mxu3  ;;  %v3235_v37 = vadd.f32 %v3234_v20, %v3186_v36 }
 0x396   : > { %v3325_v47 = vadd.f32 %v3324_v34, %v3276_v38 }
 0x398   : > { %3363 = vst [vmem:[%s5759_s17 + $0x8] sm:$0xff] %v3325_v47 }
 0x399   : > { %v3283_v14 = vpop.f32.mrf.mxu2 }
 0x39a   : > { %v3187_v8 = vpop.f32.mrf.mxu0  ;;  %v3236_v11 = vpop.f32.mrf.mxu1  ;;  %v3284_v19 = vadd.f32 %v3283_v14, %v3235_v37 }
 0x39b   : > { %v3188_v39 = vadd.f32 %v5751_v0, %v3187_v8 }
 0x39d   : > { %v3327_v13 = vpop.f32.mrf.mxu3  ;;  %v3237_v24 = vadd.f32 %v3236_v11, %v3188_v39 }
 0x39e   : > { %v3328_v23 = vadd.f32 %v3327_v13, %v3279_v7 }
 0x3a0   : > { %3364 = vst [vmem:[%s5759_s17 + $0x10] sm:$0xff] %v3328_v23 }
 0x3a1   : > { %v3285_v29 = vpop.f32.mrf.mxu2 }
 0x3a2   : > { %v3190_v63 = vpop.f32.mrf.mxu0  ;;  %v3239_v53 = vpop.f32.mrf.mxu1  ;;  %v3286_v44 = vadd.f32 %v3285_v29, %v3237_v24 }
 0x3a3   : > { %v3191_v58 = vadd.f32 %v5751_v0, %v3190_v63 }
 0x3a5   : > { %v3329_v28 = vpop.f32.mrf.mxu3  ;;  %v3240_v49 = vadd.f32 %v3239_v53, %v3191_v58 }
 0x3a6   : > { %v3330_v26 = vadd.f32 %v3329_v28, %v3281_v32 }
 0x3a8   : > { %3365 = vst [vmem:[%s5759_s17 + $0x18] sm:$0xff] %v3330_v26 }
 0x3a9   : > { %v3288_v3 = vpop.f32.mrf.mxu2 }
 0x3aa   : > { %v3192_v45 = vpop.f32.mrf.mxu0  ;;  %v3241_v59 = vpop.f32.mrf.mxu1  ;;  %v3289_v43 = vadd.f32 %v3288_v3, %v3240_v49 }
 0x3ab   : > { %v3193_v35 = vadd.f32 %v5751_v0, %v3192_v45 }
 0x3ad   : > { %v3332_v55 = vpop.f32.mrf.mxu3  ;;  %v3242_v61 = vadd.f32 %v3241_v59, %v3193_v35 }
 0x3ae   : > { %v3333_v46 = vadd.f32 %v3332_v55, %v3284_v19 }
 0x3b0   : > { %3366 = vst [vmem:[%s5759_s17 + $0x20] sm:$0xff] %v3333_v46 }
 0x3b1   : > { %v3290_v18 = vpop.f32.mrf.mxu2 }
 0x3b2   : > { %v3195_v25 = vpop.f32.mrf.mxu0  ;;  %v3244_v16 = vpop.f32.mrf.mxu1  ;;  %v3291_v62 = vadd.f32 %v3290_v18, %v3242_v61 }
 0x3b3   : > { %v3196_v60 = vadd.f32 %v5751_v0, %v3195_v25 }
 0x3b5   : > { %v3334_v33 = vpop.f32.mrf.mxu3  ;;  %v3245_v27 = vadd.f32 %v3244_v16, %v3196_v60 }
 0x3b6   : > { %v3335_v50 = vadd.f32 %v3334_v33, %v3286_v44 }
 0x3b8   : > { %3367 = vst [vmem:[%s5759_s17 + $0x28] sm:$0xff] %v3335_v50 }
 0x3b9   : > { %v3293_v54 = vpop.f32.mrf.mxu2 }
 0x3ba   : > { %v3197_v1 = vpop.f32.mrf.mxu0  ;;  %v3246_v9 = vpop.f32.mrf.mxu1  ;;  %v3294_v12 = vadd.f32 %v3293_v54, %v3245_v27 }
 0x3bb   : > { %v3198_v17 = vadd.f32 %v5751_v0, %v3197_v1 }
 0x3bd   : > { %v3337_v21 = vpop.f32.mrf.mxu3  ;;  %v3247_v5 = vadd.f32 %v3246_v9, %v3198_v17 }
 0x3be   : > { %v3338_v48 = vadd.f32 %v3337_v21, %v3289_v43 }
 0x3c0   : > { %3368 = vst [vmem:[%s5759_s17 + $0x30] sm:$0xff] %v3338_v48 }
 0x3c1   : > { %v3295_v31 = vpop.f32.mrf.mxu2 }
 0x3c2   : > { %v3200_v41 = vpop.f32.mrf.mxu0  ;;  %v3249_v30 = vpop.f32.mrf.mxu1  ;;  %v3296_v56 = vadd.f32 %v3295_v31, %v3247_v5 }
 0x3c3   : > { %v3201_v20 = vadd.f32 %v5751_v0, %v3200_v41 }
 0x3c5   : > { %v3339_v22 = vpop.f32.mrf.mxu3  ;;  %v3250_v47 = vadd.f32 %v3249_v30, %v3201_v20 }
 0x3c6   : > { %v3340_v42 = vadd.f32 %v3339_v22, %v3291_v62 }
 0x3c8   : > { %3369 = vst [vmem:[%s5759_s17 + $0x38] sm:$0xff] %v3340_v42 }
 0x3c9   : > { %v3298_v6 = vpop.f32.mrf.mxu2 }
 0x3ca   : > { %v3202_v4 = vpop.f32.mrf.mxu0  ;;  %v3251_v34 = vpop.f32.mrf.mxu1  ;;  %v3299_v14 = vadd.f32 %v3298_v6, %v3250_v47 }
 0x3cb   : > { %v3203_v7 = vadd.f32 %v5751_v0, %v3202_v4 }
 0x3cd   : > { %v3342_v10 = vpop.f32.mrf.mxu3  ;;  %v3252_v13 = vadd.f32 %v3251_v34, %v3203_v7 }
 0x3ce   : > { %v3343_v51 = vadd.f32 %v3342_v10, %v3294_v12 }
 0x3d0   : > { %3370 = vst [vmem:[%s5759_s17 + $0x40] sm:$0xff] %v3343_v51 }
 0x3d1   : > { %v3300_v40 = vpop.f32.mrf.mxu2 }
 0x3d2   : > { %v3205_v2 = vpop.f32.mrf.mxu0  ;;  %v3254_v57 = vpop.f32.mrf.mxu1  ;;  %v3301_v29 = vadd.f32 %v3300_v40, %v3252_v13 }
 0x3d3   : > { %v3206_v63 = vadd.f32 %v5751_v0, %v3205_v2 }
 0x3d5   : > { %v3344_v52 = vpop.f32.mrf.mxu3  ;;  %v3255_v36 = vadd.f32 %v3254_v57, %v3206_v63 }
 0x3d6   : > { %v3345_v38 = vadd.f32 %v3344_v52, %v3296_v56 }
 0x3d8   : > { %3371 = vst [vmem:[%s5759_s17 + $0x48] sm:$0xff] %v3345_v38 }
 0x3d9   : > { %v3303_v23 = vpop.f32.mrf.mxu2 }
 0x3da   : > { %v3207_v28 = vpop.f32.mrf.mxu0  ;;  %v3304_v53 = vadd.f32 %v3303_v23, %v3255_v36  ;;  %v3256_v26 = vpop.f32.mrf.mxu1 }
 0x3db   : > { %v3208_v45 = vadd.f32 %v5751_v0, %v3207_v28 }
 0x3dd   : > { %v3347_v8 = vpop.f32.mrf.mxu3  ;;  %v3257_v39 = vadd.f32 %v3256_v26, %v3208_v45 }
 0x3de   : > { %v3348_v11 = vadd.f32 %v3347_v8, %v3299_v14 }
 0x3e0   : > { %3372 = vst [vmem:[%s5759_s17 + $0x50] sm:$0xff] %v3348_v11 }
 0x3e1   : > { %v3305_v3 = vpop.f32.mrf.mxu2 }
 0x3e2   : > { %v3210_v55 = vpop.f32.mrf.mxu0  ;;  %v3306_v46 = vadd.f32 %v3305_v3, %v3257_v39  ;;  %v3259_v44 = vpop.f32.mrf.mxu1 }
 0x3e3   : > { %v3211_v18 = vadd.f32 %v5751_v0, %v3210_v55 }
 0x3e5   : > { %v3349_v15 = vpop.f32.mrf.mxu3  ;;  %v3260_v33 = vadd.f32 %v3259_v44, %v3211_v18 }
 0x3e6   : > { %v3350_v32 = vadd.f32 %v3349_v15, %v3301_v29 }
 0x3e8   : > { %3373 = vst [vmem:[%s5759_s17 + $0x58] sm:$0xff] %v3350_v32 }
 0x3e9   : > { %v3308_v25 = vpop.f32.mrf.mxu2 }
 0x3ea   : > { %v3212_v58 = vpop.f32.mrf.mxu0  ;;  %v3309_v50 = vadd.f32 %v3308_v25, %v3260_v33  ;;  %v3261_v43 = vpop.f32.mrf.mxu1 }
 0x3eb   : > { %v3213_v16 = vadd.f32 %v5751_v0, %v3212_v58 }
 0x3ed   : > { %v3352_v37 = vpop.f32.mrf.mxu3  ;;  %v3262_v35 = vadd.f32 %v3261_v43, %v3213_v16 }
 0x3ee   : > { %v3353_v19 = vadd.f32 %v3352_v37, %v3304_v53 }
 0x3f0   : > { %3374 = vst [vmem:[%s5759_s17 + $0x60] sm:$0xff] %v3353_v19 }
 0x3f1   : > { %v3310_v21 = vpop.f32.mrf.mxu2 }
 0x3f2   : > { %v3311_v48 = vadd.f32 %v3310_v21, %v3262_v35 }
 0x3f5   : > { %v3354_v59 = vpop.f32.mrf.mxu3 }
 0x3f6   : > { %v3355_v24 = vadd.f32 %v3354_v59, %v3306_v46 }
 0x3f8   : > { %3375 = vst [vmem:[%s5759_s17 + $0x68] sm:$0xff] %v3355_v24 }
 0x3fd   : > { %v3357_v49 = vpop.f32.mrf.mxu3 }
 0x3fe   : > { %v3358_v54 = vadd.f32 %v3357_v49, %v3309_v50 }
 0x400   : > { %3376 = vst [vmem:[%s5759_s17 + $0x70] sm:$0xff] %v3358_v54 }
 0x405   : > { %v3359_v1 = vpop.f32.mrf.mxu3 }
 0x406   : > { %v3360_v61 = vadd.f32 %v3359_v1, %v3311_v48 }
 0x408   : > { %3377 = vst [vmem:[%s5759_s17 + $0x78] sm:$0xff] %v3360_v61 }
 0x409 PF: > { %s18_s24 = sadd.s32 1, %s4387_s24  }
 0x40a   : > { %p15_p7 = scmp.ge.s32.totalorder %s18_s24, 4  }
 0x40c   :  { %17 = sbr.rel (!%p15_p7) target bundleno = 1 (0x1), region = 86 }
 0x411   :  { %3400 = vsyncpa [#allocation3], 1 }
 0x412   :  { %3402 = vsyncpa [#allocation3 + $0x1], 1 }

</bundles_post_ra>
